<compile_context>
chip_gen: v7x
topology: tpu7x:2x2x1
jax: 0.10.0
libtpu: 0.0.40
codegen_flags: <defaults>
</compile_context>

<pallas_src>
import functools
import math

import jax
import jax.numpy as jnp
from jax.experimental import pallas as pl
from jax.experimental.pallas import tpu as pltpu


# ----------------------------------------------------------------------------- config helpers

def _default_vmem_limit():
    # Per-generation scoped-VMEM budget: ~half of physical VMEM, clamped to [32, 96] MiB.
    # v5e/v6e (128 MiB physical) -> 64 MiB; v7x (64 MiB per TC) -> 32 MiB.
    try:
        cap = getattr(pltpu.get_tpu_info(), "vmem_capacity_bytes", 64 * 1024 * 1024)
        return int(min(max(cap // 2, 32 * 1024 * 1024), 96 * 1024 * 1024))
    except Exception:
        return 32 * 1024 * 1024


_VMEM_LIMIT = _default_vmem_limit()


def _cparams(semantics):
    return pltpu.CompilerParams(dimension_semantics=semantics,
                                vmem_limit_bytes=_VMEM_LIMIT)


def _row_tile(m):
    # Largest row tile (multiple of 16, <=1024) that evenly divides m; falls back to m.
    # TODO(synk): non-divisible M would benefit from a cdiv grid + masked tail tile.
    for t in (1024, 512, 256, 128, 64, 32, 16):
        if m >= t and m % t == 0:
            return t
    return m


def _q_tile(nq):
    for t in (1024, 512, 256, 128):
        if nq > t and nq % t == 0:
            return t
    return nq


def _row_spec(tm, c):
    return pl.BlockSpec((tm, c), lambda i: (i, 0))


def _bcast_spec(c):
    # (1, C) parameter row, same block for every grid step.
    return pl.BlockSpec((1, c), lambda i: (0, 0))


def _full2d_spec(r, c):
    # full matrix resident across the row grid.
    return pl.BlockSpec((r, c), lambda i: (0, 0))


# ----------------------------------------------------------------------------- kernel helpers

def _ln(x, a, b):
    # torch-style LayerNorm of the reference module: UNBIASED std, eps added to the std.
    d = x.shape[-1]
    mean = jnp.mean(x, axis=-1, keepdims=True)
    diff = x - mean
    var_unbiased = jnp.sum(diff * diff, axis=-1, keepdims=True) * (1.0 / (d - 1))
    std = jnp.sqrt(var_unbiased)
    return a * diff * pl.reciprocal(std + 1e-6, approx=True) + b


# ----------------------------------------------------------------------------- kernels

def _ln_qkv_kernel(x_ref, a_ref, b_ref, wq_ref, bq_ref, wkv_ref, bkv_ref, q_ref, kv_ref):
    # LN(x) -> fused q and kv projections (bf16 outputs for the attention kernel).
    z = _ln(x_ref[...], a_ref[...], b_ref[...]).astype(jnp.bfloat16)
    q = jnp.dot(z, wq_ref[...], preferred_element_type=jnp.float32) + bq_ref[...]
    kv = jnp.dot(z, wkv_ref[...], preferred_element_type=jnp.float32) + bkv_ref[...]
    q_ref[...] = q.astype(q_ref.dtype)
    kv_ref[...] = kv.astype(kv_ref.dtype)


def _ln_linear_kernel(x_ref, a_ref, b_ref, w_ref, bias_ref, o_ref):
    # LN(x) -> single projection (used for the decoder cross-attention query).
    z = _ln(x_ref[...], a_ref[...], b_ref[...]).astype(jnp.bfloat16)
    y = jnp.dot(z, w_ref[...], preferred_element_type=jnp.float32) + bias_ref[...]
    o_ref[...] = y.astype(o_ref.dtype)


def _linear_kernel(x_ref, w_ref, bias_ref, o_ref):
    # Plain linear (memory -> fused kv projection of the cross-attention).
    y = jnp.dot(x_ref[...].astype(jnp.bfloat16), w_ref[...],
                preferred_element_type=jnp.float32) + bias_ref[...]
    o_ref[...] = y.astype(o_ref.dtype)


def _outproj_residual_kernel(ctx_ref, w_ref, bias_ref, res_ref, o_ref):
    # Attention out-projection fused with the sublayer residual add (f32 residual stream).
    y = jnp.dot(ctx_ref[...], w_ref[...], preferred_element_type=jnp.float32) + bias_ref[...]
    o_ref[...] = res_ref[...] + y


def _ff_residual_kernel(x_ref, a_ref, b_ref, w1_ref, b1_ref, w2_ref, b2_ref, o_ref):
    # Fused feed-forward sublayer: x + w2(relu(w1(LN(x)))).  The (tm, ff) hidden stays in VMEM.
    x = x_ref[...]
    z = _ln(x, a_ref[...], b_ref[...]).astype(jnp.bfloat16)
    h = jnp.dot(z, w1_ref[...], preferred_element_type=jnp.float32) + b1_ref[...]
    h = jnp.maximum(h, 0.0).astype(jnp.bfloat16)
    y = jnp.dot(h, w2_ref[...], preferred_element_type=jnp.float32) + b2_ref[...]
    o_ref[...] = x + y


def _layernorm_kernel(x_ref, a_ref, b_ref, o_ref):
    o_ref[...] = _ln(x_ref[...], a_ref[...], b_ref[...])


def _ln_residual_kernel(x_ref, a_ref, b_ref, res_ref, o_ref):
    # Final decoder LayerNorm fused with AlignedFrameDecoder's "emb + emb_tf" residual.
    o_ref[...] = res_ref[...] + _ln(x_ref[...], a_ref[...], b_ref[...])


def _attention_kernel(q_ref, kv_ref, o_ref, *, n_heads, scale):
    # One (batch, q-tile) block of multi-head scaled-dot-product attention.
    # Heads are split/merged in VMEM with static lane slices; the merged (tq, d) context
    # is written lane-dense; attention probabilities never leave VMEM.
    d = q_ref.shape[-1]
    dk = d // n_heads
    q = q_ref[0]                                   # (tq, d)  bf16
    kv = kv_ref[0]                                 # (nk, 2d) bf16
    outs = []
    for h in range(n_heads):
        qh = q[:, h * dk:(h + 1) * dk]
        kh = kv[:, h * dk:(h + 1) * dk]
        vh = kv[:, d + h * dk:d + (h + 1) * dk]
        s = jax.lax.dot_general(qh, kh, (((1,), (1,)), ((), ())),
                                preferred_element_type=jnp.float32) * scale
        m = jnp.max(s, axis=-1, keepdims=True)
        e = jnp.exp(s - m)
        p = e * pl.reciprocal(jnp.sum(e, axis=-1, keepdims=True), approx=True)
        outs.append(jnp.dot(p.astype(jnp.bfloat16), vh, preferred_element_type=jnp.float32))
    o_ref[0] = jnp.concatenate(outs, axis=-1).astype(o_ref.dtype)


def _pointnet_chain_kernel(*refs, n_layers, has_final):
    # Full PointNet-style chain (1x1 conv -> train-mode BatchNorm1d -> ReLU, repeated, plus
    # optional bias-free final conv) with every narrow intermediate slab resident in VMEM.
    # BN batch statistics are computed over the whole B*N axis inside the single block.
    x_ref = refs[0]
    o_ref = refs[-1]
    h = x_ref[...]
    for j in range(n_layers):
        w_ref, g_ref, b_ref = refs[1 + 3 * j:4 + 3 * j]
        y = jnp.dot(h.astype(w_ref.dtype), w_ref[...], preferred_element_type=jnp.float32)
        mean = jnp.mean(y, axis=0, keepdims=True)
        var = jnp.maximum(jnp.mean(y * y, axis=0, keepdims=True) - mean * mean, 0.0)
        inv_std = jax.lax.rsqrt(var + 1e-5)
        h = jnp.maximum((y - mean) * inv_std * g_ref[...] + b_ref[...], 0.0)
    if has_final:
        wf_ref = refs[1 + 3 * n_layers]
        h = jnp.dot(h.astype(wf_ref.dtype), wf_ref[...], preferred_element_type=jnp.float32)
    o_ref[...] = h


# ----------------------------------------------------------------------------- wrappers

def ln_qkv_pallas(x2d, a, b, wq, bq, wkv, bkv):
    m, d = x2d.shape
    d2 = wkv.shape[1]
    tm = _row_tile(m)
    return pl.pallas_call(
        _ln_qkv_kernel,
        grid=(m // tm,),
        in_specs=[_row_spec(tm, d), _bcast_spec(d), _bcast_spec(d),
                  _full2d_spec(d, d), _bcast_spec(d),
                  _full2d_spec(d, d2), _bcast_spec(d2)],
        out_specs=[_row_spec(tm, d), _row_spec(tm, d2)],
        out_shape=(jax.ShapeDtypeStruct((m, d), jnp.bfloat16),
                   jax.ShapeDtypeStruct((m, d2), jnp.bfloat16)),
        compiler_params=_cparams(("parallel",)),
    )(x2d, a.reshape(1, d), b.reshape(1, d), wq, bq.reshape(1, d), wkv, bkv.reshape(1, d2))


def ln_linear_bf16_pallas(x2d, a, b, w, bias):
    m, d = x2d.shape
    n = w.shape[1]
    tm = _row_tile(m)
    return pl.pallas_call(
        _ln_linear_kernel,
        grid=(m // tm,),
        in_specs=[_row_spec(tm, d), _bcast_spec(d), _bcast_spec(d),
                  _full2d_spec(d, n), _bcast_spec(n)],
        out_specs=_row_spec(tm, n),
        out_shape=jax.ShapeDtypeStruct((m, n), jnp.bfloat16),
        compiler_params=_cparams(("parallel",)),
    )(x2d, a.reshape(1, d), b.reshape(1, d), w, bias.reshape(1, n))


def linear_bf16_pallas(x2d, w, bias):
    m, k = x2d.shape
    n = w.shape[1]
    tm = _row_tile(m)
    return pl.pallas_call(
        _linear_kernel,
        grid=(m // tm,),
        in_specs=[_row_spec(tm, k), _full2d_spec(k, n), _bcast_spec(n)],
        out_specs=_row_spec(tm, n),
        out_shape=jax.ShapeDtypeStruct((m, n), jnp.bfloat16),
        compiler_params=_cparams(("parallel",)),
    )(x2d, w, bias.reshape(1, n))


def outproj_residual_pallas(ctx2d, w, bias, res2d):
    m, d = ctx2d.shape
    tm = _row_tile(m)
    return pl.pallas_call(
        _outproj_residual_kernel,
        grid=(m // tm,),
        in_specs=[_row_spec(tm, d), _full2d_spec(d, d), _bcast_spec(d), _row_spec(tm, d)],
        out_specs=_row_spec(tm, d),
        out_shape=jax.ShapeDtypeStruct((m, d), jnp.float32),
        compiler_params=_cparams(("parallel",)),
    )(ctx2d, w, bias.reshape(1, d), res2d)


def ff_residual_pallas(x2d, a, b, w1, b1, w2, b2):
    m, d = x2d.shape
    ff = w1.shape[1]
    tm = _row_tile(m)
    return pl.pallas_call(
        _ff_residual_kernel,
        grid=(m // tm,),
        in_specs=[_row_spec(tm, d), _bcast_spec(d), _bcast_spec(d),
                  _full2d_spec(d, ff), _bcast_spec(ff),
                  _full2d_spec(ff, d), _bcast_spec(d)],
        out_specs=_row_spec(tm, d),
        out_shape=jax.ShapeDtypeStruct((m, d), jnp.float32),
        compiler_params=_cparams(("parallel",)),
    )(x2d, a.reshape(1, d), b.reshape(1, d), w1, b1.reshape(1, ff), w2, b2.reshape(1, d))


def layernorm_pallas(x2d, a, b):
    m, d = x2d.shape
    tm = _row_tile(m)
    return pl.pallas_call(
        _layernorm_kernel,
        grid=(m // tm,),
        in_specs=[_row_spec(tm, d), _bcast_spec(d), _bcast_spec(d)],
        out_specs=_row_spec(tm, d),
        out_shape=jax.ShapeDtypeStruct((m, d), jnp.float32),
        compiler_params=_cparams(("parallel",)),
    )(x2d, a.reshape(1, d), b.reshape(1, d))


def ln_residual_pallas(x2d, a, b, res2d):
    m, d = x2d.shape
    tm = _row_tile(m)
    return pl.pallas_call(
        _ln_residual_kernel,
        grid=(m // tm,),
        in_specs=[_row_spec(tm, d), _bcast_spec(d), _bcast_spec(d), _row_spec(tm, d)],
        out_specs=_row_spec(tm, d),
        out_shape=jax.ShapeDtypeStruct((m, d), jnp.float32),
        compiler_params=_cparams(("parallel",)),
    )(x2d, a.reshape(1, d), b.reshape(1, d), res2d)


def attention_pallas(q_bnd, kv_bnd, n_heads):
    b, nq, d = q_bnd.shape
    nk, d2 = kv_bnd.shape[1], kv_bnd.shape[2]
    tq = _q_tile(nq)
    scale = 1.0 / math.sqrt(d // n_heads)
    return pl.pallas_call(
        functools.partial(_attention_kernel, n_heads=n_heads, scale=scale),
        grid=(b, nq // tq),
        in_specs=[pl.BlockSpec((1, tq, d), lambda i, j: (i, j, 0)),
                  pl.BlockSpec((1, nk, d2), lambda i, j: (i, 0, 0))],
        out_specs=pl.BlockSpec((1, tq, d), lambda i, j: (i, j, 0)),
        out_shape=jax.ShapeDtypeStruct((b, nq, d), jnp.bfloat16),
        compiler_params=_cparams(("parallel", "parallel")),
    )(q_bnd, kv_bnd)


def pointnet_chain_pallas(x2d, layers, final_w=None):
    # Single full-slab kernel: the whole (M, C) chain stays resident in VMEM.
    # TODO(synk): for very large point clouds this should fall back to a tiled
    # two-pass BatchNorm formulation instead of one VMEM-resident block.
    m, cin = x2d.shape
    cout = final_w.shape[1] if final_w is not None else layers[-1]["w"].shape[1]
    args = [x2d]
    in_specs = [_full2d_spec(m, cin)]
    for lyr in layers:
        k, n = lyr["w"].shape
        args += [lyr["w"], lyr["gamma"].reshape(1, n), lyr["beta"].reshape(1, n)]
        in_specs += [_full2d_spec(k, n), _bcast_spec(n), _bcast_spec(n)]
    if final_w is not None:
        args.append(final_w)
        in_specs.append(_full2d_spec(final_w.shape[0], final_w.shape[1]))
    return pl.pallas_call(
        functools.partial(_pointnet_chain_kernel, n_layers=len(layers),
                          has_final=final_w is not None),
        grid=(1,),
        in_specs=in_specs,
        out_specs=_full2d_spec(m, cout),
        out_shape=jax.ShapeDtypeStruct((m, cout), jnp.float32),
        compiler_params=_cparams(("arbitrary",)),
    )(*args)


# ----------------------------------------------------------------------------- transformer

def encoder_layer_forward(layer, x, n_heads):
    b, n, d = x.shape
    x2 = x.reshape(b * n, d)
    sa = layer["self_attn"]
    q2, kv2 = ln_qkv_pallas(x2, layer["sub"][0]["a"], layer["sub"][0]["b"],
                            sa["wq"], sa["bq"], sa["wkv"], sa["bkv"])
    ctx = attention_pallas(q2.reshape(b, n, d), kv2.reshape(b, n, 2 * d), n_heads)
    x2 = outproj_residual_pallas(ctx.reshape(b * n, d), sa["wo"], sa["bo"], x2)
    x2 = ff_residual_pallas(x2, layer["sub"][1]["a"], layer["sub"][1]["b"],
                            layer["ff"]["w1"], layer["ff"]["b1"],
                            layer["ff"]["w2"], layer["ff"]["b2"])
    return x2.reshape(b, n, d)


def decoder_layer_forward(layer, x, memory, n_heads):
    b, n, d = x.shape
    nk = memory.shape[1]
    x2 = x.reshape(b * n, d)
    mem2 = memory.reshape(b * nk, d)
    # sublayer 0: self-attention
    sa = layer["self_attn"]
    q2, kv2 = ln_qkv_pallas(x2, layer["sub"][0]["a"], layer["sub"][0]["b"],
                            sa["wq"], sa["bq"], sa["wkv"], sa["bkv"])
    ctx = attention_pallas(q2.reshape(b, n, d), kv2.reshape(b, n, 2 * d), n_heads)
    x2 = outproj_residual_pallas(ctx.reshape(b * n, d), sa["wo"], sa["bo"], x2)
    # sublayer 1: cross-attention (query from LN(x); key/value from memory)
    ca = layer["src_attn"]
    q2 = ln_linear_bf16_pallas(x2, layer["sub"][1]["a"], layer["sub"][1]["b"],
                               ca["wq"], ca["bq"])
    kv2 = linear_bf16_pallas(mem2, ca["wkv"], ca["bkv"])
    ctx = attention_pallas(q2.reshape(b, n, d), kv2.reshape(b, nk, 2 * d), n_heads)
    x2 = outproj_residual_pallas(ctx.reshape(b * n, d), ca["wo"], ca["bo"], x2)
    # sublayer 2: feed-forward
    x2 = ff_residual_pallas(x2, layer["sub"][2]["a"], layer["sub"][2]["b"],
                            layer["ff"]["w1"], layer["ff"]["b1"],
                            layer["ff"]["w2"], layer["ff"]["b2"])
    return x2.reshape(b, n, d)


def encoder_forward(p, x, n_heads):
    for layer in p["layers"]:
        x = encoder_layer_forward(layer, x, n_heads)
    b, n, d = x.shape
    return layernorm_pallas(x.reshape(b * n, d), p["norm"]["a"], p["norm"]["b"]).reshape(b, n, d)


def transformer_forward(p, src_bne, tgt_bne, residual_bne, n_heads):
    # Mirrors Transformer.forward with bidirectional=False: encoder runs on tgt (memory
    # cloud), decoder on src cross-attending to it.  Returns residual + norm(decoder_out),
    # i.e. the "embedding + embedding_tf" add of AlignedFrameDecoder is fused into the
    # decoder's final LayerNorm kernel.  The attention-probability tensor of the torch
    # module is never consumed by AlignedFrameDecoder's outputs and is not materialized.
    memory = encoder_forward(p["encoder"], tgt_bne, n_heads)
    x = src_bne
    for layer in p["decoder"]["layers"]:
        x = decoder_layer_forward(layer, x, memory, n_heads)
    b, n, d = x.shape
    out = ln_residual_pallas(x.reshape(b * n, d), p["decoder"]["norm"]["a"],
                             p["decoder"]["norm"]["b"], residual_bne.reshape(b * n, d))
    return out.reshape(b, n, d)


# ----------------------------------------------------------------------------- point MLPs

def embedder_forward(p, x_bnc):
    # TODO(synk): DGCNN's class body is not provided in the source file; substituting a
    # per-point Conv1d(k=1, bias=False)+BatchNorm1d+ReLU MLP embedder to emb_dims.
    b, n, c = x_bnc.shape
    out = pointnet_chain_pallas(x_bnc.reshape(b * n, c), p["layers"])
    return out.reshape(b, n, -1)                                      # (B, N, emb)


def pointnet_head_forward(p, x_bne):
    # nn.Sequential(PointNet([emb, emb//2, emb//4, emb//8]), Conv1d(emb//8, 4, bias=False))
    b, n, d = x_bne.shape
    out = pointnet_chain_pallas(x_bne.reshape(b * n, d), p["layers"], final_w=p["final_w"])
    return out.reshape(b, n, -1)                                      # (B, N, 4)


# ----------------------------------------------------------------------------- top-level forward
# AlignedFrameDecoder defaults: flow_direction='both', head_output_type='point',
# flow_frame='original', output_dims=4.  BatchNorm uses train-mode batch statistics
# (over the combined B*N axis), matching torch BatchNorm1d in training.

def aligned_frame_decoder_forward(
    params, action_points_bnc, anchor_points_bnc, action_center, anchor_center, n_heads
):
    # Everything stays row-major (B, N, C); centers arrive channel-first (B, 3, 1).
    action_center_r = jnp.transpose(action_center, (0, 2, 1))         # (B, 1, 3)
    anchor_center_r = jnp.transpose(anchor_center, (0, 2, 1))

    # input_dims == 3, so the "[:, :3] - center" + cat is just a full subtraction.
    action_dmean = action_points_bnc - action_center_r
    anchor_dmean = anchor_points_bnc - anchor_center_r

    action_embedding = embedder_forward(params["emb_action"], action_dmean)   # (B, N, emb)
    anchor_embedding = embedder_forward(params["emb_anchor"], anchor_dmean)

    outputs = {}

    # -------- action2anchor --------
    action_embedding = transformer_forward(params["tf_action"], action_embedding,
                                           anchor_embedding, action_embedding, n_heads)
    apw = pointnet_head_forward(params["head_action"], action_embedding)      # (B, N, 4)
    pred_action_anchor_frame = apw[..., :3] + anchor_center_r
    action_flow = pred_action_anchor_frame - action_points_bnc[..., :3]
    outputs["flow_action"] = jnp.concatenate([action_flow, apw[..., 3:]], axis=-1)

    # -------- anchor2action (uses the already-updated action_embedding, as in torch) ----
    anchor_embedding = transformer_forward(params["tf_anchor"], anchor_embedding,
                                           action_embedding, anchor_embedding, n_heads)
    anw = pointnet_head_forward(params["head_anchor"], anchor_embedding)      # (B, N, 4)
    pred_anchor_action_frame = anw[..., :3] + action_center_r
    anchor_flow = pred_anchor_action_frame - anchor_points_bnc[..., :3]
    outputs["flow_anchor"] = jnp.concatenate([anchor_flow, anw[..., 3:]], axis=-1)

    return outputs


# ----------------------------------------------------------------------------- params
# Weights are stored pre-transposed (Cin, Cout) and pre-cast to bf16 in HBM (the first
# embedder conv on raw xyz stays f32).  LayerNorm/BatchNorm parameters and biases are f32.

def init_params(key, emb_dims, ff_dims, input_dims, n_blocks=1, output_dims=4):
    keys = iter(jax.random.split(key, 512))

    def w(shape, dtype=jnp.bfloat16):
        return (jax.random.normal(next(keys), shape, jnp.float32) * 0.02).astype(dtype)

    def zeros(shape):
        return jnp.zeros(shape, jnp.float32)

    def ones(shape):
        return jnp.ones(shape, jnp.float32)

    def mha():
        # The 4 (d_model -> d_model) linears of torch MultiHeadedAttention, stored as
        # q / fused-kv / out projections.
        return dict(wq=w((emb_dims, emb_dims)), bq=zeros((emb_dims,)),
                    wkv=w((emb_dims, 2 * emb_dims)), bkv=zeros((2 * emb_dims,)),
                    wo=w((emb_dims, emb_dims)), bo=zeros((emb_dims,)))

    def ff():
        return dict(w1=w((emb_dims, ff_dims)), b1=zeros((ff_dims,)),
                    w2=w((ff_dims, emb_dims)), b2=zeros((emb_dims,)))

    def ln():
        return dict(a=ones((emb_dims,)), b=zeros((emb_dims,)))

    def enc_layer():
        return dict(self_attn=mha(), ff=ff(), sub=[ln(), ln()])

    def dec_layer():
        return dict(self_attn=mha(), src_attn=mha(), ff=ff(), sub=[ln(), ln(), ln()])

    def transformer():
        return dict(
            encoder=dict(layers=[enc_layer() for _ in range(n_blocks)], norm=ln()),
            decoder=dict(layers=[dec_layer() for _ in range(n_blocks)], norm=ln()),
        )

    def conv_bn(cin, cout, w_dtype=jnp.bfloat16):
        return dict(w=w((cin, cout), w_dtype), gamma=ones((cout,)), beta=zeros((cout,)))

    def embedder():
        dims = [input_dims, 64, emb_dims]
        return dict(layers=[
            conv_bn(dims[j], dims[j + 1],
                    w_dtype=jnp.float32 if j == 0 else jnp.bfloat16)   # raw-xyz conv kept f32
            for j in range(len(dims) - 1)])

    def head():
        dims = [emb_dims, emb_dims // 2, emb_dims // 4, emb_dims // 8]
        return dict(
            layers=[conv_bn(dims[j], dims[j + 1]) for j in range(len(dims) - 1)],
            final_w=w((emb_dims // 8, output_dims)),
        )

    return dict(
        emb_action=embedder(), emb_anchor=embedder(),
        tf_action=transformer(), tf_anchor=transformer(),
        head_action=head(), head_anchor=head(),
    )


# ----------------------------------------------------------------------------- main

if __name__ == "__main__":
    B, N, D_IN = 2, 16, 3
    EMB, FF, HEADS = 64, 128, 4

    key = jax.random.PRNGKey(0)
    k1, k2, kp = jax.random.split(key, 3)

    action_points = jax.random.normal(k1, (B, N, D_IN), jnp.float32)   # input[0]: (B, N, 3)
    anchor_points = jax.random.normal(k2, (B, N, D_IN), jnp.float32)   # input[1]: (B, N, 3)

    # centers: (B, 3, 1), per-cloud mean of the xyz channels (same convention as the caller)
    action_center = jnp.mean(action_points, axis=1).reshape(B, D_IN, 1)
    anchor_center = jnp.mean(anchor_points, axis=1).reshape(B, D_IN, 1)

    params = init_params(kp, emb_dims=EMB, ff_dims=FF, input_dims=D_IN)

    fwd = jax.jit(functools.partial(aligned_frame_decoder_forward, n_heads=HEADS))
    outputs = fwd(params, action_points, anchor_points, action_center, anchor_center)
    jax.block_until_ready(outputs)

    assert outputs["flow_action"].shape == (B, N, 4)
    assert outputs["flow_anchor"].shape == (B, N, 4)
    assert bool(jnp.all(jnp.isfinite(outputs["flow_action"])))
    assert bool(jnp.all(jnp.isfinite(outputs["flow_anchor"])))
    print("KERNEL_OK")
</pallas_src>

<mosaic_0001>
module attributes {stable_mosaic.version = 11 : i64} {
  func.func @_pointnet_chain_kernel(%arg0: i32, %arg1: memref<32x3xf32, #tpu.memory_space<vmem>>, %arg2: memref<3x64xf32, #tpu.memory_space<vmem>>, %arg3: memref<1x64xf32, #tpu.memory_space<vmem>>, %arg4: memref<1x64xf32, #tpu.memory_space<vmem>>, %arg5: memref<64x64xbf16, #tpu.memory_space<vmem>>, %arg6: memref<1x64xf32, #tpu.memory_space<vmem>>, %arg7: memref<1x64xf32, #tpu.memory_space<vmem>>, %arg8: memref<32x64xf32, #tpu.memory_space<vmem>>) attributes {dimension_semantics = [#tpu.dimension_semantics<arbitrary>], iteration_bounds = array<i64: 1>, scalar_prefetch = 0 : i64, scratch_operands = 0 : i64, tpu.core_type = #tpu.core_type<tc>, window_params = [{pipeline_mode = #tpu.pipeline_mode<synchronous>, transform_indices = @transform_0, window_bounds = array<i64: 32, 3>}, {pipeline_mode = #tpu.pipeline_mode<synchronous>, transform_indices = @transform_1, window_bounds = array<i64: 3, 64>}, {pipeline_mode = #tpu.pipeline_mode<synchronous>, transform_indices = @transform_2, window_bounds = array<i64: 1, 64>}, {pipeline_mode = #tpu.pipeline_mode<synchronous>, transform_indices = @transform_3, window_bounds = array<i64: 1, 64>}, {pipeline_mode = #tpu.pipeline_mode<synchronous>, transform_indices = @transform_4, window_bounds = array<i64: 64, 64>}, {pipeline_mode = #tpu.pipeline_mode<synchronous>, transform_indices = @transform_5, window_bounds = array<i64: 1, 64>}, {pipeline_mode = #tpu.pipeline_mode<synchronous>, transform_indices = @transform_6, window_bounds = array<i64: 1, 64>}, {pipeline_mode = #tpu.pipeline_mode<synchronous>, transform_indices = @transform_7, window_bounds = array<i64: 32, 64>}]} {
    %c0 = arith.constant 0 : index
    %c0_0 = arith.constant 0 : index
    %0 = vector.load %arg1[%c0, %c0_0] : memref<32x3xf32, #tpu.memory_space<vmem>>, vector<32x3xf32>
    %c0_1 = arith.constant 0 : index
    %c0_2 = arith.constant 0 : index
    %1 = vector.load %arg2[%c0_1, %c0_2] : memref<3x64xf32, #tpu.memory_space<vmem>>, vector<3x64xf32>
    %cst = arith.constant dense<0.000000e+00> : vector<32x64xf32>
    %2 = tpu.matmul %0, %1, %cst {dimension_numbers = #tpu.dot_dimension_numbers<[1], [0], [0], [1], [0, 0, 1, 1], [], []>} : vector<32x3xf32>, vector<3x64xf32>, vector<32x64xf32> -> vector<32x64xf32>
    %cst_3 = arith.constant dense<0.000000e+00> : vector<64xf32>
    %3 = vector.multi_reduction <add>, %2, %cst_3 [0] : vector<32x64xf32> to vector<64xf32>
    %4 = vector.shape_cast %3 : vector<64xf32> to vector<1x64xf32>
    %cst_4 = arith.constant 3.200000e+01 : f32
    %5 = vector.broadcast %cst_4 : f32 to vector<1x64xf32>
    %6 = arith.divf %4, %5 : vector<1x64xf32>
    %7 = arith.mulf %2, %2 : vector<32x64xf32>
    %cst_5 = arith.constant dense<0.000000e+00> : vector<64xf32>
    %8 = vector.multi_reduction <add>, %7, %cst_5 [0] : vector<32x64xf32> to vector<64xf32>
    %9 = vector.shape_cast %8 : vector<64xf32> to vector<1x64xf32>
    %cst_6 = arith.constant 3.200000e+01 : f32
    %10 = vector.broadcast %cst_6 : f32 to vector<1x64xf32>
    %11 = arith.divf %9, %10 : vector<1x64xf32>
    %12 = arith.mulf %6, %6 : vector<1x64xf32>
    %13 = arith.subf %11, %12 : vector<1x64xf32>
    %cst_7 = arith.constant 0.000000e+00 : f32
    %14 = vector.broadcast %cst_7 : f32 to vector<1x64xf32>
    %15 = arith.maximumf %13, %14 : vector<1x64xf32>
    %cst_8 = arith.constant 9.99999974E-6 : f32
    %16 = vector.broadcast %cst_8 : f32 to vector<1x64xf32>
    %17 = arith.addf %15, %16 : vector<1x64xf32>
    %18 = math.rsqrt %17 : vector<1x64xf32>
    %19 = vector.broadcast %6 : vector<1x64xf32> to vector<32x64xf32>
    %20 = arith.subf %2, %19 : vector<32x64xf32>
    %21 = vector.broadcast %18 : vector<1x64xf32> to vector<32x64xf32>
    %22 = arith.mulf %20, %21 : vector<32x64xf32>
    %c0_9 = arith.constant 0 : index
    %c0_10 = arith.constant 0 : index
    %23 = vector.load %arg3[%c0_9, %c0_10] : memref<1x64xf32, #tpu.memory_space<vmem>>, vector<1x64xf32>
    %24 = vector.broadcast %23 : vector<1x64xf32> to vector<32x64xf32>
    %25 = arith.mulf %22, %24 : vector<32x64xf32>
    %c0_11 = arith.constant 0 : index
    %c0_12 = arith.constant 0 : index
    %26 = vector.load %arg4[%c0_11, %c0_12] : memref<1x64xf32, #tpu.memory_space<vmem>>, vector<1x64xf32>
    %27 = vector.broadcast %26 : vector<1x64xf32> to vector<32x64xf32>
    %28 = arith.addf %25, %27 : vector<32x64xf32>
    %cst_13 = arith.constant 0.000000e+00 : f32
    %29 = vector.broadcast %cst_13 : f32 to vector<32x64xf32>
    %30 = arith.maximumf %28, %29 : vector<32x64xf32>
    %31 = arith.truncf %30 : vector<32x64xf32> to vector<32x64xbf16>
    %c0_14 = arith.constant 0 : index
    %c0_15 = arith.constant 0 : index
    %32 = vector.load %arg5[%c0_14, %c0_15] : memref<64x64xbf16, #tpu.memory_space<vmem>>, vector<64x64xbf16>
    %cst_16 = arith.constant dense<0.000000e+00> : vector<32x64xf32>
    %33 = tpu.matmul %31, %32, %cst_16 {dimension_numbers = #tpu.dot_dimension_numbers<[1], [0], [0], [1], [0, 0, 1, 1], [], []>} : vector<32x64xbf16>, vector<64x64xbf16>, vector<32x64xf32> -> vector<32x64xf32>
    %cst_17 = arith.constant dense<0.000000e+00> : vector<64xf32>
    %34 = vector.multi_reduction <add>, %33, %cst_17 [0] : vector<32x64xf32> to vector<64xf32>
    %35 = vector.shape_cast %34 : vector<64xf32> to vector<1x64xf32>
    %cst_18 = arith.constant 3.200000e+01 : f32
    %36 = vector.broadcast %cst_18 : f32 to vector<1x64xf32>
    %37 = arith.divf %35, %36 : vector<1x64xf32>
    %38 = arith.mulf %33, %33 : vector<32x64xf32>
    %cst_19 = arith.constant dense<0.000000e+00> : vector<64xf32>
    %39 = vector.multi_reduction <add>, %38, %cst_19 [0] : vector<32x64xf32> to vector<64xf32>
    %40 = vector.shape_cast %39 : vector<64xf32> to vector<1x64xf32>
    %cst_20 = arith.constant 3.200000e+01 : f32
    %41 = vector.broadcast %cst_20 : f32 to vector<1x64xf32>
    %42 = arith.divf %40, %41 : vector<1x64xf32>
    %43 = arith.mulf %37, %37 : vector<1x64xf32>
    %44 = arith.subf %42, %43 : vector<1x64xf32>
    %cst_21 = arith.constant 0.000000e+00 : f32
    %45 = vector.broadcast %cst_21 : f32 to vector<1x64xf32>
    %46 = arith.maximumf %44, %45 : vector<1x64xf32>
    %cst_22 = arith.constant 9.99999974E-6 : f32
    %47 = vector.broadcast %cst_22 : f32 to vector<1x64xf32>
    %48 = arith.addf %46, %47 : vector<1x64xf32>
    %49 = math.rsqrt %48 : vector<1x64xf32>
    %50 = vector.broadcast %37 : vector<1x64xf32> to vector<32x64xf32>
    %51 = arith.subf %33, %50 : vector<32x64xf32>
    %52 = vector.broadcast %49 : vector<1x64xf32> to vector<32x64xf32>
    %53 = arith.mulf %51, %52 : vector<32x64xf32>
    %c0_23 = arith.constant 0 : index
    %c0_24 = arith.constant 0 : index
    %54 = vector.load %arg6[%c0_23, %c0_24] : memref<1x64xf32, #tpu.memory_space<vmem>>, vector<1x64xf32>
    %55 = vector.broadcast %54 : vector<1x64xf32> to vector<32x64xf32>
    %56 = arith.mulf %53, %55 : vector<32x64xf32>
    %c0_25 = arith.constant 0 : index
    %c0_26 = arith.constant 0 : index
    %57 = vector.load %arg7[%c0_25, %c0_26] : memref<1x64xf32, #tpu.memory_space<vmem>>, vector<1x64xf32>
    %58 = vector.broadcast %57 : vector<1x64xf32> to vector<32x64xf32>
    %59 = arith.addf %56, %58 : vector<32x64xf32>
    %cst_27 = arith.constant 0.000000e+00 : f32
    %60 = vector.broadcast %cst_27 : f32 to vector<32x64xf32>
    %61 = arith.maximumf %59, %60 : vector<32x64xf32>
    %c0_28 = arith.constant 0 : index
    %c0_29 = arith.constant 0 : index
    %62 = vector.load %arg8[%c0_28, %c0_29] : memref<32x64xf32, #tpu.memory_space<vmem>>, vector<32x64xf32>
    tpu.vector_store %arg8[%c0_28, %c0_29], %61 {strides = array<i32>} : memref<32x64xf32, #tpu.memory_space<vmem>>, vector<32x64xf32>,
    return
  }
  func.func @transform_0(%arg0: i32) -> (i32, i32) {
    %c0_i32 = arith.constant 0 : i32
    %c0_i32_0 = arith.constant 0 : i32
    %c0_i32_1 = arith.constant 0 : i32
    return %c0_i32, %c0_i32_0 : i32, i32
  }
  func.func @transform_1(%arg0: i32) -> (i32, i32) {
    %c0_i32 = arith.constant 0 : i32
    %c0_i32_0 = arith.constant 0 : i32
    %c0_i32_1 = arith.constant 0 : i32
    return %c0_i32, %c0_i32_0 : i32, i32
  }
  func.func @transform_2(%arg0: i32) -> (i32, i32) {
    %c0_i32 = arith.constant 0 : i32
    %c0_i32_0 = arith.constant 0 : i32
    %c0_i32_1 = arith.constant 0 : i32
    return %c0_i32, %c0_i32_0 : i32, i32
  }
  func.func @transform_3(%arg0: i32) -> (i32, i32) {
    %c0_i32 = arith.constant 0 : i32
    %c0_i32_0 = arith.constant 0 : i32
    %c0_i32_1 = arith.constant 0 : i32
    return %c0_i32, %c0_i32_0 : i32, i32
  }
  func.func @transform_4(%arg0: i32) -> (i32, i32) {
    %c0_i32 = arith.constant 0 : i32
    %c0_i32_0 = arith.constant 0 : i32
    %c0_i32_1 = arith.constant 0 : i32
    return %c0_i32, %c0_i32_0 : i32, i32
  }
  func.func @transform_5(%arg0: i32) -> (i32, i32) {
    %c0_i32 = arith.constant 0 : i32
    %c0_i32_0 = arith.constant 0 : i32
    %c0_i32_1 = arith.constant 0 : i32
    return %c0_i32, %c0_i32_0 : i32, i32
  }
  func.func @transform_6(%arg0: i32) -> (i32, i32) {
    %c0_i32 = arith.constant 0 : i32
    %c0_i32_0 = arith.constant 0 : i32
    %c0_i32_1 = arith.constant 0 : i32
    return %c0_i32, %c0_i32_0 : i32, i32
  }
  func.func @transform_7(%arg0: i32) -> (i32, i32) {
    %c0_i32 = arith.constant 0 : i32
    %c0_i32_0 = arith.constant 0 : i32
    %c0_i32_1 = arith.constant 0 : i32
    return %c0_i32, %c0_i32_0 : i32, i32
  }
}

module attributes {stable_mosaic.version = 11 : i64} {
  func.func @_ln_qkv_kernel(%arg0: i32, %arg1: memref<32x64xf32, #tpu.memory_space<vmem>>, %arg2: memref<1x64xf32, #tpu.memory_space<vmem>>, %arg3: memref<1x64xf32, #tpu.memory_space<vmem>>, %arg4: memref<64x64xbf16, #tpu.memory_space<vmem>>, %arg5: memref<1x64xf32, #tpu.memory_space<vmem>>, %arg6: memref<64x128xbf16, #tpu.memory_space<vmem>>, %arg7: memref<1x128xf32, #tpu.memory_space<vmem>>, %arg8: memref<32x64xbf16, #tpu.memory_space<vmem>>, %arg9: memref<32x128xbf16, #tpu.memory_space<vmem>>) attributes {dimension_semantics = [#tpu.dimension_semantics<parallel>], iteration_bounds = array<i64: 1>, scalar_prefetch = 0 : i64, scratch_operands = 0 : i64, tpu.core_type = #tpu.core_type<tc>, window_params = [{transform_indices = @transform_0, window_bounds = array<i64: 32, 64>}, {pipeline_mode = #tpu.pipeline_mode<synchronous>, transform_indices = @transform_1, window_bounds = array<i64: 1, 64>}, {pipeline_mode = #tpu.pipeline_mode<synchronous>, transform_indices = @transform_2, window_bounds = array<i64: 1, 64>}, {pipeline_mode = #tpu.pipeline_mode<synchronous>, transform_indices = @transform_3, window_bounds = array<i64: 64, 64>}, {pipeline_mode = #tpu.pipeline_mode<synchronous>, transform_indices = @transform_4, window_bounds = array<i64: 1, 64>}, {pipeline_mode = #tpu.pipeline_mode<synchronous>, transform_indices = @transform_5, window_bounds = array<i64: 64, 128>}, {pipeline_mode = #tpu.pipeline_mode<synchronous>, transform_indices = @transform_6, window_bounds = array<i64: 1, 128>}, {transform_indices = @transform_7, window_bounds = array<i64: 32, 64>}, {transform_indices = @transform_8, window_bounds = array<i64: 32, 128>}]} {
    %c0 = arith.constant 0 : index
    %c0_0 = arith.constant 0 : index
    %0 = vector.load %arg1[%c0, %c0_0] : memref<32x64xf32, #tpu.memory_space<vmem>>, vector<32x64xf32>
    %c0_1 = arith.constant 0 : index
    %c0_2 = arith.constant 0 : index
    %1 = vector.load %arg2[%c0_1, %c0_2] : memref<1x64xf32, #tpu.memory_space<vmem>>, vector<1x64xf32>
    %c0_3 = arith.constant 0 : index
    %c0_4 = arith.constant 0 : index
    %2 = vector.load %arg3[%c0_3, %c0_4] : memref<1x64xf32, #tpu.memory_space<vmem>>, vector<1x64xf32>
    %cst = arith.constant dense<0.000000e+00> : vector<32xf32>
    %3 = vector.multi_reduction <add>, %0, %cst [1] : vector<32x64xf32> to vector<32xf32>
    %4 = vector.shape_cast %3 : vector<32xf32> to vector<32x1xf32>
    %cst_5 = arith.constant 6.400000e+01 : f32
    %5 = vector.broadcast %cst_5 : f32 to vector<32x1xf32>
    %6 = arith.divf %4, %5 : vector<32x1xf32>
    %7 = vector.broadcast %6 : vector<32x1xf32> to vector<32x64xf32>
    %8 = arith.subf %0, %7 : vector<32x64xf32>
    %9 = arith.mulf %8, %8 : vector<32x64xf32>
    %cst_6 = arith.constant dense<0.000000e+00> : vector<32xf32>
    %10 = vector.multi_reduction <add>, %9, %cst_6 [1] : vector<32x64xf32> to vector<32xf32>
    %11 = vector.shape_cast %10 : vector<32xf32> to vector<32x1xf32>
    %cst_7 = arith.constant 0.0158730168 : f32
    %12 = vector.broadcast %cst_7 : f32 to vector<32x1xf32>
    %13 = arith.mulf %11, %12 : vector<32x1xf32>
    %14 = math.sqrt %13 : vector<32x1xf32>
    %15 = vector.broadcast %1 : vector<1x64xf32> to vector<32x64xf32>
    %16 = arith.mulf %15, %8 : vector<32x64xf32>
    %cst_8 = arith.constant 9.99999997E-7 : f32
    %17 = vector.broadcast %cst_8 : f32 to vector<32x1xf32>
    %18 = arith.addf %14, %17 : vector<32x1xf32>
    %19 = tpu.reciprocal %18 {approx = true} : vector<32x1xf32> -> vector<32x1xf32>
    %20 = vector.broadcast %19 : vector<32x1xf32> to vector<32x64xf32>
    %21 = arith.mulf %16, %20 : vector<32x64xf32>
    %22 = vector.broadcast %2 : vector<1x64xf32> to vector<32x64xf32>
    %23 = arith.addf %21, %22 : vector<32x64xf32>
    %24 = arith.truncf %23 : vector<32x64xf32> to vector<32x64xbf16>
    %c0_9 = arith.constant 0 : index
    %c0_10 = arith.constant 0 : index
    %25 = vector.load %arg4[%c0_9, %c0_10] : memref<64x64xbf16, #tpu.memory_space<vmem>>, vector<64x64xbf16>
    %cst_11 = arith.constant dense<0.000000e+00> : vector<32x64xf32>
    %26 = tpu.matmul %24, %25, %cst_11 {dimension_numbers = #tpu.dot_dimension_numbers<[1], [0], [0], [1], [0, 0, 1, 1], [], []>} : vector<32x64xbf16>, vector<64x64xbf16>, vector<32x64xf32> -> vector<32x64xf32>
    %c0_12 = arith.constant 0 : index
    %c0_13 = arith.constant 0 : index
    %27 = vector.load %arg5[%c0_12, %c0_13] : memref<1x64xf32, #tpu.memory_space<vmem>>, vector<1x64xf32>
    %28 = vector.broadcast %27 : vector<1x64xf32> to vector<32x64xf32>
    %29 = arith.addf %26, %28 : vector<32x64xf32>
    %c0_14 = arith.constant 0 : index
    %c0_15 = arith.constant 0 : index
    %30 = vector.load %arg6[%c0_14, %c0_15] : memref<64x128xbf16, #tpu.memory_space<vmem>>, vector<64x128xbf16>
    %cst_16 = arith.constant dense<0.000000e+00> : vector<32x128xf32>
    %31 = tpu.matmul %24, %30, %cst_16 {dimension_numbers = #tpu.dot_dimension_numbers<[1], [0], [0], [1], [0, 0, 1, 1], [], []>} : vector<32x64xbf16>, vector<64x128xbf16>, vector<32x128xf32> -> vector<32x128xf32>
    %c0_17 = arith.constant 0 : index
    %c0_18 = arith.constant 0 : index
    %32 = vector.load %arg7[%c0_17, %c0_18] : memref<1x128xf32, #tpu.memory_space<vmem>>, vector<1x128xf32>
    %33 = vector.broadcast %32 : vector<1x128xf32> to vector<32x128xf32>
    %34 = arith.addf %31, %33 : vector<32x128xf32>
    %35 = arith.truncf %29 : vector<32x64xf32> to vector<32x64xbf16>
    %c0_19 = arith.constant 0 : index
    %c0_20 = arith.constant 0 : index
    %36 = vector.load %arg8[%c0_19, %c0_20] : memref<32x64xbf16, #tpu.memory_space<vmem>>, vector<32x64xbf16>
    tpu.vector_store %arg8[%c0_19, %c0_20], %35 {strides = array<i32>} : memref<32x64xbf16, #tpu.memory_space<vmem>>, vector<32x64xbf16>,
    %37 = arith.truncf %34 : vector<32x128xf32> to vector<32x128xbf16>
    %c0_21 = arith.constant 0 : index
    %c0_22 = arith.constant 0 : index
    %38 = vector.load %arg9[%c0_21, %c0_22] : memref<32x128xbf16, #tpu.memory_space<vmem>>, vector<32x128xbf16>
    tpu.vector_store %arg9[%c0_21, %c0_22], %37 {strides = array<i32>} : memref<32x128xbf16, #tpu.memory_space<vmem>>, vector<32x128xbf16>,
    return
  }
  func.func @transform_0(%arg0: i32) -> (i32, i32) {
    %c0_i32 = arith.constant 0 : i32
    %c0_i32_0 = arith.constant 0 : i32
    return %arg0, %c0_i32 : i32, i32
  }
  func.func @transform_1(%arg0: i32) -> (i32, i32) {
    %c0_i32 = arith.constant 0 : i32
    %c0_i32_0 = arith.constant 0 : i32
    %c0_i32_1 = arith.constant 0 : i32
    return %c0_i32, %c0_i32_0 : i32, i32
  }
  func.func @transform_2(%arg0: i32) -> (i32, i32) {
    %c0_i32 = arith.constant 0 : i32
    %c0_i32_0 = arith.constant 0 : i32
    %c0_i32_1 = arith.constant 0 : i32
    return %c0_i32, %c0_i32_0 : i32, i32
  }
  func.func @transform_3(%arg0: i32) -> (i32, i32) {
    %c0_i32 = arith.constant 0 : i32
    %c0_i32_0 = arith.constant 0 : i32
    %c0_i32_1 = arith.constant 0 : i32
    return %c0_i32, %c0_i32_0 : i32, i32
  }
  func.func @transform_4(%arg0: i32) -> (i32, i32) {
    %c0_i32 = arith.constant 0 : i32
    %c0_i32_0 = arith.constant 0 : i32
    %c0_i32_1 = arith.constant 0 : i32
    return %c0_i32, %c0_i32_0 : i32, i32
  }
  func.func @transform_5(%arg0: i32) -> (i32, i32) {
    %c0_i32 = arith.constant 0 : i32
    %c0_i32_0 = arith.constant 0 : i32
    %c0_i32_1 = arith.constant 0 : i32
    return %c0_i32, %c0_i32_0 : i32, i32
  }
  func.func @transform_6(%arg0: i32) -> (i32, i32) {
    %c0_i32 = arith.constant 0 : i32
    %c0_i32_0 = arith.constant 0 : i32
    %c0_i32_1 = arith.constant 0 : i32
    return %c0_i32, %c0_i32_0 : i32, i32
  }
  func.func @transform_7(%arg0: i32) -> (i32, i32) {
    %c0_i32 = arith.constant 0 : i32
    %c0_i32_0 = arith.constant 0 : i32
    return %arg0, %c0_i32 : i32, i32
  }
  func.func @transform_8(%arg0: i32) -> (i32, i32) {
    %c0_i32 = arith.constant 0 : i32
    %c0_i32_0 = arith.constant 0 : i32
    return %arg0, %c0_i32 : i32, i32
  }
}

module attributes {stable_mosaic.version = 11 : i64} {
  func.func @_attention_kernel(%arg0: i32, %arg1: i32, %arg2: memref<1x16x64xbf16, #tpu.memory_space<vmem>>, %arg3: memref<1x16x128xbf16, #tpu.memory_space<vmem>>, %arg4: memref<1x16x64xbf16, #tpu.memory_space<vmem>>) attributes {dimension_semantics = [#tpu.dimension_semantics<parallel>, #tpu.dimension_semantics<parallel>], iteration_bounds = array<i64: 2, 1>, scalar_prefetch = 0 : i64, scratch_operands = 0 : i64, tpu.core_type = #tpu.core_type<tc>, window_params = [{transform_indices = @transform_0, window_bounds = array<i64: 1, 16, 64>}, {transform_indices = @transform_1, window_bounds = array<i64: 1, 16, 128>}, {transform_indices = @transform_2, window_bounds = array<i64: 1, 16, 64>}]} {
    %c0 = arith.constant 0 : index
    %c0_0 = arith.constant 0 : index
    %c0_1 = arith.constant 0 : index
    %0 = vector.load %arg2[%c0, %c0_0, %c0_1] : memref<1x16x64xbf16, #tpu.memory_space<vmem>>, vector<1x16x64xbf16>
    %1 = vector.shape_cast %0 : vector<1x16x64xbf16> to vector<16x64xbf16>
    %c0_2 = arith.constant 0 : index
    %c0_3 = arith.constant 0 : index
    %c0_4 = arith.constant 0 : index
    %2 = vector.load %arg3[%c0_2, %c0_3, %c0_4] : memref<1x16x128xbf16, #tpu.memory_space<vmem>>, vector<1x16x128xbf16>
    %3 = vector.shape_cast %2 : vector<1x16x128xbf16> to vector<16x128xbf16>
    %4 = vector.extract_strided_slice %1 {offsets = [0, 0], sizes = [16, 16], strides = [1, 1]} : vector<16x64xbf16> to vector<16x16xbf16>
    %5 = vector.extract_strided_slice %3 {offsets = [0, 0], sizes = [16, 16], strides = [1, 1]} : vector<16x128xbf16> to vector<16x16xbf16>
    %6 = vector.extract_strided_slice %3 {offsets = [0, 64], sizes = [16, 16], strides = [1, 1]} : vector<16x128xbf16> to vector<16x16xbf16>
    %cst = arith.constant dense<0.000000e+00> : vector<16x16xf32>
    %7 = tpu.matmul %4, %5, %cst {dimension_numbers = #tpu.dot_dimension_numbers<[1], [1], [0], [0], [0, 0, 1, 0], [], []>} : vector<16x16xbf16>, vector<16x16xbf16>, vector<16x16xf32> -> vector<16x16xf32>
    %cst_5 = arith.constant 2.500000e-01 : f32
    %8 = vector.broadcast %cst_5 : f32 to vector<16x16xf32>
    %9 = arith.mulf %7, %8 : vector<16x16xf32>
    %cst_6 = arith.constant dense<0xFF800000> : vector<16xf32>
    %10 = vector.multi_reduction <maximumf>, %9, %cst_6 [1] : vector<16x16xf32> to vector<16xf32>
    %11 = vector.shape_cast %10 : vector<16xf32> to vector<16x1xf32>
    %12 = vector.broadcast %11 : vector<16x1xf32> to vector<16x16xf32>
    %13 = arith.subf %9, %12 : vector<16x16xf32>
    %14 = math.exp %13 : vector<16x16xf32>
    %cst_7 = arith.constant dense<0.000000e+00> : vector<16xf32>
    %15 = vector.multi_reduction <add>, %14, %cst_7 [1] : vector<16x16xf32> to vector<16xf32>
    %16 = vector.shape_cast %15 : vector<16xf32> to vector<16x1xf32>
    %17 = tpu.reciprocal %16 {approx = true} : vector<16x1xf32> -> vector<16x1xf32>
    %18 = vector.broadcast %17 : vector<16x1xf32> to vector<16x16xf32>
    %19 = arith.mulf %14, %18 : vector<16x16xf32>
    %20 = arith.truncf %19 : vector<16x16xf32> to vector<16x16xbf16>
    %cst_8 = arith.constant dense<0.000000e+00> : vector<16x16xf32>
    %21 = tpu.matmul %20, %6, %cst_8 {dimension_numbers = #tpu.dot_dimension_numbers<[1], [0], [0], [1], [0, 0, 1, 1], [], []>} : vector<16x16xbf16>, vector<16x16xbf16>, vector<16x16xf32> -> vector<16x16xf32>
    %22 = vector.extract_strided_slice %1 {offsets = [0, 16], sizes = [16, 16], strides = [1, 1]} : vector<16x64xbf16> to vector<16x16xbf16>
    %23 = vector.extract_strided_slice %3 {offsets = [0, 16], sizes = [16, 16], strides = [1, 1]} : vector<16x128xbf16> to vector<16x16xbf16>
    %24 = vector.extract_strided_slice %3 {offsets = [0, 80], sizes = [16, 16], strides = [1, 1]} : vector<16x128xbf16> to vector<16x16xbf16>
    %cst_9 = arith.constant dense<0.000000e+00> : vector<16x16xf32>
    %25 = tpu.matmul %22, %23, %cst_9 {dimension_numbers = #tpu.dot_dimension_numbers<[1], [1], [0], [0], [0, 0, 1, 0], [], []>} : vector<16x16xbf16>, vector<16x16xbf16>, vector<16x16xf32> -> vector<16x16xf32>
    %cst_10 = arith.constant 2.500000e-01 : f32
    %26 = vector.broadcast %cst_10 : f32 to vector<16x16xf32>
    %27 = arith.mulf %25, %26 : vector<16x16xf32>
    %cst_11 = arith.constant dense<0xFF800000> : vector<16xf32>
    %28 = vector.multi_reduction <maximumf>, %27, %cst_11 [1] : vector<16x16xf32> to vector<16xf32>
    %29 = vector.shape_cast %28 : vector<16xf32> to vector<16x1xf32>
    %30 = vector.broadcast %29 : vector<16x1xf32> to vector<16x16xf32>
    %31 = arith.subf %27, %30 : vector<16x16xf32>
    %32 = math.exp %31 : vector<16x16xf32>
    %cst_12 = arith.constant dense<0.000000e+00> : vector<16xf32>
    %33 = vector.multi_reduction <add>, %32, %cst_12 [1] : vector<16x16xf32> to vector<16xf32>
    %34 = vector.shape_cast %33 : vector<16xf32> to vector<16x1xf32>
    %35 = tpu.reciprocal %34 {approx = true} : vector<16x1xf32> -> vector<16x1xf32>
    %36 = vector.broadcast %35 : vector<16x1xf32> to vector<16x16xf32>
    %37 = arith.mulf %32, %36 : vector<16x16xf32>
    %38 = arith.truncf %37 : vector<16x16xf32> to vector<16x16xbf16>
    %cst_13 = arith.constant dense<0.000000e+00> : vector<16x16xf32>
    %39 = tpu.matmul %38, %24, %cst_13 {dimension_numbers = #tpu.dot_dimension_numbers<[1], [0], [0], [1], [0, 0, 1, 1], [], []>} : vector<16x16xbf16>, vector<16x16xbf16>, vector<16x16xf32> -> vector<16x16xf32>
    %40 = vector.extract_strided_slice %1 {offsets = [0, 32], sizes = [16, 16], strides = [1, 1]} : vector<16x64xbf16> to vector<16x16xbf16>
    %41 = vector.extract_strided_slice %3 {offsets = [0, 32], sizes = [16, 16], strides = [1, 1]} : vector<16x128xbf16> to vector<16x16xbf16>
    %42 = vector.extract_strided_slice %3 {offsets = [0, 96], sizes = [16, 16], strides = [1, 1]} : vector<16x128xbf16> to vector<16x16xbf16>
    %cst_14 = arith.constant dense<0.000000e+00> : vector<16x16xf32>
    %43 = tpu.matmul %40, %41, %cst_14 {dimension_numbers = #tpu.dot_dimension_numbers<[1], [1], [0], [0], [0, 0, 1, 0], [], []>} : vector<16x16xbf16>, vector<16x16xbf16>, vector<16x16xf32> -> vector<16x16xf32>
    %cst_15 = arith.constant 2.500000e-01 : f32
    %44 = vector.broadcast %cst_15 : f32 to vector<16x16xf32>
    %45 = arith.mulf %43, %44 : vector<16x16xf32>
    %cst_16 = arith.constant dense<0xFF800000> : vector<16xf32>
    %46 = vector.multi_reduction <maximumf>, %45, %cst_16 [1] : vector<16x16xf32> to vector<16xf32>
    %47 = vector.shape_cast %46 : vector<16xf32> to vector<16x1xf32>
    %48 = vector.broadcast %47 : vector<16x1xf32> to vector<16x16xf32>
    %49 = arith.subf %45, %48 : vector<16x16xf32>
    %50 = math.exp %49 : vector<16x16xf32>
    %cst_17 = arith.constant dense<0.000000e+00> : vector<16xf32>
    %51 = vector.multi_reduction <add>, %50, %cst_17 [1] : vector<16x16xf32> to vector<16xf32>
    %52 = vector.shape_cast %51 : vector<16xf32> to vector<16x1xf32>
    %53 = tpu.reciprocal %52 {approx = true} : vector<16x1xf32> -> vector<16x1xf32>
    %54 = vector.broadcast %53 : vector<16x1xf32> to vector<16x16xf32>
    %55 = arith.mulf %50, %54 : vector<16x16xf32>
    %56 = arith.truncf %55 : vector<16x16xf32> to vector<16x16xbf16>
    %cst_18 = arith.constant dense<0.000000e+00> : vector<16x16xf32>
    %57 = tpu.matmul %56, %42, %cst_18 {dimension_numbers = #tpu.dot_dimension_numbers<[1], [0], [0], [1], [0, 0, 1, 1], [], []>} : vector<16x16xbf16>, vector<16x16xbf16>, vector<16x16xf32> -> vector<16x16xf32>
    %58 = vector.extract_strided_slice %1 {offsets = [0, 48], sizes = [16, 16], strides = [1, 1]} : vector<16x64xbf16> to vector<16x16xbf16>
    %59 = vector.extract_strided_slice %3 {offsets = [0, 48], sizes = [16, 16], strides = [1, 1]} : vector<16x128xbf16> to vector<16x16xbf16>
    %60 = vector.extract_strided_slice %3 {offsets = [0, 112], sizes = [16, 16], strides = [1, 1]} : vector<16x128xbf16> to vector<16x16xbf16>
    %cst_19 = arith.constant dense<0.000000e+00> : vector<16x16xf32>
    %61 = tpu.matmul %58, %59, %cst_19 {dimension_numbers = #tpu.dot_dimension_numbers<[1], [1], [0], [0], [0, 0, 1, 0], [], []>} : vector<16x16xbf16>, vector<16x16xbf16>, vector<16x16xf32> -> vector<16x16xf32>
    %cst_20 = arith.constant 2.500000e-01 : f32
    %62 = vector.broadcast %cst_20 : f32 to vector<16x16xf32>
    %63 = arith.mulf %61, %62 : vector<16x16xf32>
    %cst_21 = arith.constant dense<0xFF800000> : vector<16xf32>
    %64 = vector.multi_reduction <maximumf>, %63, %cst_21 [1] : vector<16x16xf32> to vector<16xf32>
    %65 = vector.shape_cast %64 : vector<16xf32> to vector<16x1xf32>
    %66 = vector.broadcast %65 : vector<16x1xf32> to vector<16x16xf32>
    %67 = arith.subf %63, %66 : vector<16x16xf32>
    %68 = math.exp %67 : vector<16x16xf32>
    %cst_22 = arith.constant dense<0.000000e+00> : vector<16xf32>
    %69 = vector.multi_reduction <add>, %68, %cst_22 [1] : vector<16x16xf32> to vector<16xf32>
    %70 = vector.shape_cast %69 : vector<16xf32> to vector<16x1xf32>
    %71 = tpu.reciprocal %70 {approx = true} : vector<16x1xf32> -> vector<16x1xf32>
    %72 = vector.broadcast %71 : vector<16x1xf32> to vector<16x16xf32>
    %73 = arith.mulf %68, %72 : vector<16x16xf32>
    %74 = arith.truncf %73 : vector<16x16xf32> to vector<16x16xbf16>
    %cst_23 = arith.constant dense<0.000000e+00> : vector<16x16xf32>
    %75 = tpu.matmul %74, %60, %cst_23 {dimension_numbers = #tpu.dot_dimension_numbers<[1], [0], [0], [1], [0, 0, 1, 1], [], []>} : vector<16x16xbf16>, vector<16x16xbf16>, vector<16x16xf32> -> vector<16x16xf32>
    %76 = tpu.concatenate %21, %39, %57, %75 in 1 : vector<16x16xf32>, vector<16x16xf32>, vector<16x16xf32>, vector<16x16xf32> -> vector<16x64xf32>
    %77 = arith.truncf %76 : vector<16x64xf32> to vector<16x64xbf16>
    %c0_24 = arith.constant 0 : index
    %c0_25 = arith.constant 0 : index
    %c0_26 = arith.constant 0 : index
    %78 = vector.load %arg4[%c0_24, %c0_25, %c0_26] : memref<1x16x64xbf16, #tpu.memory_space<vmem>>, vector<1x16x64xbf16>
    %79 = vector.shape_cast %78 : vector<1x16x64xbf16> to vector<16x64xbf16>
    %80 = vector.shape_cast %77 : vector<16x64xbf16> to vector<1x16x64xbf16>
    tpu.vector_store %arg4[%c0_24, %c0_25, %c0_26], %80 {strides = array<i32>} : memref<1x16x64xbf16, #tpu.memory_space<vmem>>, vector<1x16x64xbf16>,
    return
  }
  func.func @transform_0(%arg0: i32, %arg1: i32) -> (i32, i32, i32) {
    %c0_i32 = arith.constant 0 : i32
    %c0_i32_0 = arith.constant 0 : i32
    return %arg0, %arg1, %c0_i32 : i32, i32, i32
  }
  func.func @transform_1(%arg0: i32, %arg1: i32) -> (i32, i32, i32) {
    %c0_i32 = arith.constant 0 : i32
    %c0_i32_0 = arith.constant 0 : i32
    %c0_i32_1 = arith.constant 0 : i32
    return %arg0, %c0_i32, %c0_i32_0 : i32, i32, i32
  }
  func.func @transform_2(%arg0: i32, %arg1: i32) -> (i32, i32, i32) {
    %c0_i32 = arith.constant 0 : i32
    %c0_i32_0 = arith.constant 0 : i32
    return %arg0, %arg1, %c0_i32 : i32, i32, i32
  }
}

module attributes {stable_mosaic.version = 11 : i64} {
  func.func @_outproj_residual_kernel(%arg0: i32, %arg1: memref<32x64xbf16, #tpu.memory_space<vmem>>, %arg2: memref<64x64xbf16, #tpu.memory_space<vmem>>, %arg3: memref<1x64xf32, #tpu.memory_space<vmem>>, %arg4: memref<32x64xf32, #tpu.memory_space<vmem>>, %arg5: memref<32x64xf32, #tpu.memory_space<vmem>>) attributes {dimension_semantics = [#tpu.dimension_semantics<parallel>], iteration_bounds = array<i64: 1>, scalar_prefetch = 0 : i64, scratch_operands = 0 : i64, tpu.core_type = #tpu.core_type<tc>, window_params = [{transform_indices = @transform_0, window_bounds = array<i64: 32, 64>}, {pipeline_mode = #tpu.pipeline_mode<synchronous>, transform_indices = @transform_1, window_bounds = array<i64: 64, 64>}, {pipeline_mode = #tpu.pipeline_mode<synchronous>, transform_indices = @transform_2, window_bounds = array<i64: 1, 64>}, {transform_indices = @transform_3, window_bounds = array<i64: 32, 64>}, {transform_indices = @transform_4, window_bounds = array<i64: 32, 64>}]} {
    %c0 = arith.constant 0 : index
    %c0_0 = arith.constant 0 : index
    %0 = vector.load %arg1[%c0, %c0_0] : memref<32x64xbf16, #tpu.memory_space<vmem>>, vector<32x64xbf16>
    %c0_1 = arith.constant 0 : index
    %c0_2 = arith.constant 0 : index
    %1 = vector.load %arg2[%c0_1, %c0_2] : memref<64x64xbf16, #tpu.memory_space<vmem>>, vector<64x64xbf16>
    %cst = arith.constant dense<0.000000e+00> : vector<32x64xf32>
    %2 = tpu.matmul %0, %1, %cst {dimension_numbers = #tpu.dot_dimension_numbers<[1], [0], [0], [1], [0, 0, 1, 1], [], []>} : vector<32x64xbf16>, vector<64x64xbf16>, vector<32x64xf32> -> vector<32x64xf32>
    %c0_3 = arith.constant 0 : index
    %c0_4 = arith.constant 0 : index
    %3 = vector.load %arg3[%c0_3, %c0_4] : memref<1x64xf32, #tpu.memory_space<vmem>>, vector<1x64xf32>
    %4 = vector.broadcast %3 : vector<1x64xf32> to vector<32x64xf32>
    %5 = arith.addf %2, %4 : vector<32x64xf32>
    %c0_5 = arith.constant 0 : index
    %c0_6 = arith.constant 0 : index
    %6 = vector.load %arg4[%c0_5, %c0_6] : memref<32x64xf32, #tpu.memory_space<vmem>>, vector<32x64xf32>
    %7 = arith.addf %6, %5 : vector<32x64xf32>
    %c0_7 = arith.constant 0 : index
    %c0_8 = arith.constant 0 : index
    %8 = vector.load %arg5[%c0_7, %c0_8] : memref<32x64xf32, #tpu.memory_space<vmem>>, vector<32x64xf32>
    tpu.vector_store %arg5[%c0_7, %c0_8], %7 {strides = array<i32>} : memref<32x64xf32, #tpu.memory_space<vmem>>, vector<32x64xf32>,
    return
  }
  func.func @transform_0(%arg0: i32) -> (i32, i32) {
    %c0_i32 = arith.constant 0 : i32
    %c0_i32_0 = arith.constant 0 : i32
    return %arg0, %c0_i32 : i32, i32
  }
  func.func @transform_1(%arg0: i32) -> (i32, i32) {
    %c0_i32 = arith.constant 0 : i32
    %c0_i32_0 = arith.constant 0 : i32
    %c0_i32_1 = arith.constant 0 : i32
    return %c0_i32, %c0_i32_0 : i32, i32
  }
  func.func @transform_2(%arg0: i32) -> (i32, i32) {
    %c0_i32 = arith.constant 0 : i32
    %c0_i32_0 = arith.constant 0 : i32
    %c0_i32_1 = arith.constant 0 : i32
    return %c0_i32, %c0_i32_0 : i32, i32
  }
  func.func @transform_3(%arg0: i32) -> (i32, i32) {
    %c0_i32 = arith.constant 0 : i32
    %c0_i32_0 = arith.constant 0 : i32
    return %arg0, %c0_i32 : i32, i32
  }
  func.func @transform_4(%arg0: i32) -> (i32, i32) {
    %c0_i32 = arith.constant 0 : i32
    %c0_i32_0 = arith.constant 0 : i32
    return %arg0, %c0_i32 : i32, i32
  }
}

module attributes {stable_mosaic.version = 11 : i64} {
  func.func @_layernorm_kernel(%arg0: i32, %arg1: memref<32x64xf32, #tpu.memory_space<vmem>>, %arg2: memref<1x64xf32, #tpu.memory_space<vmem>>, %arg3: memref<1x64xf32, #tpu.memory_space<vmem>>, %arg4: memref<32x64xf32, #tpu.memory_space<vmem>>) attributes {dimension_semantics = [#tpu.dimension_semantics<parallel>], iteration_bounds = array<i64: 1>, scalar_prefetch = 0 : i64, scratch_operands = 0 : i64, tpu.core_type = #tpu.core_type<tc>, window_params = [{transform_indices = @transform_0, window_bounds = array<i64: 32, 64>}, {pipeline_mode = #tpu.pipeline_mode<synchronous>, transform_indices = @transform_1, window_bounds = array<i64: 1, 64>}, {pipeline_mode = #tpu.pipeline_mode<synchronous>, transform_indices = @transform_2, window_bounds = array<i64: 1, 64>}, {transform_indices = @transform_3, window_bounds = array<i64: 32, 64>}]} {
    %c0 = arith.constant 0 : index
    %c0_0 = arith.constant 0 : index
    %0 = vector.load %arg1[%c0, %c0_0] : memref<32x64xf32, #tpu.memory_space<vmem>>, vector<32x64xf32>
    %c0_1 = arith.constant 0 : index
    %c0_2 = arith.constant 0 : index
    %1 = vector.load %arg2[%c0_1, %c0_2] : memref<1x64xf32, #tpu.memory_space<vmem>>, vector<1x64xf32>
    %c0_3 = arith.constant 0 : index
    %c0_4 = arith.constant 0 : index
    %2 = vector.load %arg3[%c0_3, %c0_4] : memref<1x64xf32, #tpu.memory_space<vmem>>, vector<1x64xf32>
    %cst = arith.constant dense<0.000000e+00> : vector<32xf32>
    %3 = vector.multi_reduction <add>, %0, %cst [1] : vector<32x64xf32> to vector<32xf32>
    %4 = vector.shape_cast %3 : vector<32xf32> to vector<32x1xf32>
    %cst_5 = arith.constant 6.400000e+01 : f32
    %5 = vector.broadcast %cst_5 : f32 to vector<32x1xf32>
    %6 = arith.divf %4, %5 : vector<32x1xf32>
    %7 = vector.broadcast %6 : vector<32x1xf32> to vector<32x64xf32>
    %8 = arith.subf %0, %7 : vector<32x64xf32>
    %9 = arith.mulf %8, %8 : vector<32x64xf32>
    %cst_6 = arith.constant dense<0.000000e+00> : vector<32xf32>
    %10 = vector.multi_reduction <add>, %9, %cst_6 [1] : vector<32x64xf32> to vector<32xf32>
    %11 = vector.shape_cast %10 : vector<32xf32> to vector<32x1xf32>
    %cst_7 = arith.constant 0.0158730168 : f32
    %12 = vector.broadcast %cst_7 : f32 to vector<32x1xf32>
    %13 = arith.mulf %11, %12 : vector<32x1xf32>
    %14 = math.sqrt %13 : vector<32x1xf32>
    %15 = vector.broadcast %1 : vector<1x64xf32> to vector<32x64xf32>
    %16 = arith.mulf %15, %8 : vector<32x64xf32>
    %cst_8 = arith.constant 9.99999997E-7 : f32
    %17 = vector.broadcast %cst_8 : f32 to vector<32x1xf32>
    %18 = arith.addf %14, %17 : vector<32x1xf32>
    %19 = tpu.reciprocal %18 {approx = true} : vector<32x1xf32> -> vector<32x1xf32>
    %20 = vector.broadcast %19 : vector<32x1xf32> to vector<32x64xf32>
    %21 = arith.mulf %16, %20 : vector<32x64xf32>
    %22 = vector.broadcast %2 : vector<1x64xf32> to vector<32x64xf32>
    %23 = arith.addf %21, %22 : vector<32x64xf32>
    %c0_9 = arith.constant 0 : index
    %c0_10 = arith.constant 0 : index
    %24 = vector.load %arg4[%c0_9, %c0_10] : memref<32x64xf32, #tpu.memory_space<vmem>>, vector<32x64xf32>
    tpu.vector_store %arg4[%c0_9, %c0_10], %23 {strides = array<i32>} : memref<32x64xf32, #tpu.memory_space<vmem>>, vector<32x64xf32>,
    return
  }
  func.func @transform_0(%arg0: i32) -> (i32, i32) {
    %c0_i32 = arith.constant 0 : i32
    %c0_i32_0 = arith.constant 0 : i32
    return %arg0, %c0_i32 : i32, i32
  }
  func.func @transform_1(%arg0: i32) -> (i32, i32) {
    %c0_i32 = arith.constant 0 : i32
    %c0_i32_0 = arith.constant 0 : i32
    %c0_i32_1 = arith.constant 0 : i32
    return %c0_i32, %c0_i32_0 : i32, i32
  }
  func.func @transform_2(%arg0: i32) -> (i32, i32) {
    %c0_i32 = arith.constant 0 : i32
    %c0_i32_0 = arith.constant 0 : i32
    %c0_i32_1 = arith.constant 0 : i32
    return %c0_i32, %c0_i32_0 : i32, i32
  }
  func.func @transform_3(%arg0: i32) -> (i32, i32) {
    %c0_i32 = arith.constant 0 : i32
    %c0_i32_0 = arith.constant 0 : i32
    return %arg0, %c0_i32 : i32, i32
  }
}

module attributes {stable_mosaic.version = 11 : i64} {
  func.func @_ff_residual_kernel(%arg0: i32, %arg1: memref<32x64xf32, #tpu.memory_space<vmem>>, %arg2: memref<1x64xf32, #tpu.memory_space<vmem>>, %arg3: memref<1x64xf32, #tpu.memory_space<vmem>>, %arg4: memref<64x128xbf16, #tpu.memory_space<vmem>>, %arg5: memref<1x128xf32, #tpu.memory_space<vmem>>, %arg6: memref<128x64xbf16, #tpu.memory_space<vmem>>, %arg7: memref<1x64xf32, #tpu.memory_space<vmem>>, %arg8: memref<32x64xf32, #tpu.memory_space<vmem>>) attributes {dimension_semantics = [#tpu.dimension_semantics<parallel>], iteration_bounds = array<i64: 1>, scalar_prefetch = 0 : i64, scratch_operands = 0 : i64, tpu.core_type = #tpu.core_type<tc>, window_params = [{transform_indices = @transform_0, window_bounds = array<i64: 32, 64>}, {pipeline_mode = #tpu.pipeline_mode<synchronous>, transform_indices = @transform_1, window_bounds = array<i64: 1, 64>}, {pipeline_mode = #tpu.pipeline_mode<synchronous>, transform_indices = @transform_2, window_bounds = array<i64: 1, 64>}, {pipeline_mode = #tpu.pipeline_mode<synchronous>, transform_indices = @transform_3, window_bounds = array<i64: 64, 128>}, {pipeline_mode = #tpu.pipeline_mode<synchronous>, transform_indices = @transform_4, window_bounds = array<i64: 1, 128>}, {pipeline_mode = #tpu.pipeline_mode<synchronous>, transform_indices = @transform_5, window_bounds = array<i64: 128, 64>}, {pipeline_mode = #tpu.pipeline_mode<synchronous>, transform_indices = @transform_6, window_bounds = array<i64: 1, 64>}, {transform_indices = @transform_7, window_bounds = array<i64: 32, 64>}]} {
    %c0 = arith.constant 0 : index
    %c0_0 = arith.constant 0 : index
    %0 = vector.load %arg1[%c0, %c0_0] : memref<32x64xf32, #tpu.memory_space<vmem>>, vector<32x64xf32>
    %c0_1 = arith.constant 0 : index
    %c0_2 = arith.constant 0 : index
    %1 = vector.load %arg2[%c0_1, %c0_2] : memref<1x64xf32, #tpu.memory_space<vmem>>, vector<1x64xf32>
    %c0_3 = arith.constant 0 : index
    %c0_4 = arith.constant 0 : index
    %2 = vector.load %arg3[%c0_3, %c0_4] : memref<1x64xf32, #tpu.memory_space<vmem>>, vector<1x64xf32>
    %cst = arith.constant dense<0.000000e+00> : vector<32xf32>
    %3 = vector.multi_reduction <add>, %0, %cst [1] : vector<32x64xf32> to vector<32xf32>
    %4 = vector.shape_cast %3 : vector<32xf32> to vector<32x1xf32>
    %cst_5 = arith.constant 6.400000e+01 : f32
    %5 = vector.broadcast %cst_5 : f32 to vector<32x1xf32>
    %6 = arith.divf %4, %5 : vector<32x1xf32>
    %7 = vector.broadcast %6 : vector<32x1xf32> to vector<32x64xf32>
    %8 = arith.subf %0, %7 : vector<32x64xf32>
    %9 = arith.mulf %8, %8 : vector<32x64xf32>
    %cst_6 = arith.constant dense<0.000000e+00> : vector<32xf32>
    %10 = vector.multi_reduction <add>, %9, %cst_6 [1] : vector<32x64xf32> to vector<32xf32>
    %11 = vector.shape_cast %10 : vector<32xf32> to vector<32x1xf32>
    %cst_7 = arith.constant 0.0158730168 : f32
    %12 = vector.broadcast %cst_7 : f32 to vector<32x1xf32>
    %13 = arith.mulf %11, %12 : vector<32x1xf32>
    %14 = math.sqrt %13 : vector<32x1xf32>
    %15 = vector.broadcast %1 : vector<1x64xf32> to vector<32x64xf32>
    %16 = arith.mulf %15, %8 : vector<32x64xf32>
    %cst_8 = arith.constant 9.99999997E-7 : f32
    %17 = vector.broadcast %cst_8 : f32 to vector<32x1xf32>
    %18 = arith.addf %14, %17 : vector<32x1xf32>
    %19 = tpu.reciprocal %18 {approx = true} : vector<32x1xf32> -> vector<32x1xf32>
    %20 = vector.broadcast %19 : vector<32x1xf32> to vector<32x64xf32>
    %21 = arith.mulf %16, %20 : vector<32x64xf32>
    %22 = vector.broadcast %2 : vector<1x64xf32> to vector<32x64xf32>
    %23 = arith.addf %21, %22 : vector<32x64xf32>
    %24 = arith.truncf %23 : vector<32x64xf32> to vector<32x64xbf16>
    %c0_9 = arith.constant 0 : index
    %c0_10 = arith.constant 0 : index
    %25 = vector.load %arg4[%c0_9, %c0_10] : memref<64x128xbf16, #tpu.memory_space<vmem>>, vector<64x128xbf16>
    %cst_11 = arith.constant dense<0.000000e+00> : vector<32x128xf32>
    %26 = tpu.matmul %24, %25, %cst_11 {dimension_numbers = #tpu.dot_dimension_numbers<[1], [0], [0], [1], [0, 0, 1, 1], [], []>} : vector<32x64xbf16>, vector<64x128xbf16>, vector<32x128xf32> -> vector<32x128xf32>
    %c0_12 = arith.constant 0 : index
    %c0_13 = arith.constant 0 : index
    %27 = vector.load %arg5[%c0_12, %c0_13] : memref<1x128xf32, #tpu.memory_space<vmem>>, vector<1x128xf32>
    %28 = vector.broadcast %27 : vector<1x128xf32> to vector<32x128xf32>
    %29 = arith.addf %26, %28 : vector<32x128xf32>
    %cst_14 = arith.constant 0.000000e+00 : f32
    %30 = vector.broadcast %cst_14 : f32 to vector<32x128xf32>
    %31 = arith.maximumf %29, %30 : vector<32x128xf32>
    %32 = arith.truncf %31 : vector<32x128xf32> to vector<32x128xbf16>
    %c0_15 = arith.constant 0 : index
    %c0_16 = arith.constant 0 : index
    %33 = vector.load %arg6[%c0_15, %c0_16] : memref<128x64xbf16, #tpu.memory_space<vmem>>, vector<128x64xbf16>
    %cst_17 = arith.constant dense<0.000000e+00> : vector<32x64xf32>
    %34 = tpu.matmul %32, %33, %cst_17 {dimension_numbers = #tpu.dot_dimension_numbers<[1], [0], [0], [1], [0, 0, 1, 1], [], []>} : vector<32x128xbf16>, vector<128x64xbf16>, vector<32x64xf32> -> vector<32x64xf32>
    %c0_18 = arith.constant 0 : index
    %c0_19 = arith.constant 0 : index
    %35 = vector.load %arg7[%c0_18, %c0_19] : memref<1x64xf32, #tpu.memory_space<vmem>>, vector<1x64xf32>
    %36 = vector.broadcast %35 : vector<1x64xf32> to vector<32x64xf32>
    %37 = arith.addf %34, %36 : vector<32x64xf32>
    %38 = arith.addf %0, %37 : vector<32x64xf32>
    %c0_20 = arith.constant 0 : index
    %c0_21 = arith.constant 0 : index
    %39 = vector.load %arg8[%c0_20, %c0_21] : memref<32x64xf32, #tpu.memory_space<vmem>>, vector<32x64xf32>
    tpu.vector_store %arg8[%c0_20, %c0_21], %38 {strides = array<i32>} : memref<32x64xf32, #tpu.memory_space<vmem>>, vector<32x64xf32>,
    return
  }
  func.func @transform_0(%arg0: i32) -> (i32, i32) {
    %c0_i32 = arith.constant 0 : i32
    %c0_i32_0 = arith.constant 0 : i32
    return %arg0, %c0_i32 : i32, i32
  }
  func.func @transform_1(%arg0: i32) -> (i32, i32) {
    %c0_i32 = arith.constant 0 : i32
    %c0_i32_0 = arith.constant 0 : i32
    %c0_i32_1 = arith.constant 0 : i32
    return %c0_i32, %c0_i32_0 : i32, i32
  }
  func.func @transform_2(%arg0: i32) -> (i32, i32) {
    %c0_i32 = arith.constant 0 : i32
    %c0_i32_0 = arith.constant 0 : i32
    %c0_i32_1 = arith.constant 0 : i32
    return %c0_i32, %c0_i32_0 : i32, i32
  }
  func.func @transform_3(%arg0: i32) -> (i32, i32) {
    %c0_i32 = arith.constant 0 : i32
    %c0_i32_0 = arith.constant 0 : i32
    %c0_i32_1 = arith.constant 0 : i32
    return %c0_i32, %c0_i32_0 : i32, i32
  }
  func.func @transform_4(%arg0: i32) -> (i32, i32) {
    %c0_i32 = arith.constant 0 : i32
    %c0_i32_0 = arith.constant 0 : i32
    %c0_i32_1 = arith.constant 0 : i32
    return %c0_i32, %c0_i32_0 : i32, i32
  }
  func.func @transform_5(%arg0: i32) -> (i32, i32) {
    %c0_i32 = arith.constant 0 : i32
    %c0_i32_0 = arith.constant 0 : i32
    %c0_i32_1 = arith.constant 0 : i32
    return %c0_i32, %c0_i32_0 : i32, i32
  }
  func.func @transform_6(%arg0: i32) -> (i32, i32) {
    %c0_i32 = arith.constant 0 : i32
    %c0_i32_0 = arith.constant 0 : i32
    %c0_i32_1 = arith.constant 0 : i32
    return %c0_i32, %c0_i32_0 : i32, i32
  }
  func.func @transform_7(%arg0: i32) -> (i32, i32) {
    %c0_i32 = arith.constant 0 : i32
    %c0_i32_0 = arith.constant 0 : i32
    return %arg0, %c0_i32 : i32, i32
  }
}

module attributes {stable_mosaic.version = 11 : i64} {
  func.func @_linear_kernel(%arg0: i32, %arg1: memref<32x64xf32, #tpu.memory_space<vmem>>, %arg2: memref<64x128xbf16, #tpu.memory_space<vmem>>, %arg3: memref<1x128xf32, #tpu.memory_space<vmem>>, %arg4: memref<32x128xbf16, #tpu.memory_space<vmem>>) attributes {dimension_semantics = [#tpu.dimension_semantics<parallel>], iteration_bounds = array<i64: 1>, scalar_prefetch = 0 : i64, scratch_operands = 0 : i64, tpu.core_type = #tpu.core_type<tc>, window_params = [{transform_indices = @transform_0, window_bounds = array<i64: 32, 64>}, {pipeline_mode = #tpu.pipeline_mode<synchronous>, transform_indices = @transform_1, window_bounds = array<i64: 64, 128>}, {pipeline_mode = #tpu.pipeline_mode<synchronous>, transform_indices = @transform_2, window_bounds = array<i64: 1, 128>}, {transform_indices = @transform_3, window_bounds = array<i64: 32, 128>}]} {
    %c0 = arith.constant 0 : index
    %c0_0 = arith.constant 0 : index
    %0 = vector.load %arg1[%c0, %c0_0] : memref<32x64xf32, #tpu.memory_space<vmem>>, vector<32x64xf32>
    %1 = arith.truncf %0 : vector<32x64xf32> to vector<32x64xbf16>
    %c0_1 = arith.constant 0 : index
    %c0_2 = arith.constant 0 : index
    %2 = vector.load %arg2[%c0_1, %c0_2] : memref<64x128xbf16, #tpu.memory_space<vmem>>, vector<64x128xbf16>
    %cst = arith.constant dense<0.000000e+00> : vector<32x128xf32>
    %3 = tpu.matmul %1, %2, %cst {dimension_numbers = #tpu.dot_dimension_numbers<[1], [0], [0], [1], [0, 0, 1, 1], [], []>} : vector<32x64xbf16>, vector<64x128xbf16>, vector<32x128xf32> -> vector<32x128xf32>
    %c0_3 = arith.constant 0 : index
    %c0_4 = arith.constant 0 : index
    %4 = vector.load %arg3[%c0_3, %c0_4] : memref<1x128xf32, #tpu.memory_space<vmem>>, vector<1x128xf32>
    %5 = vector.broadcast %4 : vector<1x128xf32> to vector<32x128xf32>
    %6 = arith.addf %3, %5 : vector<32x128xf32>
    %7 = arith.truncf %6 : vector<32x128xf32> to vector<32x128xbf16>
    %c0_5 = arith.constant 0 : index
    %c0_6 = arith.constant 0 : index
    %8 = vector.load %arg4[%c0_5, %c0_6] : memref<32x128xbf16, #tpu.memory_space<vmem>>, vector<32x128xbf16>
    tpu.vector_store %arg4[%c0_5, %c0_6], %7 {strides = array<i32>} : memref<32x128xbf16, #tpu.memory_space<vmem>>, vector<32x128xbf16>,
    return
  }
  func.func @transform_0(%arg0: i32) -> (i32, i32) {
    %c0_i32 = arith.constant 0 : i32
    %c0_i32_0 = arith.constant 0 : i32
    return %arg0, %c0_i32 : i32, i32
  }
  func.func @transform_1(%arg0: i32) -> (i32, i32) {
    %c0_i32 = arith.constant 0 : i32
    %c0_i32_0 = arith.constant 0 : i32
    %c0_i32_1 = arith.constant 0 : i32
    return %c0_i32, %c0_i32_0 : i32, i32
  }
  func.func @transform_2(%arg0: i32) -> (i32, i32) {
    %c0_i32 = arith.constant 0 : i32
    %c0_i32_0 = arith.constant 0 : i32
    %c0_i32_1 = arith.constant 0 : i32
    return %c0_i32, %c0_i32_0 : i32, i32
  }
  func.func @transform_3(%arg0: i32) -> (i32, i32) {
    %c0_i32 = arith.constant 0 : i32
    %c0_i32_0 = arith.constant 0 : i32
    return %arg0, %c0_i32 : i32, i32
  }
}

module attributes {stable_mosaic.version = 11 : i64} {
  func.func @_ln_linear_kernel(%arg0: i32, %arg1: memref<32x64xf32, #tpu.memory_space<vmem>>, %arg2: memref<1x64xf32, #tpu.memory_space<vmem>>, %arg3: memref<1x64xf32, #tpu.memory_space<vmem>>, %arg4: memref<64x64xbf16, #tpu.memory_space<vmem>>, %arg5: memref<1x64xf32, #tpu.memory_space<vmem>>, %arg6: memref<32x64xbf16, #tpu.memory_space<vmem>>) attributes {dimension_semantics = [#tpu.dimension_semantics<parallel>], iteration_bounds = array<i64: 1>, scalar_prefetch = 0 : i64, scratch_operands = 0 : i64, tpu.core_type = #tpu.core_type<tc>, window_params = [{transform_indices = @transform_0, window_bounds = array<i64: 32, 64>}, {pipeline_mode = #tpu.pipeline_mode<synchronous>, transform_indices = @transform_1, window_bounds = array<i64: 1, 64>}, {pipeline_mode = #tpu.pipeline_mode<synchronous>, transform_indices = @transform_2, window_bounds = array<i64: 1, 64>}, {pipeline_mode = #tpu.pipeline_mode<synchronous>, transform_indices = @transform_3, window_bounds = array<i64: 64, 64>}, {pipeline_mode = #tpu.pipeline_mode<synchronous>, transform_indices = @transform_4, window_bounds = array<i64: 1, 64>}, {transform_indices = @transform_5, window_bounds = array<i64: 32, 64>}]} {
    %c0 = arith.constant 0 : index
    %c0_0 = arith.constant 0 : index
    %0 = vector.load %arg1[%c0, %c0_0] : memref<32x64xf32, #tpu.memory_space<vmem>>, vector<32x64xf32>
    %c0_1 = arith.constant 0 : index
    %c0_2 = arith.constant 0 : index
    %1 = vector.load %arg2[%c0_1, %c0_2] : memref<1x64xf32, #tpu.memory_space<vmem>>, vector<1x64xf32>
    %c0_3 = arith.constant 0 : index
    %c0_4 = arith.constant 0 : index
    %2 = vector.load %arg3[%c0_3, %c0_4] : memref<1x64xf32, #tpu.memory_space<vmem>>, vector<1x64xf32>
    %cst = arith.constant dense<0.000000e+00> : vector<32xf32>
    %3 = vector.multi_reduction <add>, %0, %cst [1] : vector<32x64xf32> to vector<32xf32>
    %4 = vector.shape_cast %3 : vector<32xf32> to vector<32x1xf32>
    %cst_5 = arith.constant 6.400000e+01 : f32
    %5 = vector.broadcast %cst_5 : f32 to vector<32x1xf32>
    %6 = arith.divf %4, %5 : vector<32x1xf32>
    %7 = vector.broadcast %6 : vector<32x1xf32> to vector<32x64xf32>
    %8 = arith.subf %0, %7 : vector<32x64xf32>
    %9 = arith.mulf %8, %8 : vector<32x64xf32>
    %cst_6 = arith.constant dense<0.000000e+00> : vector<32xf32>
    %10 = vector.multi_reduction <add>, %9, %cst_6 [1] : vector<32x64xf32> to vector<32xf32>
    %11 = vector.shape_cast %10 : vector<32xf32> to vector<32x1xf32>
    %cst_7 = arith.constant 0.0158730168 : f32
    %12 = vector.broadcast %cst_7 : f32 to vector<32x1xf32>
    %13 = arith.mulf %11, %12 : vector<32x1xf32>
    %14 = math.sqrt %13 : vector<32x1xf32>
    %15 = vector.broadcast %1 : vector<1x64xf32> to vector<32x64xf32>
    %16 = arith.mulf %15, %8 : vector<32x64xf32>
    %cst_8 = arith.constant 9.99999997E-7 : f32
    %17 = vector.broadcast %cst_8 : f32 to vector<32x1xf32>
    %18 = arith.addf %14, %17 : vector<32x1xf32>
    %19 = tpu.reciprocal %18 {approx = true} : vector<32x1xf32> -> vector<32x1xf32>
    %20 = vector.broadcast %19 : vector<32x1xf32> to vector<32x64xf32>
    %21 = arith.mulf %16, %20 : vector<32x64xf32>
    %22 = vector.broadcast %2 : vector<1x64xf32> to vector<32x64xf32>
    %23 = arith.addf %21, %22 : vector<32x64xf32>
    %24 = arith.truncf %23 : vector<32x64xf32> to vector<32x64xbf16>
    %c0_9 = arith.constant 0 : index
    %c0_10 = arith.constant 0 : index
    %25 = vector.load %arg4[%c0_9, %c0_10] : memref<64x64xbf16, #tpu.memory_space<vmem>>, vector<64x64xbf16>
    %cst_11 = arith.constant dense<0.000000e+00> : vector<32x64xf32>
    %26 = tpu.matmul %24, %25, %cst_11 {dimension_numbers = #tpu.dot_dimension_numbers<[1], [0], [0], [1], [0, 0, 1, 1], [], []>} : vector<32x64xbf16>, vector<64x64xbf16>, vector<32x64xf32> -> vector<32x64xf32>
    %c0_12 = arith.constant 0 : index
    %c0_13 = arith.constant 0 : index
    %27 = vector.load %arg5[%c0_12, %c0_13] : memref<1x64xf32, #tpu.memory_space<vmem>>, vector<1x64xf32>
    %28 = vector.broadcast %27 : vector<1x64xf32> to vector<32x64xf32>
    %29 = arith.addf %26, %28 : vector<32x64xf32>
    %30 = arith.truncf %29 : vector<32x64xf32> to vector<32x64xbf16>
    %c0_14 = arith.constant 0 : index
    %c0_15 = arith.constant 0 : index
    %31 = vector.load %arg6[%c0_14, %c0_15] : memref<32x64xbf16, #tpu.memory_space<vmem>>, vector<32x64xbf16>
    tpu.vector_store %arg6[%c0_14, %c0_15], %30 {strides = array<i32>} : memref<32x64xbf16, #tpu.memory_space<vmem>>, vector<32x64xbf16>,
    return
  }
  func.func @transform_0(%arg0: i32) -> (i32, i32) {
    %c0_i32 = arith.constant 0 : i32
    %c0_i32_0 = arith.constant 0 : i32
    return %arg0, %c0_i32 : i32, i32
  }
  func.func @transform_1(%arg0: i32) -> (i32, i32) {
    %c0_i32 = arith.constant 0 : i32
    %c0_i32_0 = arith.constant 0 : i32
    %c0_i32_1 = arith.constant 0 : i32
    return %c0_i32, %c0_i32_0 : i32, i32
  }
  func.func @transform_2(%arg0: i32) -> (i32, i32) {
    %c0_i32 = arith.constant 0 : i32
    %c0_i32_0 = arith.constant 0 : i32
    %c0_i32_1 = arith.constant 0 : i32
    return %c0_i32, %c0_i32_0 : i32, i32
  }
  func.func @transform_3(%arg0: i32) -> (i32, i32) {
    %c0_i32 = arith.constant 0 : i32
    %c0_i32_0 = arith.constant 0 : i32
    %c0_i32_1 = arith.constant 0 : i32
    return %c0_i32, %c0_i32_0 : i32, i32
  }
  func.func @transform_4(%arg0: i32) -> (i32, i32) {
    %c0_i32 = arith.constant 0 : i32
    %c0_i32_0 = arith.constant 0 : i32
    %c0_i32_1 = arith.constant 0 : i32
    return %c0_i32, %c0_i32_0 : i32, i32
  }
  func.func @transform_5(%arg0: i32) -> (i32, i32) {
    %c0_i32 = arith.constant 0 : i32
    %c0_i32_0 = arith.constant 0 : i32
    return %arg0, %c0_i32 : i32, i32
  }
}

module attributes {stable_mosaic.version = 11 : i64} {
  func.func @_ln_residual_kernel(%arg0: i32, %arg1: memref<32x64xf32, #tpu.memory_space<vmem>>, %arg2: memref<1x64xf32, #tpu.memory_space<vmem>>, %arg3: memref<1x64xf32, #tpu.memory_space<vmem>>, %arg4: memref<32x64xf32, #tpu.memory_space<vmem>>, %arg5: memref<32x64xf32, #tpu.memory_space<vmem>>) attributes {dimension_semantics = [#tpu.dimension_semantics<parallel>], iteration_bounds = array<i64: 1>, scalar_prefetch = 0 : i64, scratch_operands = 0 : i64, tpu.core_type = #tpu.core_type<tc>, window_params = [{transform_indices = @transform_0, window_bounds = array<i64: 32, 64>}, {pipeline_mode = #tpu.pipeline_mode<synchronous>, transform_indices = @transform_1, window_bounds = array<i64: 1, 64>}, {pipeline_mode = #tpu.pipeline_mode<synchronous>, transform_indices = @transform_2, window_bounds = array<i64: 1, 64>}, {transform_indices = @transform_3, window_bounds = array<i64: 32, 64>}, {transform_indices = @transform_4, window_bounds = array<i64: 32, 64>}]} {
    %c0 = arith.constant 0 : index
    %c0_0 = arith.constant 0 : index
    %0 = vector.load %arg4[%c0, %c0_0] : memref<32x64xf32, #tpu.memory_space<vmem>>, vector<32x64xf32>
    %c0_1 = arith.constant 0 : index
    %c0_2 = arith.constant 0 : index
    %1 = vector.load %arg1[%c0_1, %c0_2] : memref<32x64xf32, #tpu.memory_space<vmem>>, vector<32x64xf32>
    %c0_3 = arith.constant 0 : index
    %c0_4 = arith.constant 0 : index
    %2 = vector.load %arg2[%c0_3, %c0_4] : memref<1x64xf32, #tpu.memory_space<vmem>>, vector<1x64xf32>
    %c0_5 = arith.constant 0 : index
    %c0_6 = arith.constant 0 : index
    %3 = vector.load %arg3[%c0_5, %c0_6] : memref<1x64xf32, #tpu.memory_space<vmem>>, vector<1x64xf32>
    %cst = arith.constant dense<0.000000e+00> : vector<32xf32>
    %4 = vector.multi_reduction <add>, %1, %cst [1] : vector<32x64xf32> to vector<32xf32>
    %5 = vector.shape_cast %4 : vector<32xf32> to vector<32x1xf32>
    %cst_7 = arith.constant 6.400000e+01 : f32
    %6 = vector.broadcast %cst_7 : f32 to vector<32x1xf32>
    %7 = arith.divf %5, %6 : vector<32x1xf32>
    %8 = vector.broadcast %7 : vector<32x1xf32> to vector<32x64xf32>
    %9 = arith.subf %1, %8 : vector<32x64xf32>
    %10 = arith.mulf %9, %9 : vector<32x64xf32>
    %cst_8 = arith.constant dense<0.000000e+00> : vector<32xf32>
    %11 = vector.multi_reduction <add>, %10, %cst_8 [1] : vector<32x64xf32> to vector<32xf32>
    %12 = vector.shape_cast %11 : vector<32xf32> to vector<32x1xf32>
    %cst_9 = arith.constant 0.0158730168 : f32
    %13 = vector.broadcast %cst_9 : f32 to vector<32x1xf32>
    %14 = arith.mulf %12, %13 : vector<32x1xf32>
    %15 = math.sqrt %14 : vector<32x1xf32>
    %16 = vector.broadcast %2 : vector<1x64xf32> to vector<32x64xf32>
    %17 = arith.mulf %16, %9 : vector<32x64xf32>
    %cst_10 = arith.constant 9.99999997E-7 : f32
    %18 = vector.broadcast %cst_10 : f32 to vector<32x1xf32>
    %19 = arith.addf %15, %18 : vector<32x1xf32>
    %20 = tpu.reciprocal %19 {approx = true} : vector<32x1xf32> -> vector<32x1xf32>
    %21 = vector.broadcast %20 : vector<32x1xf32> to vector<32x64xf32>
    %22 = arith.mulf %17, %21 : vector<32x64xf32>
    %23 = vector.broadcast %3 : vector<1x64xf32> to vector<32x64xf32>
    %24 = arith.addf %22, %23 : vector<32x64xf32>
    %25 = arith.addf %0, %24 : vector<32x64xf32>
    %c0_11 = arith.constant 0 : index
    %c0_12 = arith.constant 0 : index
    %26 = vector.load %arg5[%c0_11, %c0_12] : memref<32x64xf32, #tpu.memory_space<vmem>>, vector<32x64xf32>
    tpu.vector_store %arg5[%c0_11, %c0_12], %25 {strides = array<i32>} : memref<32x64xf32, #tpu.memory_space<vmem>>, vector<32x64xf32>,
    return
  }
  func.func @transform_0(%arg0: i32) -> (i32, i32) {
    %c0_i32 = arith.constant 0 : i32
    %c0_i32_0 = arith.constant 0 : i32
    return %arg0, %c0_i32 : i32, i32
  }
  func.func @transform_1(%arg0: i32) -> (i32, i32) {
    %c0_i32 = arith.constant 0 : i32
    %c0_i32_0 = arith.constant 0 : i32
    %c0_i32_1 = arith.constant 0 : i32
    return %c0_i32, %c0_i32_0 : i32, i32
  }
  func.func @transform_2(%arg0: i32) -> (i32, i32) {
    %c0_i32 = arith.constant 0 : i32
    %c0_i32_0 = arith.constant 0 : i32
    %c0_i32_1 = arith.constant 0 : i32
    return %c0_i32, %c0_i32_0 : i32, i32
  }
  func.func @transform_3(%arg0: i32) -> (i32, i32) {
    %c0_i32 = arith.constant 0 : i32
    %c0_i32_0 = arith.constant 0 : i32
    return %arg0, %c0_i32 : i32, i32
  }
  func.func @transform_4(%arg0: i32) -> (i32, i32) {
    %c0_i32 = arith.constant 0 : i32
    %c0_i32_0 = arith.constant 0 : i32
    return %arg0, %c0_i32 : i32, i32
  }
}

module attributes {stable_mosaic.version = 11 : i64} {
  func.func @_pointnet_chain_kernel(%arg0: i32, %arg1: memref<32x64xf32, #tpu.memory_space<vmem>>, %arg2: memref<64x32xbf16, #tpu.memory_space<vmem>>, %arg3: memref<1x32xf32, #tpu.memory_space<vmem>>, %arg4: memref<1x32xf32, #tpu.memory_space<vmem>>, %arg5: memref<32x16xbf16, #tpu.memory_space<vmem>>, %arg6: memref<1x16xf32, #tpu.memory_space<vmem>>, %arg7: memref<1x16xf32, #tpu.memory_space<vmem>>, %arg8: memref<16x8xbf16, #tpu.memory_space<vmem>>, %arg9: memref<1x8xf32, #tpu.memory_space<vmem>>, %arg10: memref<1x8xf32, #tpu.memory_space<vmem>>, %arg11: memref<8x4xbf16, #tpu.memory_space<vmem>>, %arg12: memref<32x4xf32, #tpu.memory_space<vmem>>) attributes {dimension_semantics = [#tpu.dimension_semantics<arbitrary>], iteration_bounds = array<i64: 1>, scalar_prefetch = 0 : i64, scratch_operands = 0 : i64, tpu.core_type = #tpu.core_type<tc>, window_params = [{pipeline_mode = #tpu.pipeline_mode<synchronous>, transform_indices = @transform_0, window_bounds = array<i64: 32, 64>}, {pipeline_mode = #tpu.pipeline_mode<synchronous>, transform_indices = @transform_1, window_bounds = array<i64: 64, 32>}, {pipeline_mode = #tpu.pipeline_mode<synchronous>, transform_indices = @transform_2, window_bounds = array<i64: 1, 32>}, {pipeline_mode = #tpu.pipeline_mode<synchronous>, transform_indices = @transform_3, window_bounds = array<i64: 1, 32>}, {pipeline_mode = #tpu.pipeline_mode<synchronous>, transform_indices = @transform_4, window_bounds = array<i64: 32, 16>}, {pipeline_mode = #tpu.pipeline_mode<synchronous>, transform_indices = @transform_5, window_bounds = array<i64: 1, 16>}, {pipeline_mode = #tpu.pipeline_mode<synchronous>, transform_indices = @transform_6, window_bounds = array<i64: 1, 16>}, {pipeline_mode = #tpu.pipeline_mode<synchronous>, transform_indices = @transform_7, window_bounds = array<i64: 16, 8>}, {pipeline_mode = #tpu.pipeline_mode<synchronous>, transform_indices = @transform_8, window_bounds = array<i64: 1, 8>}, {pipeline_mode = #tpu.pipeline_mode<synchronous>, transform_indices = @transform_9, window_bounds = array<i64: 1, 8>}, {pipeline_mode = #tpu.pipeline_mode<synchronous>, transform_indices = @transform_10, window_bounds = array<i64: 8, 4>}, {pipeline_mode = #tpu.pipeline_mode<synchronous>, transform_indices = @transform_11, window_bounds = array<i64: 32, 4>}]} {
    %c0 = arith.constant 0 : index
    %c0_0 = arith.constant 0 : index
    %0 = vector.load %arg1[%c0, %c0_0] : memref<32x64xf32, #tpu.memory_space<vmem>>, vector<32x64xf32>
    %1 = arith.truncf %0 : vector<32x64xf32> to vector<32x64xbf16>
    %c0_1 = arith.constant 0 : index
    %c0_2 = arith.constant 0 : index
    %2 = vector.load %arg2[%c0_1, %c0_2] : memref<64x32xbf16, #tpu.memory_space<vmem>>, vector<64x32xbf16>
    %cst = arith.constant dense<0.000000e+00> : vector<32x32xf32>
    %3 = tpu.matmul %1, %2, %cst {dimension_numbers = #tpu.dot_dimension_numbers<[1], [0], [0], [1], [0, 0, 1, 1], [], []>} : vector<32x64xbf16>, vector<64x32xbf16>, vector<32x32xf32> -> vector<32x32xf32>
    %cst_3 = arith.constant dense<0.000000e+00> : vector<32xf32>
    %4 = vector.multi_reduction <add>, %3, %cst_3 [0] : vector<32x32xf32> to vector<32xf32>
    %5 = vector.shape_cast %4 : vector<32xf32> to vector<1x32xf32>
    %cst_4 = arith.constant 3.200000e+01 : f32
    %6 = vector.broadcast %cst_4 : f32 to vector<1x32xf32>
    %7 = arith.divf %5, %6 : vector<1x32xf32>
    %8 = arith.mulf %3, %3 : vector<32x32xf32>
    %cst_5 = arith.constant dense<0.000000e+00> : vector<32xf32>
    %9 = vector.multi_reduction <add>, %8, %cst_5 [0] : vector<32x32xf32> to vector<32xf32>
    %10 = vector.shape_cast %9 : vector<32xf32> to vector<1x32xf32>
    %cst_6 = arith.constant 3.200000e+01 : f32
    %11 = vector.broadcast %cst_6 : f32 to vector<1x32xf32>
    %12 = arith.divf %10, %11 : vector<1x32xf32>
    %13 = arith.mulf %7, %7 : vector<1x32xf32>
    %14 = arith.subf %12, %13 : vector<1x32xf32>
    %cst_7 = arith.constant 0.000000e+00 : f32
    %15 = vector.broadcast %cst_7 : f32 to vector<1x32xf32>
    %16 = arith.maximumf %14, %15 : vector<1x32xf32>
    %cst_8 = arith.constant 9.99999974E-6 : f32
    %17 = vector.broadcast %cst_8 : f32 to vector<1x32xf32>
    %18 = arith.addf %16, %17 : vector<1x32xf32>
    %19 = math.rsqrt %18 : vector<1x32xf32>
    %20 = vector.broadcast %7 : vector<1x32xf32> to vector<32x32xf32>
    %21 = arith.subf %3, %20 : vector<32x32xf32>
    %22 = vector.broadcast %19 : vector<1x32xf32> to vector<32x32xf32>
    %23 = arith.mulf %21, %22 : vector<32x32xf32>
    %c0_9 = arith.constant 0 : index
    %c0_10 = arith.constant 0 : index
    %24 = vector.load %arg3[%c0_9, %c0_10] : memref<1x32xf32, #tpu.memory_space<vmem>>, vector<1x32xf32>
    %25 = vector.broadcast %24 : vector<1x32xf32> to vector<32x32xf32>
    %26 = arith.mulf %23, %25 : vector<32x32xf32>
    %c0_11 = arith.constant 0 : index
    %c0_12 = arith.constant 0 : index
    %27 = vector.load %arg4[%c0_11, %c0_12] : memref<1x32xf32, #tpu.memory_space<vmem>>, vector<1x32xf32>
    %28 = vector.broadcast %27 : vector<1x32xf32> to vector<32x32xf32>
    %29 = arith.addf %26, %28 : vector<32x32xf32>
    %cst_13 = arith.constant 0.000000e+00 : f32
    %30 = vector.broadcast %cst_13 : f32 to vector<32x32xf32>
    %31 = arith.maximumf %29, %30 : vector<32x32xf32>
    %32 = arith.truncf %31 : vector<32x32xf32> to vector<32x32xbf16>
    %c0_14 = arith.constant 0 : index
    %c0_15 = arith.constant 0 : index
    %33 = vector.load %arg5[%c0_14, %c0_15] : memref<32x16xbf16, #tpu.memory_space<vmem>>, vector<32x16xbf16>
    %cst_16 = arith.constant dense<0.000000e+00> : vector<32x16xf32>
    %34 = tpu.matmul %32, %33, %cst_16 {dimension_numbers = #tpu.dot_dimension_numbers<[1], [0], [0], [1], [0, 0, 1, 1], [], []>} : vector<32x32xbf16>, vector<32x16xbf16>, vector<32x16xf32> -> vector<32x16xf32>
    %cst_17 = arith.constant dense<0.000000e+00> : vector<16xf32>
    %35 = vector.multi_reduction <add>, %34, %cst_17 [0] : vector<32x16xf32> to vector<16xf32>
    %36 = vector.shape_cast %35 : vector<16xf32> to vector<1x16xf32>
    %cst_18 = arith.constant 3.200000e+01 : f32
    %37 = vector.broadcast %cst_18 : f32 to vector<1x16xf32>
    %38 = arith.divf %36, %37 : vector<1x16xf32>
    %39 = arith.mulf %34, %34 : vector<32x16xf32>
    %cst_19 = arith.constant dense<0.000000e+00> : vector<16xf32>
    %40 = vector.multi_reduction <add>, %39, %cst_19 [0] : vector<32x16xf32> to vector<16xf32>
    %41 = vector.shape_cast %40 : vector<16xf32> to vector<1x16xf32>
    %cst_20 = arith.constant 3.200000e+01 : f32
    %42 = vector.broadcast %cst_20 : f32 to vector<1x16xf32>
    %43 = arith.divf %41, %42 : vector<1x16xf32>
    %44 = arith.mulf %38, %38 : vector<1x16xf32>
    %45 = arith.subf %43, %44 : vector<1x16xf32>
    %cst_21 = arith.constant 0.000000e+00 : f32
    %46 = vector.broadcast %cst_21 : f32 to vector<1x16xf32>
    %47 = arith.maximumf %45, %46 : vector<1x16xf32>
    %cst_22 = arith.constant 9.99999974E-6 : f32
    %48 = vector.broadcast %cst_22 : f32 to vector<1x16xf32>
    %49 = arith.addf %47, %48 : vector<1x16xf32>
    %50 = math.rsqrt %49 : vector<1x16xf32>
    %51 = vector.broadcast %38 : vector<1x16xf32> to vector<32x16xf32>
    %52 = arith.subf %34, %51 : vector<32x16xf32>
    %53 = vector.broadcast %50 : vector<1x16xf32> to vector<32x16xf32>
    %54 = arith.mulf %52, %53 : vector<32x16xf32>
    %c0_23 = arith.constant 0 : index
    %c0_24 = arith.constant 0 : index
    %55 = vector.load %arg6[%c0_23, %c0_24] : memref<1x16xf32, #tpu.memory_space<vmem>>, vector<1x16xf32>
    %56 = vector.broadcast %55 : vector<1x16xf32> to vector<32x16xf32>
    %57 = arith.mulf %54, %56 : vector<32x16xf32>
    %c0_25 = arith.constant 0 : index
    %c0_26 = arith.constant 0 : index
    %58 = vector.load %arg7[%c0_25, %c0_26] : memref<1x16xf32, #tpu.memory_space<vmem>>, vector<1x16xf32>
    %59 = vector.broadcast %58 : vector<1x16xf32> to vector<32x16xf32>
    %60 = arith.addf %57, %59 : vector<32x16xf32>
    %cst_27 = arith.constant 0.000000e+00 : f32
    %61 = vector.broadcast %cst_27 : f32 to vector<32x16xf32>
    %62 = arith.maximumf %60, %61 : vector<32x16xf32>
    %63 = arith.truncf %62 : vector<32x16xf32> to vector<32x16xbf16>
    %c0_28 = arith.constant 0 : index
    %c0_29 = arith.constant 0 : index
    %64 = vector.load %arg8[%c0_28, %c0_29] : memref<16x8xbf16, #tpu.memory_space<vmem>>, vector<16x8xbf16>
    %cst_30 = arith.constant dense<0.000000e+00> : vector<32x8xf32>
    %65 = tpu.matmul %63, %64, %cst_30 {dimension_numbers = #tpu.dot_dimension_numbers<[1], [0], [0], [1], [0, 0, 1, 1], [], []>} : vector<32x16xbf16>, vector<16x8xbf16>, vector<32x8xf32> -> vector<32x8xf32>
    %cst_31 = arith.constant dense<0.000000e+00> : vector<8xf32>
    %66 = vector.multi_reduction <add>, %65, %cst_31 [0] : vector<32x8xf32> to vector<8xf32>
    %67 = vector.shape_cast %66 : vector<8xf32> to vector<1x8xf32>
    %cst_32 = arith.constant 3.200000e+01 : f32
    %68 = vector.broadcast %cst_32 : f32 to vector<1x8xf32>
    %69 = arith.divf %67, %68 : vector<1x8xf32>
    %70 = arith.mulf %65, %65 : vector<32x8xf32>
    %cst_33 = arith.constant dense<0.000000e+00> : vector<8xf32>
    %71 = vector.multi_reduction <add>, %70, %cst_33 [0] : vector<32x8xf32> to vector<8xf32>
    %72 = vector.shape_cast %71 : vector<8xf32> to vector<1x8xf32>
    %cst_34 = arith.constant 3.200000e+01 : f32
    %73 = vector.broadcast %cst_34 : f32 to vector<1x8xf32>
    %74 = arith.divf %72, %73 : vector<1x8xf32>
    %75 = arith.mulf %69, %69 : vector<1x8xf32>
    %76 = arith.subf %74, %75 : vector<1x8xf32>
    %cst_35 = arith.constant 0.000000e+00 : f32
    %77 = vector.broadcast %cst_35 : f32 to vector<1x8xf32>
    %78 = arith.maximumf %76, %77 : vector<1x8xf32>
    %cst_36 = arith.constant 9.99999974E-6 : f32
    %79 = vector.broadcast %cst_36 : f32 to vector<1x8xf32>
    %80 = arith.addf %78, %79 : vector<1x8xf32>
    %81 = math.rsqrt %80 : vector<1x8xf32>
    %82 = vector.broadcast %69 : vector<1x8xf32> to vector<32x8xf32>
    %83 = arith.subf %65, %82 : vector<32x8xf32>
    %84 = vector.broadcast %81 : vector<1x8xf32> to vector<32x8xf32>
    %85 = arith.mulf %83, %84 : vector<32x8xf32>
    %c0_37 = arith.constant 0 : index
    %c0_38 = arith.constant 0 : index
    %86 = vector.load %arg9[%c0_37, %c0_38] : memref<1x8xf32, #tpu.memory_space<vmem>>, vector<1x8xf32>
    %87 = vector.broadcast %86 : vector<1x8xf32> to vector<32x8xf32>
    %88 = arith.mulf %85, %87 : vector<32x8xf32>
    %c0_39 = arith.constant 0 : index
    %c0_40 = arith.constant 0 : index
    %89 = vector.load %arg10[%c0_39, %c0_40] : memref<1x8xf32, #tpu.memory_space<vmem>>, vector<1x8xf32>
    %90 = vector.broadcast %89 : vector<1x8xf32> to vector<32x8xf32>
    %91 = arith.addf %88, %90 : vector<32x8xf32>
    %cst_41 = arith.constant 0.000000e+00 : f32
    %92 = vector.broadcast %cst_41 : f32 to vector<32x8xf32>
    %93 = arith.maximumf %91, %92 : vector<32x8xf32>
    %94 = arith.truncf %93 : vector<32x8xf32> to vector<32x8xbf16>
    %c0_42 = arith.constant 0 : index
    %c0_43 = arith.constant 0 : index
    %95 = vector.load %arg11[%c0_42, %c0_43] : memref<8x4xbf16, #tpu.memory_space<vmem>>, vector<8x4xbf16>
    %cst_44 = arith.constant dense<0.000000e+00> : vector<32x4xf32>
    %96 = tpu.matmul %94, %95, %cst_44 {dimension_numbers = #tpu.dot_dimension_numbers<[1], [0], [0], [1], [0, 0, 1, 1], [], []>} : vector<32x8xbf16>, vector<8x4xbf16>, vector<32x4xf32> -> vector<32x4xf32>
    %c0_45 = arith.constant 0 : index
    %c0_46 = arith.constant 0 : index
    %97 = vector.load %arg12[%c0_45, %c0_46] : memref<32x4xf32, #tpu.memory_space<vmem>>, vector<32x4xf32>
    tpu.vector_store %arg12[%c0_45, %c0_46], %96 {strides = array<i32>} : memref<32x4xf32, #tpu.memory_space<vmem>>, vector<32x4xf32>,
    return
  }
  func.func @transform_0(%arg0: i32) -> (i32, i32) {
    %c0_i32 = arith.constant 0 : i32
    %c0_i32_0 = arith.constant 0 : i32
    %c0_i32_1 = arith.constant 0 : i32
    return %c0_i32, %c0_i32_0 : i32, i32
  }
  func.func @transform_1(%arg0: i32) -> (i32, i32) {
    %c0_i32 = arith.constant 0 : i32
    %c0_i32_0 = arith.constant 0 : i32
    %c0_i32_1 = arith.constant 0 : i32
    return %c0_i32, %c0_i32_0 : i32, i32
  }
  func.func @transform_2(%arg0: i32) -> (i32, i32) {
    %c0_i32 = arith.constant 0 : i32
    %c0_i32_0 = arith.constant 0 : i32
    %c0_i32_1 = arith.constant 0 : i32
    return %c0_i32, %c0_i32_0 : i32, i32
  }
  func.func @transform_3(%arg0: i32) -> (i32, i32) {
    %c0_i32 = arith.constant 0 : i32
    %c0_i32_0 = arith.constant 0 : i32
    %c0_i32_1 = arith.constant 0 : i32
    return %c0_i32, %c0_i32_0 : i32, i32
  }
  func.func @transform_4(%arg0: i32) -> (i32, i32) {
    %c0_i32 = arith.constant 0 : i32
    %c0_i32_0 = arith.constant 0 : i32
    %c0_i32_1 = arith.constant 0 : i32
    return %c0_i32, %c0_i32_0 : i32, i32
  }
  func.func @transform_5(%arg0: i32) -> (i32, i32) {
    %c0_i32 = arith.constant 0 : i32
    %c0_i32_0 = arith.constant 0 : i32
    %c0_i32_1 = arith.constant 0 : i32
    return %c0_i32, %c0_i32_0 : i32, i32
  }
  func.func @transform_6(%arg0: i32) -> (i32, i32) {
    %c0_i32 = arith.constant 0 : i32
    %c0_i32_0 = arith.constant 0 : i32
    %c0_i32_1 = arith.constant 0 : i32
    return %c0_i32, %c0_i32_0 : i32, i32
  }
  func.func @transform_7(%arg0: i32) -> (i32, i32) {
    %c0_i32 = arith.constant 0 : i32
    %c0_i32_0 = arith.constant 0 : i32
    %c0_i32_1 = arith.constant 0 : i32
    return %c0_i32, %c0_i32_0 : i32, i32
  }
  func.func @transform_8(%arg0: i32) -> (i32, i32) {
    %c0_i32 = arith.constant 0 : i32
    %c0_i32_0 = arith.constant 0 : i32
    %c0_i32_1 = arith.constant 0 : i32
    return %c0_i32, %c0_i32_0 : i32, i32
  }
  func.func @transform_9(%arg0: i32) -> (i32, i32) {
    %c0_i32 = arith.constant 0 : i32
    %c0_i32_0 = arith.constant 0 : i32
    %c0_i32_1 = arith.constant 0 : i32
    return %c0_i32, %c0_i32_0 : i32, i32
  }
  func.func @transform_10(%arg0: i32) -> (i32, i32) {
    %c0_i32 = arith.constant 0 : i32
    %c0_i32_0 = arith.constant 0 : i32
    %c0_i32_1 = arith.constant 0 : i32
    return %c0_i32, %c0_i32_0 : i32, i32
  }
  func.func @transform_11(%arg0: i32) -> (i32, i32) {
    %c0_i32 = arith.constant 0 : i32
    %c0_i32_0 = arith.constant 0 : i32
    %c0_i32_1 = arith.constant 0 : i32
    return %c0_i32, %c0_i32_0 : i32, i32
  }
}

</mosaic_0001>

<bundles_post_ra>
// kernel: aligned_frame_decoder_forward.36
= control target key start
LH: loop header
LB: loop body
LE: loop exit
PB: predicated region body
PF: predicated region fallthrough
CT: control target
= control target key end

     0   :  { %vm71_vm0 = vcmask 523264   ;;  %s252_s1 = inlined_call_operand.vmem [shape: bf16[64,64], index: 1, kind: input, shape index: {}]   ;;  %s253_s0 = inlined_call_operand.vmem [shape: bf16[32,64], index: 0, kind: input, shape index: {}]   ;;  %s254_s2 = inlined_call_operand.vmem [shape: f32[1,64], index: 2, kind: input, shape index: {}]   ;;  %s255_s3 = inlined_call_operand.vmem [shape: f32[32,64], index: 3, kind: input, shape index: {}]   ;;  %s256_s4 = inlined_call_operand.vmem [shape: f32[32,64], index: 4, kind: output, shape index: {}]  }
   0x1   :  { %v170_v0 = vld [vmem:[%s252_s1] sm:$0xff]   ;;  %v171_v1 = vld [vmem:[%s252_s1 + $0x8] sm:$0xff]   ;;  %v172_v2 = vld [vmem:[%s252_s1 + $0x10] sm:$0xff]  }
   0x2   :  { %158 = vmatprep.subr.bf16.mxu0 %v170_v0  ;;  %v174_v3 = vld [vmem:[%s253_s0] sm:$0xff]   ;;  %v173_v4 = vld [vmem:[%s252_s1 + $0x18] sm:$0xff]   ;;  %v175_v5 = vld [vmem:[%s253_s0 + $0x8] sm:$0xff]  }
   0x3   :  { %159 = vmatpush3.bf16.msra.mxu0 %v170_v0  ;;  %166 = vmatprep.mubr.msk.bf16.mxu0 %vm71_vm0, %v174_v3  ;;  %v143_v6 = vld [vmem:[%s254_s2] ss:$0 sm:$0xff]  ;;  %v129_v8 = vld [vmem:[%s255_s3 + $0x10] sm:$0xff]  ;;  %v130_v14 = vld [vmem:[%s255_s3 + $0x18] sm:$0xff] }
   0x4   :  { %160 = vmatprep.subr.bf16.mxu0 %v171_v1  ;;  %v127_v11 = vld [vmem:[%s255_s3] sm:$0xff]  ;;  %v128_v18 = vld [vmem:[%s255_s3 + $0x8] sm:$0xff] }
   0x7   :  { %161 = vmatpush3.bf16.msra.mxu0 %v171_v1 }
   0x8   :  { %162 = vmatprep.subr.bf16.mxu0 %v172_v2 }
   0xb   :  { %163 = vmatpush3.bf16.msra.mxu0 %v172_v2 }
   0xc   :  { %164 = vmatprep.subr.bf16.mxu0 %v173_v4 }
   0xf   :  { %165 = vmatpush3.bf16.msra.mxu0 %v173_v4 }
  0x12   :  { %167 = vmatmul.mubr.msk.bf16.vlgmr.msra.gmra.mrb[0].mxu0 %vm71_vm0, %v175_v5 }
  0xe5   :  { %v168_v7 = vpop.f32.mrb[0].mxu0 }
  0xe6   :  { %v121_v9 = vadd.f32 %v168_v7, %v143_v6  ;;  %v112_v10 = vpop.f32.mrb[1].mxu0 }
  0xe7   :  { %v113_v12 = vadd.f32 %v143_v6, %v112_v10  ;;  %v169_v13 = vpop.f32.mrb[2].mxu0 }
  0xe8   :  { %v133_v15 = vadd.f32 %v129_v8, %v121_v9  ;;  %v124_v16 = vadd.f32 %v169_v13, %v143_v6  ;;  %v115_v17 = vpop.f32.mrb[3].mxu0 }
  0xe9   :  { %v131_v19 = vadd.f32 %v127_v11, %v113_v12  ;;  %v116_v20 = vadd.f32 %v143_v6, %v115_v17 }
  0xea   :  { %137 = vst.msk [vmem:[%s256_s4 + $0x10] sm:$0xff] %vm71_vm0, %v133_v15  ;;  %v134_v21 = vadd.f32 %v130_v14, %v124_v16 }
  0xeb   :  { %135 = vst.msk [vmem:[%s256_s4] sm:$0xff] %vm71_vm0, %v131_v19  ;;  %v132_v22 = vadd.f32 %v128_v18, %v116_v20 }
  0xec   :  { %138 = vst.msk [vmem:[%s256_s4 + $0x18] sm:$0xff] %vm71_vm0, %v134_v21 }
  0xed   :  { %136 = vst.msk [vmem:[%s256_s4 + $0x8] sm:$0xff] %vm71_vm0, %v132_v22 }

// kernel: aligned_frame_decoder_forward.33
= control target key start
LH: loop header
LB: loop body
LE: loop exit
PB: predicated region body
PF: predicated region fallthrough
CT: control target
= control target key end

     0   :  { %vm45_vm0 = vcmask 1042432   ;;  %vm32_vm1 = vcmask 23552   ;;  %vm134_vm2 = vcmask 523264   ;;  %s542_s1 = inlined_call_operand.vmem [shape: f32[3,64], index: 1, kind: input, shape index: {}]   ;;  %s543_s0 = inlined_call_operand.vmem [shape: f32[32,3], index: 0, kind: input, shape index: {}]   ;;  %s544_s4 = inlined_call_operand.vmem [shape: bf16[64,64], index: 4, kind: input, shape index: {}]   ;;  %s545_s2 = inlined_call_operand.vmem [shape: f32[1,64], index: 2, kind: input, shape index: {}]   ;;  %s546_s3 = inlined_call_operand.vmem [shape: f32[1,64], index: 3, kind: input, shape index: {}]   ;;  %s547_s5 = inlined_call_operand.vmem [shape: f32[1,64], index: 5, kind: input, shape index: {}]   ;;  %s548_s6 = inlined_call_operand.vmem [shape: f32[1,64], index: 6, kind: input, shape index: {}]   ;;  %s549_s7 = inlined_call_operand.vmem [shape: f32[32,64], index: 7, kind: output, shape index: {}]  }
   0x1   :  { %v31_v0 = vld [vmem:[%s542_s1] sm:$0x7]  ;;  %v28_v2 = vld [vmem:[%s543_s0 + $0x8] sm:$0xff]  ;;  %v29_v3 = vld [vmem:[%s543_s0 + $0x10] sm:$0xff] }
   0x2   :  { %v27_v1 = vld [vmem:[%s543_s0] sm:$0xff]  ;;  %401 = vmatprep.subr.msk.mxu0 %vm45_vm0, %v31_v0  ;;  %v30_v4 = vld [vmem:[%s543_s0 + $0x18] sm:$0xff]  ;;  %v422_v6 = vld [vmem:[%s544_s4 + $0x8] sm:$0xff]  }
   0x3   :  { %403 = vmatprep.mubr.msk.f32.mxu0 %vm32_vm1, %v27_v1  ;;  %402 = vmatpush3.msk.msra.mxu0 %vm45_vm0, %v31_v0  ;;  %v421_v5 = vld [vmem:[%s544_s4] sm:$0xff]   ;;  %v423_v7 = vld [vmem:[%s544_s4 + $0x10] sm:$0xff]   ;;  %v424_v8 = vld [vmem:[%s544_s4 + $0x18] sm:$0xff]  }
   0x4   :  { %404 = vmatmul.mubr.msk.f32.vlgmr.msra.gmra.mrb[0].mxu0 %vm32_vm1, %v28_v2  ;;  %409 = vmatprep.subr.bf16.mxu1 %v421_v5  ;;  %v380_v54 = vld [vmem:[%s545_s2] ss:$0 sm:$0xff] }
   0x5   :  { %406 = vmatprep.mubr.msk.f32.mxu0 %vm32_vm1, %v29_v3  ;;  %410 = vmatpush3.bf16.msra.mxu1 %v421_v5  ;;  %v381_v59 = vld [vmem:[%s546_s3] ss:$0 sm:$0xff] }
   0x6   :  { %411 = vmatprep.subr.bf16.mxu1 %v422_v6 }
   0x8   :  { %407 = vmatmul.mubr.msk.f32.gmra.mrb[2].mxu0 %vm32_vm1, %v30_v4 }
   0x9   :  { %412 = vmatpush3.bf16.msra.mxu1 %v422_v6 }
   0xa   :  { %413 = vmatprep.subr.bf16.mxu1 %v423_v7 }
   0xd   :  { %414 = vmatpush3.bf16.msra.mxu1 %v423_v7 }
   0xe   :  { %415 = vmatprep.subr.bf16.mxu1 %v424_v8 }
  0x11   :  { %416 = vmatpush3.bf16.msra.mxu1 %v424_v8 }
  0xd7   :  { %v405_v9 = vpop.f32.mrb[0].mxu0 }
  0xd8   :  { %v136_v10 = vsel %vm134_vm2, %v405_v9, 0.0  ;;  %v151_v11 = vmul.f32 %v405_v9, %v405_v9  ;;  %v115_v12 = vpop.f32.mrb[1].mxu0 }
  0xd9   :  { %v135_v13 = vsel %vm134_vm2, %v115_v12, 0.0  ;;  %v150_v14 = vmul.f32 %v115_v12, %v115_v12 }
  0xda   :  { %v155_v15 = vsel %vm134_vm2, %v151_v11, 0.0  ;;  %v137_v16 = vadd.f32 %v136_v10, %v135_v13 }
  0xdb   :  { %v154_v17 = vsel %vm134_vm2, %v150_v14, 0.0  ;;  %v408_v18 = vpop.f32.mrb[2].mxu0 }
  0xdc   :  { %v156_v19 = vadd.f32 %v155_v15, %v154_v17  ;;  %v125_v20 = vpop.f32.mrb[3].mxu0  ;;  %v153_v21 = vmul.f32 %v408_v18, %v408_v18  ;;  %v140_v25 = vsel %vm134_vm2, %v408_v18, 0.0 }
  0xdd   :  { %v138_v22 = vsel %vm134_vm2, %v125_v20, 0.0  ;;  %v152_v23 = vmul.f32 %v125_v20, %v125_v20 }
  0xde   :  { %v139_v24 = vadd.f32 %v138_v22, %v137_v16  ;;  %v159_v29 = vsel %vm134_vm2, %v153_v21, 0.0 }
  0xdf   :  { %v157_v26 = vsel %vm134_vm2, %v152_v23, 0.0 }
  0xe0   :  { %v141_v27 = vadd.f32 %v140_v25, %v139_v24  ;;  %v158_v28 = vadd.f32 %v157_v26, %v156_v19 }
  0xe2   :  { %v142_v30 = vrot.slane %v141_v27, 4  ;;  %v160_v31 = vadd.f32 %v159_v29, %v158_v28 }
  0xe4   :  { %v143_v32 = vadd.f32 %v142_v30, %v141_v27  ;;  %v161_v33 = vrot.slane %v160_v31, 4 }
  0xe6   :  { %v144_v34 = vrot.slane %v143_v32, 2  ;;  %v162_v35 = vadd.f32 %v161_v33, %v160_v31 }
  0xe8   :  { %v145_v36 = vadd.f32 %v144_v34, %v143_v32  ;;  %v163_v37 = vrot.slane %v162_v35, 2 }
  0xea   :  { %v146_v38 = vrot.slane %v145_v36, 1  ;;  %v164_v39 = vadd.f32 %v163_v37, %v162_v35 }
  0xec   :  { %v147_v40 = vadd.f32 %v146_v38, %v145_v36  ;;  %v165_v41 = vrot.slane %v164_v39, 1 }
  0xee   :  { %v149_v42 = vmul.f32 0.03125, %v147_v40  ;;  %v166_v43 = vadd.f32 %v165_v41, %v164_v39 }
  0xf0   :  { %v167_v44 = vmul.f32 0.03125, %v166_v43  ;;  %v168_v45 = vmul.f32 %v149_v42, %v149_v42  ;;  %v175_v46 = vsub.f32 %v125_v20, %v149_v42  ;;  %v173_v47 = vsub.f32 %v115_v12, %v149_v42 }
  0xf1   :  { %v174_v48 = vsub.f32 %v405_v9, %v149_v42  ;;  %v176_v49 = vsub.f32 %v408_v18, %v149_v42 }
  0xf2   :  { %v169_v50 = vsub.f32 %v167_v44, %v168_v45 }
  0xf4   :  { %v170_v51 = vmax.f32 %v169_v50, 0.0 }
  0xf6   :  { %v171_v52 = vadd.f32 1e-05, %v170_v51 }
  0xf8   :  { %425 = vrsqrt.f32 %v171_v52 }
 0x102   :  { %v426_v53 = vpop.eup %425 }
 0x103   :  { %v179_v55 = vmul.f32 %v426_v53, %v175_v46  ;;  %v177_v56 = vmul.f32 %v426_v53, %v173_v47  ;;  %v178_v57 = vmul.f32 %v426_v53, %v174_v48  ;;  %v180_v58 = vmul.f32 %v426_v53, %v176_v49 }
 0x105   :  { %v190_v60 = vmul.f32 %v380_v54, %v179_v55  ;;  %v188_v61 = vmul.f32 %v380_v54, %v177_v56  ;;  %v189_v62 = vmul.f32 %v380_v54, %v178_v57  ;;  %v191_v63 = vmul.f32 %v380_v54, %v180_v58  ;;  %v388_v55 = vld [vmem:[%s547_s5] ss:$0 sm:$0xff] }
 0x107   :  { %v201_v0 = vadd.f32 %v381_v59, %v190_v60  ;;  %v199_v1 = vadd.f32 %v381_v59, %v188_v61  ;;  %v200_v2 = vadd.f32 %v381_v59, %v189_v62  ;;  %v202_v3 = vadd.f32 %v381_v59, %v191_v63  ;;  %v389_v60 = vld [vmem:[%s548_s6] ss:$0 sm:$0xff] }
 0x109   :  { %v205_v4 = vmax.f32 %v201_v0, 0.0  ;;  %v203_v5 = vmax.f32 %v199_v1, 0.0  ;;  %v204_v6 = vmax.f32 %v200_v2, 0.0  ;;  %v206_v7 = vmax.f32 %v202_v3, 0.0 }
 0x10b   :  { %v207_v8 = vpack.c.bf16 %v204_v6, %v203_v5  ;;  %v208_v9 = vpack.c.bf16 %v206_v7, %v205_v4 }
 0x10d   :  { %417 = vmatprep.mubr.msk.bf16.mxu1 %vm134_vm2, %v207_v8 }
 0x10e   :  { %418 = vmatmul.mubr.msk.bf16.vlgmr.msra.gmra.mrb[0].mxu1 %vm134_vm2, %v208_v9 }
 0x1e1   :  { %v419_v10 = vpop.f32.mrb[0].mxu1 }
 0x1e2   :  { %v281_v11 = vpop.f32.mrb[1].mxu1  ;;  %v312_v15 = vmul.f32 %v419_v10, %v419_v10  ;;  %v299_v20 = vsel %vm134_vm2, %v419_v10, 0.0 }
 0x1e3   :  { %v310_v12 = vmul.f32 %v281_v11, %v281_v11  ;;  %v420_v13 = vpop.f32.mrb[2].mxu1  ;;  %v296_v16 = vsel %vm134_vm2, %v281_v11, 0.0 }
 0x1e4   :  { %v284_v14 = vpop.f32.mrb[3].mxu1  ;;  %v313_v22 = vmul.f32 %v420_v13, %v420_v13  ;;  %v317_v26 = vsel %vm134_vm2, %v312_v15, 0.0  ;;  %v301_v27 = vsel %vm134_vm2, %v420_v13, 0.0 }
 0x1e5   :  { %v297_v17 = vsel %vm134_vm2, %v284_v14, 0.0  ;;  %v311_v18 = vmul.f32 %v284_v14, %v284_v14  ;;  %v314_v21 = vsel %vm134_vm2, %v310_v12, 0.0 }
 0x1e6   :  { %v298_v19 = vadd.f32 %v297_v17, %v296_v16  ;;  %v319_v30 = vsel %vm134_vm2, %v313_v22, 0.0 }
 0x1e7   :  { %v315_v23 = vsel %vm134_vm2, %v311_v18, 0.0 }
 0x1e8   :  { %v300_v24 = vadd.f32 %v299_v20, %v298_v19  ;;  %v316_v25 = vadd.f32 %v315_v23, %v314_v21 }
 0x1ea   :  { %v302_v28 = vadd.f32 %v301_v27, %v300_v24  ;;  %v318_v29 = vadd.f32 %v317_v26, %v316_v25 }
 0x1ec   :  { %v303_v31 = vrot.slane %v302_v28, 4  ;;  %v320_v32 = vadd.f32 %v319_v30, %v318_v29 }
 0x1ee   :  { %v304_v33 = vadd.f32 %v303_v31, %v302_v28  ;;  %v321_v34 = vrot.slane %v320_v32, 4 }
 0x1f0   :  { %v305_v35 = vrot.slane %v304_v33, 2  ;;  %v322_v36 = vadd.f32 %v321_v34, %v320_v32 }
 0x1f2   :  { %v306_v37 = vadd.f32 %v305_v35, %v304_v33  ;;  %v323_v38 = vrot.slane %v322_v36, 2 }
 0x1f4   :  { %v307_v39 = vrot.slane %v306_v37, 1  ;;  %v324_v40 = vadd.f32 %v323_v38, %v322_v36 }
 0x1f6   :  { %v308_v41 = vadd.f32 %v307_v39, %v306_v37  ;;  %v325_v42 = vrot.slane %v324_v40, 1 }
 0x1f8   :  { %v309_v43 = vmul.f32 0.03125, %v308_v41  ;;  %v326_v44 = vadd.f32 %v325_v42, %v324_v40 }
 0x1fa   :  { %v327_v45 = vmul.f32 0.03125, %v326_v44  ;;  %v328_v46 = vmul.f32 %v309_v43, %v309_v43  ;;  %v333_v47 = vsub.f32 %v281_v11, %v309_v43  ;;  %v334_v48 = vsub.f32 %v284_v14, %v309_v43 }
 0x1fb   :  { %v335_v49 = vsub.f32 %v419_v10, %v309_v43  ;;  %v336_v50 = vsub.f32 %v420_v13, %v309_v43 }
 0x1fc   :  { %v329_v51 = vsub.f32 %v327_v45, %v328_v46 }
 0x1fe   :  { %v330_v52 = vmax.f32 %v329_v51, 0.0 }
 0x200   :  { %v331_v53 = vadd.f32 1e-05, %v330_v52 }
 0x202   :  { %427 = vrsqrt.f32 %v331_v53 }
 0x20c   :  { %v428_v54 = vpop.eup %427 }
 0x20d   :  { %v337_v56 = vmul.f32 %v428_v54, %v333_v47  ;;  %v338_v57 = vmul.f32 %v428_v54, %v334_v48  ;;  %v339_v58 = vmul.f32 %v428_v54, %v335_v49  ;;  %v340_v59 = vmul.f32 %v428_v54, %v336_v50 }
 0x20f   :  { %v348_v61 = vmul.f32 %v388_v55, %v337_v56  ;;  %v349_v62 = vmul.f32 %v388_v55, %v338_v57  ;;  %v350_v63 = vmul.f32 %v388_v55, %v339_v58  ;;  %v351_v0 = vmul.f32 %v388_v55, %v340_v59 }
 0x211   :  { %v359_v1 = vadd.f32 %v389_v60, %v348_v61  ;;  %v360_v2 = vadd.f32 %v389_v60, %v349_v62  ;;  %v361_v3 = vadd.f32 %v389_v60, %v350_v63  ;;  %v362_v4 = vadd.f32 %v389_v60, %v351_v0 }
 0x213   :  { %v363_v5 = vmax.f32 %v359_v1, 0.0  ;;  %v364_v6 = vmax.f32 %v360_v2, 0.0  ;;  %v365_v7 = vmax.f32 %v361_v3, 0.0  ;;  %v366_v8 = vmax.f32 %v362_v4, 0.0 }
 0x215   :  { %367 = vst.msk [vmem:[%s549_s7] sm:$0xff] %vm134_vm2, %v363_v5  ;;  %368 = vst.msk [vmem:[%s549_s7 + $0x8] sm:$0xff] %vm134_vm2, %v364_v6 }
 0x216   :  { %369 = vst.msk [vmem:[%s549_s7 + $0x10] sm:$0xff] %vm134_vm2, %v365_v7  ;;  %370 = vst.msk [vmem:[%s549_s7 + $0x18] sm:$0xff] %vm134_vm2, %v366_v8 }

// kernel: aligned_frame_decoder_forward.34
= control target key start
LH: loop header
LB: loop body
LE: loop exit
PB: predicated region body
PF: predicated region fallthrough
CT: control target
= control target key end

     0   :  { %vm35_vm0 = vcmask 523264   ;;  %vm337_vm9 = vcmask 519168   ;;  %s620_s0 = inlined_call_operand.vmem [shape: f32[32,64], index: 0, kind: input, shape index: {}]   ;;  %s621_s3 = inlined_call_operand.vmem [shape: bf16[64,64], index: 3, kind: input, shape index: {}]   ;;  %s622_s5 = inlined_call_operand.vmem [shape: bf16[64,128], index: 5, kind: input, shape index: {}]   ;;  %s623_s1 = inlined_call_operand.vmem [shape: f32[1,64], index: 1, kind: input, shape index: {}]   ;;  %s624_s2 = inlined_call_operand.vmem [shape: f32[1,64], index: 2, kind: input, shape index: {}]   ;;  %s625_s4 = inlined_call_operand.vmem [shape: f32[1,64], index: 4, kind: input, shape index: {}]   ;;  %s626_s6 = inlined_call_operand.vmem [shape: f32[1,128], index: 6, kind: input, shape index: {}]   ;;  %s627_s7 = inlined_call_operand.vmem [shape: bf16[32,64], index: 7, kind: output, shape index: {0}]   ;;  %s628_s8 = inlined_call_operand.vmem [shape: bf16[32,128], index: 8, kind: output, shape index: {1}]  }
   0x1   :  { %v29_v0 = vld [vmem:[%s620_s0] sm:$0xff]  ;;  %v31_v1 = vld [vmem:[%s620_s0 + $0x10] sm:$0xff]  ;;  %v30_v2 = vld [vmem:[%s620_s0 + $0x8] sm:$0xff] }
   0x2   :  { %v36_v3 = vsel %vm35_vm0, %v29_v0, 0.0  ;;  %v42_v4 = vsel %vm35_vm0, %v31_v1, 0.0  ;;  %v32_v5 = vld [vmem:[%s620_s0 + $0x18] sm:$0xff]  ;;  %v39_v6 = vsel %vm35_vm0, %v30_v2, 0.0  ;;  %v449_v28 = vld [vmem:[%s621_s3] sm:$0xff]   ;;  %v451_v30 = vld [vmem:[%s621_s3 + $0x8] sm:$0xff]  }
   0x3   :  { %37 = vadd.xlane.f32.xlu0 %v36_v3  ;;  %43 = vadd.xlane.f32.xlu1 %v42_v4  ;;  %v45_v7 = vsel %vm35_vm0, %v32_v5, 0.0  ;;  %v450_v29 = vld [vmem:[%s622_s5] sm:$0xff]   ;;  %v452_v31 = vld [vmem:[%s622_s5 + $0x8] sm:$0xff]   ;;  %v453_v32 = vld [vmem:[%s621_s3 + $0x10] sm:$0xff]  }
   0x4   :  { %425 = vmatprep.subr.bf16.mxu0 %v449_v28  ;;  %437 = vmatprep.subr.bf16.mxu1 %v450_v29  ;;  %v454_v33 = vld [vmem:[%s622_s5 + $0x10] sm:$0xff]   ;;  %v455_v34 = vld [vmem:[%s621_s3 + $0x18] sm:$0xff]   ;;  %v370_v4 = vld [vmem:[%s623_s1] ss:$0 sm:$0xff] }
   0x5   :  { %426 = vmatpush3.bf16.msra.mxu0 %v449_v28  ;;  %438 = vmatpush3.bf16.msra.mxu1 %v450_v29  ;;  %v456_v35 = vld [vmem:[%s622_s5 + $0x18] sm:$0xff]  }
   0x6   :  { %427 = vmatprep.subr.bf16.mxu0 %v451_v30  ;;  %439 = vmatprep.subr.bf16.mxu1 %v452_v31 }
   0x7   :  { %40 = vadd.xlane.f32.xlu0 %v39_v6  ;;  %46 = vadd.xlane.f32.xlu1 %v45_v7 }
   0x9   :  { %428 = vmatpush3.bf16.msra.mxu0 %v451_v30  ;;  %440 = vmatpush3.bf16.msra.mxu1 %v452_v31 }
   0xa   :  { %429 = vmatprep.subr.bf16.mxu0 %v453_v32  ;;  %441 = vmatprep.subr.bf16.mxu1 %v454_v33 }
   0xd   :  { %430 = vmatpush3.bf16.msra.mxu0 %v453_v32  ;;  %442 = vmatpush3.bf16.msra.mxu1 %v454_v33 }
   0xe   :  { %431 = vmatprep.subr.bf16.mxu0 %v455_v34  ;;  %443 = vmatprep.subr.bf16.mxu1 %v456_v35 }
  0x11   :  { %432 = vmatpush3.bf16.msra.mxu0 %v455_v34  ;;  %444 = vmatpush3.bf16.msra.mxu1 %v456_v35 }
  0x90   :  { %v38_v8 = vpop.xlane.xlu0 %37  ;;  %v44_v9 = vpop.xlane.xlu1 %43 }
  0x91   :  { %v49_v10 = vmul.f32 0.015625, %v38_v8  ;;  %v51_v11 = vmul.f32 0.015625, %v44_v9 }
  0x93   :  { %v534_v12 = vsub.f32 %v29_v0, %v49_v10  ;;  %v536_v13 = vsub.f32 %v31_v1, %v51_v11  ;;  %v371_v10 = vld [vmem:[%s624_s2] ss:$0 sm:$0xff] }
  0x94   :  { %v41_v14 = vpop.xlane.xlu0 %40  ;;  %v47_v15 = vpop.xlane.xlu1 %46 }
  0x95   :  { %v50_v16 = vmul.f32 0.015625, %v41_v14  ;;  %v52_v17 = vmul.f32 0.015625, %v47_v15  ;;  %v57_v18 = vmul.f32 %v534_v12, %v534_v12  ;;  %v59_v19 = vmul.f32 %v536_v13, %v536_v13 }
  0x96   :  { %v111_v6 = vmul.f32 %v370_v4, %v534_v12  ;;  %v113_v14 = vmul.f32 %v370_v4, %v536_v13  ;;  %v372_v13 = vld [vmem:[%s625_s4] ss:$0 sm:$0xff] }
  0x97   :  { %v542_v20 = vsub.f32 %v30_v2, %v50_v16  ;;  %v544_v21 = vsub.f32 %v32_v5, %v52_v17  ;;  %v61_v22 = vsel %vm35_vm0, %v57_v18, 0.0  ;;  %v67_v25 = vsel %vm35_vm0, %v59_v19, 0.0 }
  0x98   :  { %62 = vadd.xlane.f32.xlu0 %v61_v22 }
  0x99   :  { %v58_v23 = vmul.f32 %v542_v20, %v542_v20  ;;  %v60_v24 = vmul.f32 %v544_v21, %v544_v21  ;;  %v112_v7 = vmul.f32 %v370_v4, %v542_v20  ;;  %v114_v16 = vmul.f32 %v370_v4, %v544_v21 }
  0x9b   :  { %v64_v26 = vsel %vm35_vm0, %v58_v23, 0.0  ;;  %v70_v27 = vsel %vm35_vm0, %v60_v24, 0.0 }
  0x9c   :  { %65 = vadd.xlane.f32.xlu1 %v64_v26  ;;  %68 = vadd.xlane.f32.xlu0 %v67_v25 }
  0xa0   :  { %71 = vadd.xlane.f32.xlu1 %v70_v27  ;;  %v379_v27 = vld [vmem:[%s626_s6] ss:$0 sm:$0xff] }
 0x125   :  { %v63_v36 = vpop.xlane.xlu0 %62 }
 0x126   :  { %v73_v37 = vmul.f32 0.015873017, %v63_v36 }
 0x128   :  { %457 = vrsqrt.f32 %v73_v37  ;;  %vm79_vm1 = vcmp.eq.f32.partialorder %v73_v37, inf  ;;  %v82_v46 = vand.u32 2147483648, %v73_v37  ;;  %vm81_vm2 = vcmp.eq.f32.partialorder %v73_v37, 0.0 }
 0x129   :  { %v66_v38 = vpop.xlane.xlu1 %65  ;;  %v69_v40 = vpop.xlane.xlu0 %68 }
 0x12a   :  { %v74_v39 = vmul.f32 0.015873017, %v66_v38  ;;  %v75_v41 = vmul.f32 0.015873017, %v69_v40 }
 0x12c   :  { %459 = vrsqrt.f32 %v74_v39  ;;  %vm86_vm3 = vcmp.eq.f32.partialorder %v74_v39, inf  ;;  %v89_v52 = vand.u32 2147483648, %v74_v39  ;;  %vm88_vm4 = vcmp.eq.f32.partialorder %v74_v39, 0.0 }
 0x12d   :  { %461 = vrsqrt.f32 %v75_v41  ;;  %v72_v42 = vpop.xlane.xlu1 %71  ;;  %vm93_vm5 = vcmp.eq.f32.partialorder %v75_v41, inf  ;;  %v96_v56 = vand.u32 2147483648, %v75_v41  ;;  %vm95_vm6 = vcmp.eq.f32.partialorder %v75_v41, 0.0 }
 0x12e   :  { %v76_v43 = vmul.f32 0.015873017, %v72_v42 }
 0x130   :  { %463 = vrsqrt.f32 %v76_v43  ;;  %vm100_vm7 = vcmp.eq.f32.partialorder %v76_v43, inf  ;;  %v103_v0 = vand.u32 2147483648, %v76_v43  ;;  %vm102_vm8 = vcmp.eq.f32.partialorder %v76_v43, 0.0 }
 0x132   :  { %v458_v44 = vpop.eup %457 }
 0x133   :  { %v78_v45 = vmul.f32 %v458_v44, %v73_v37 }
 0x135   :  { %v80_v48 = vsel %vm79_vm1, %v73_v37, %v78_v45 }
 0x136   :  { %v460_v47 = vpop.eup %459  ;;  %v83_v51 = vsel %vm81_vm2, %v82_v46, %v80_v48 }
 0x137   :  { %v462_v49 = vpop.eup %461  ;;  %v85_v50 = vmul.f32 %v460_v47, %v74_v39  ;;  %v115_v54 = vadd.f32 1e-06, %v83_v51 }
 0x138   :  { %v92_v53 = vmul.f32 %v462_v49, %v75_v41 }
 0x139   :  { %v87_v55 = vsel %vm86_vm3, %v74_v39, %v85_v50  ;;  %465 = vrcp.f32 %v115_v54 }
 0x13a   :  { %v464_v57 = vpop.eup %463  ;;  %v94_v58 = vsel %vm93_vm5, %v75_v41, %v92_v53  ;;  %v90_v59 = vsel %vm88_vm4, %v89_v52, %v87_v55 }
 0x13b   :  { %v97_v60 = vsel %vm95_vm6, %v96_v56, %v94_v58  ;;  %v99_v61 = vmul.f32 %v464_v57, %v76_v43  ;;  %v116_v62 = vadd.f32 1e-06, %v90_v59 }
 0x13c   :  { %v117_v63 = vadd.f32 1e-06, %v97_v60 }
 0x13d   :  { %v101_v1 = vsel %vm100_vm7, %v76_v43, %v99_v61  ;;  %467 = vrcp.f32 %v116_v62 }
 0x13e   :  { %469 = vrcp.f32 %v117_v63  ;;  %v104_v2 = vsel %vm102_vm8, %v103_v0, %v101_v1 }
 0x13f   :  { %v118_v3 = vadd.f32 1e-06, %v104_v2 }
 0x141   :  { %471 = vrcp.f32 %v118_v3 }
 0x143   :  { %v466_v5 = vpop.eup %465 }
 0x144   :  { %v123_v8 = vmul.f32 %v466_v5, %v111_v6 }
 0x146   :  { %v133_v17 = vadd.f32 %v371_v10, %v123_v8 }
 0x147   :  { %v468_v9 = vpop.eup %467 }
 0x148   :  { %v470_v11 = vpop.eup %469  ;;  %v124_v15 = vmul.f32 %v468_v9, %v112_v7 }
 0x149   :  { %v125_v19 = vmul.f32 %v470_v11, %v113_v14 }
 0x14a   :  { %v134_v18 = vadd.f32 %v371_v10, %v124_v15 }
 0x14b   :  { %v472_v22 = vpop.eup %471  ;;  %v135_v20 = vadd.f32 %v371_v10, %v125_v19 }
 0x14c   :  { %v137_v23 = vpack.c.bf16 %v134_v18, %v133_v17  ;;  %v126_v12 = vmul.f32 %v472_v22, %v114_v16 }
 0x14e   :  { %433 = vmatprep.mubr.msk.bf16.mxu0 %vm35_vm0, %v137_v23  ;;  %445 = vmatprep.mubr.msk.bf16.mxu1 %vm35_vm0, %v137_v23  ;;  %v136_v24 = vadd.f32 %v371_v10, %v126_v12 }
 0x150   :  { %v138_v25 = vpack.c.bf16 %v136_v24, %v135_v20 }
 0x152   :  { %434 = vmatmul.mubr.msk.bf16.vlgmr.msra.gmra.mrb[0].mxu0 %vm35_vm0, %v138_v25  ;;  %446 = vmatmul.mubr.msk.bf16.vlgmr.msra.gmra.mrb[0].mxu1 %vm35_vm0, %v138_v25 }
 0x225   :  { %v435_v21 = vpop.f32.mrb[0].mxu0  ;;  %v447_v26 = vpop.f32.mrb[0].mxu1 }
 0x226   :  { %v227_v28 = vadd.f32 %v435_v21, %v372_v13  ;;  %v218_v29 = vpop.f32.mrb[1].mxu0  ;;  %v306_v30 = vpop.f32.mrb[1].mxu1  ;;  %v315_v35 = vadd.f32 %v447_v26, %v379_v27 }
 0x227   :  { %v219_v31 = vadd.f32 %v372_v13, %v218_v29  ;;  %v436_v32 = vpop.f32.mrb[2].mxu0  ;;  %v448_v33 = vpop.f32.mrb[2].mxu1  ;;  %v307_v41 = vadd.f32 %v379_v27, %v306_v30 }
 0x228   :  { %v396_v34 = vpack.c.bf16 %v227_v28, %v227_v28  ;;  %v230_v36 = vadd.f32 %v436_v32, %v372_v13  ;;  %v318_v37 = vadd.f32 %v448_v33, %v379_v27  ;;  %v221_v38 = vpop.f32.mrb[3].mxu0  ;;  %v309_v39 = vpop.f32.mrb[3].mxu1 }
 0x229   :  { %v394_v40 = vpack.c.bf16 %v219_v31, %v219_v31  ;;  %v222_v42 = vadd.f32 %v372_v13, %v221_v38  ;;  %v310_v43 = vadd.f32 %v379_v27, %v309_v39 }
 0x22a   :  { %340 = vst.msk [vmem:[%s627_s7 + $0x8] sm:$0xf] %vm337_vm9, %v396_v34  ;;  %v397_v44 = vpack.c.bf16 %v230_v36, %v230_v36  ;;  %v410_v45 = vpack.c.bf16 %v318_v37, %v315_v35 }
 0x22b   :  { %338 = vst.msk [vmem:[%s627_s7] sm:$0xf] %vm337_vm9, %v394_v40  ;;  %v395_v46 = vpack.c.bf16 %v222_v42, %v222_v42  ;;  %v405_v47 = vpack.c.bf16 %v310_v43, %v307_v41 }
 0x22c   :  { %341 = vst.msk [vmem:[%s627_s7 + $0xc] sm:$0xf] %vm337_vm9, %v397_v44  ;;  %412 = vst [vmem:[%s628_s8 + $0x8] sm:$0xff] %v410_v45  }
 0x22d   :  { %339 = vst.msk [vmem:[%s627_s7 + $0x4] sm:$0xf] %vm337_vm9, %v395_v46  ;;  %406 = vst [vmem:[%s628_s8] sm:$0xff] %v405_v47  }

// kernel: aligned_frame_decoder_forward.35
= control target key start
LH: loop header
LB: loop body
LE: loop exit
PB: predicated region body
PF: predicated region fallthrough
CT: control target
= control target key end

     0   :  { %s1073_s9 = smov 0   ;;  %s1075_s10 = smov 0   ;;  %s1192_s0 = inlined_call_operand.vmem [shape: bf16[2,16,64], index: 0, kind: input, shape index: {}]   ;;  %s1193_s1 = inlined_call_operand.vmem [shape: bf16[2,16,128], index: 1, kind: input, shape index: {}]   ;;  %s1194_s2 = inlined_call_operand.vmem [shape: bf16[2,16,64], index: 2, kind: output, shape index: {}]  }
   0x1   :  { %s1077_s11 = smov 0  }
   0x2 LB: > { %s24_s12 = sadd.s32 1, %s1043_s10  ;;  %p853_p0 = scmp.ge.s32.totalorder %s1047_s11, 1  ;;  %s1047_s11 = sphi %s1077_s11, %s12_s11   ;;  %s1043_s10 = sphi %s1075_s10, %s1196_s10   ;;  %s1039_s9 = sphi %s1073_s9, %s1195_s9  }
   0x3   : > { %p26_p1 = scmp.ge.s32.totalorder %s24_s12, 2  ;;  %p143_p2 = scmp.lt.s32.totalorder %s1047_s11, 3 }
   0x5   : > { %s1198_s12 = smov (%p26_p1, %s24_s12), 0  ;;  %p144_p3 = pnand %p853_p0, %p143_p2 }
   0x6   : > { %p179_p4 = scmp.lt.s32.totalorder (!%p144_p3), %s1039_s9, 1  ;;  %v1049_v0 = vmov (!%p144_p3), 0.0   ;;  %vm1050_vm0 = vmmov (!%p144_p3), 0   ;;  %vm218_vm1 = vcmask (!%p144_p3), 130048   ;;  %s1051_s20 = smov (!%p144_p3), 112   ;;  %vm733_vm2 = vcmask (!%p144_p3), 261120  }
   0x7   : > { %147 = sbr.rel (%p144_p3) target bundleno = 1455 (0x5af), region = 28  ;;  %895 = vmatprep.subr.bf16.mxu0 (!%p144_p3), %v1049_v0  ;;  %897 = vmatprep.mubr.msk.bf16.mxu0 (!%p144_p3), %vm1050_vm0, %v1049_v0  ;;  %s1052_s21 = smov (!%p144_p3), 64   ;;  %vm736_vm3 = vcmask (!%p144_p3), 392192   ;;  %vm747_vm4 = vcmask (!%p144_p3), 519168  }
   0x8   : > { %901 = vmatprep.subr.bf16.mxu1 (!%p144_p3), %v1049_v0  ;;  %903 = vmatprep.mubr.msk.bf16.mxu1 (!%p144_p3), %vm1050_vm0, %v1049_v0  ;;  %s1053_s22 = smov (!%p144_p3), 96   ;;  %s1054_s23 = smov (!%p144_p3), 80  }
   0x9   : > { %s1055_s24 = smov (!%p144_p3), 48   ;;  %s1056_s25 = smov (!%p144_p3), 16  }
   0xa   : > { %s1057_s26 = smov (!%p144_p3), 32  }
   0xe   : > { %s1200_s9 = smov (!%p179_p4, %s1039_s9), 1 }
   0xf   : > { %s1097_s13 = sshll.u32 %s1200_s9, 3 }
  0x10   : > { %s192_s16 = scalar_lea.vmem %s1193_s1, %s1097_s13  ;;  %s186_s19 = scalar_lea.vmem %s1192_s0, %s1097_s13 }
  0x11   : > { %v1103_v1 = vld [vmem:[%s192_s16] sm:$0xff]   ;;  %s201_s29 = scalar_lea.vmem %s1194_s2, %s1097_s13 }
  0x12   : > { %v223_v2 = vsel %vm218_vm1, %v1103_v1, 0  ;;  %v992_v3 = vld [vmem:[%s186_s19] sm:$0xff]   ;;  %340 = vrot.lane.b32.xlu1 %v1103_v1, %s1051_s20 }
  0x13   : > { %896 = vmatpush3.bf16.xpose.msra.mxu0 %v223_v2 }
  0x14   : > { %913 = vmatprep.subr.bf16.mxu0 %v1049_v0 }
  0x1a   : > { %898 = vmatmul.mubr.msk.bf16.vlgmr.msra.gmra.mrb[0].mxu0 %vm218_vm1, %v992_v3 }
  0x1b   : > { %915 = vmatprep.mubr.msk.bf16.mxu0 %vm1050_vm0, %v1049_v0 }
  0x84   : > { %v341_v23 = vpop.permute.xlu1 %340 }
  0x85   : > { %v346_v32 = vsel %vm218_vm1, %v341_v23, 0 }
  0xed   : > { %v259_v4 = vpop.f32.mrb[0].mxu0 }
  0xee   : > { %v266_v5 = vmul.f32 0.25, %v259_v4  ;;  %v899_v6 = vpop.f32.mrb[1].mxu0 }
  0xef   : > { %v262_v7 = vpop.f32.mrb[2].mxu0 }
  0xf0   : > { %v267_v8 = vmul.f32 0.25, %v262_v7  ;;  %v900_v9 = vpop.f32.mrb[3].mxu0  ;;  %v268_v10 = vsel %vm218_vm1, %v266_v5, -inf }
  0xf1   : > { %269 = vmax.xlane.f32.xlu0 %v268_v10 }
  0xf2   : > { %v271_v11 = vsel %vm218_vm1, %v267_v8, -inf }
  0xf5   : > { %272 = vmax.xlane.f32.xlu0 %v271_v11 }
 0x10b   : > { %291 = vrot.lane.b32.xlu0 %v1103_v1, %s1052_s21 }
 0x10f   : > { %461 = vrot.lane.b32.xlu0 %v992_v3, %s1053_s22 }
 0x113   : > { %584 = vrot.lane.b32.xlu0 %v992_v3, %s1054_s23 }
 0x17e   : > { %v270_v12 = vpop.xlane.xlu0 %269 }
 0x17f   : > { %v274_v13 = vsub.f32 %v266_v5, %v270_v12 }
 0x181   : > { %v276_v14 = vmul.f32 1.442695, %v274_v13 }
 0x182   : > { %v273_v15 = vpop.xlane.xlu0 %272 }
 0x183   : > { %993 = vpow2.f32 %v276_v14  ;;  %v275_v16 = vsub.f32 %v267_v8, %v273_v15 }
 0x185   : > { %v278_v17 = vmul.f32 1.442695, %v275_v16 }
 0x186   : > { %v292_v22 = vpop.permute.xlu0 %291 }
 0x187   : > { %995 = vpow2.f32 %v278_v17  ;;  %902 = vmatpush3.bf16.msra.mxu1 %v292_v22 }
 0x188   : > { %907 = vmatprep.subr.bf16.mxu1 %v1049_v0 }
 0x18a   : > { %v462_v36 = vpop.permute.xlu0 %461 }
 0x18d   : > { %v994_v18 = vpop.eup %993 }
 0x18e   : > { %v280_v19 = vsel %vm218_vm1, %v994_v18, 0.0  ;;  %v585_v38 = vpop.permute.xlu0 %584 }
 0x18f   : > { %281 = vadd.xlane.f32.xlu1 %v280_v19 }
 0x191   : > { %v996_v20 = vpop.eup %995 }
 0x192   : > { %v283_v21 = vsel %vm218_vm1, %v996_v20, 0.0 }
 0x193   : > { %284 = vadd.xlane.f32.xlu1 %v283_v21 }
 0x1a4   : > { %338 = vrot.lane.b32.xlu1 %v992_v3, %s1051_s20 }
 0x1a8   : > { %463 = vrot.lane.b32.xlu1 %v1103_v1, %s1053_s22 }
 0x1ac   : > { %586 = vrot.lane.b32.xlu1 %v1103_v1, %s1054_s23 }
 0x21c   : > { %v282_v24 = vpop.xlane.xlu1 %281 }
 0x21d   : > { %997 = vrcp.f32 %v282_v24 }
 0x220   : > { %v285_v25 = vpop.xlane.xlu1 %284 }
 0x221   : > { %999 = vrcp.f32 %v285_v25 }
 0x224   : > { %v339_v30 = vpop.permute.xlu1 %338 }
 0x227   : > { %v998_v26 = vpop.eup %997 }
 0x228   : > { %v288_v28 = vmul.f32 %v998_v26, %v994_v18  ;;  %v464_v33 = vpop.permute.xlu1 %463 }
 0x229   : > { %v469_v34 = vsel %vm218_vm1, %v464_v33, 0 }
 0x22b   : > { %v1000_v27 = vpop.eup %999 }
 0x22c   : > { %v289_v29 = vmul.f32 %v1000_v27, %v996_v20  ;;  %v587_v35 = vpop.permute.xlu1 %586 }
 0x22d   : > { %v592_v37 = vsel %vm218_vm1, %v587_v35, 0 }
 0x22e   : > { %v290_v31 = vpack.c.bf16 %v289_v29, %v288_v28 }
 0x230   : > { %904 = vmatmul.mubr.msk.bf16.vlgmr.msra.gmra.mrb[0].mxu1 %vm218_vm1, %v290_v31 }
 0x231   : > { %908 = vmatpush3.bf16.xpose.msra.mxu1 %v346_v32  ;;  %909 = vmatprep.mubr.msk.bf16.mxu1 %vm1050_vm0, %v1049_v0 }
 0x232   : > { %919 = vmatprep.subr.bf16.mxu1 %v1049_v0 }
 0x238   : > { %910 = vmatmul.mubr.msk.bf16.vlgmr.msra.gmra.mrb[4].mxu1 %vm218_vm1, %v339_v30 }
 0x239   : > { %920 = vmatpush3.bf16.xpose.msra.mxu1 %v469_v34  ;;  %921 = vmatprep.mubr.msk.bf16.mxu1 %vm1050_vm0, %v1049_v0 }
 0x23a   : > { %931 = vmatprep.subr.bf16.mxu1 %v1049_v0 }
 0x240   : > { %922 = vmatmul.mubr.msk.bf16.vlgmr.msra.gmra.mrb[8].mxu1 %vm218_vm1, %v462_v36 }
 0x241   : > { %932 = vmatpush3.bf16.xpose.msra.mxu1 %v592_v37  ;;  %933 = vmatprep.mubr.msk.bf16.mxu1 %vm1050_vm0, %v1049_v0 }
 0x248   : > { %934 = vmatmul.mubr.msk.bf16.vlgmr.msra.gmra.mrb[12].mxu1 %vm218_vm1, %v585_v38 }
 0x303   : > { %v1141_v39 = vpop.f32.mrb[0].mxu1 }
 0x304   : > { %v905_v40 = vpop.f32.mrb[1].mxu1 }
 0x305   : > { %v1143_v41 = vpop.f32.mrb[2].mxu1 }
 0x306   : > { %v906_v42 = vpop.f32.mrb[3].mxu1 }
 0x30b   : > { %v382_v43 = vpop.f32.mrb[4].mxu1 }
 0x30c   : > { %v389_v44 = vmul.f32 0.25, %v382_v43  ;;  %v911_v45 = vpop.f32.mrb[5].mxu1 }
 0x30d   : > { %v385_v46 = vpop.f32.mrb[6].mxu1 }
 0x30e   : > { %v390_v47 = vmul.f32 0.25, %v385_v46  ;;  %v912_v48 = vpop.f32.mrb[7].mxu1  ;;  %v391_v49 = vsel %vm218_vm1, %v389_v44, -inf }
 0x30f   : > { %392 = vmax.xlane.f32.xlu1 %v391_v49 }
 0x310   : > { %v394_v50 = vsel %vm218_vm1, %v390_v47, -inf }
 0x311   : > { %395 = vmax.xlane.f32.xlu0 %v394_v50 }
 0x313   : > { %v505_v51 = vpop.f32.mrb[8].mxu1 }
 0x314   : > { %v512_v52 = vmul.f32 0.25, %v505_v51  ;;  %v923_v53 = vpop.f32.mrb[9].mxu1 }
 0x315   : > { %v508_v54 = vpop.f32.mrb[10].mxu1 }
 0x316   : > { %v513_v55 = vmul.f32 0.25, %v508_v54  ;;  %v924_v56 = vpop.f32.mrb[11].mxu1  ;;  %v514_v57 = vsel %vm218_vm1, %v512_v52, -inf }
 0x317   : > { %515 = vmax.xlane.f32.xlu0 %v514_v57 }
 0x318   : > { %v517_v58 = vsel %vm218_vm1, %v513_v55, -inf }
 0x31b   : > { %518 = vmax.xlane.f32.xlu0 %v517_v58  ;;  %v628_v59 = vpop.f32.mrb[12].mxu1 }
 0x31c   : > { %v635_v60 = vmul.f32 0.25, %v628_v59  ;;  %v935_v61 = vpop.f32.mrb[13].mxu1 }
 0x31d   : > { %v631_v62 = vpop.f32.mrb[14].mxu1 }
 0x31e   : > { %v636_v63 = vmul.f32 0.25, %v631_v62  ;;  %v936_v2 = vpop.f32.mrb[15].mxu1  ;;  %v637_v3 = vsel %vm218_vm1, %v635_v60, -inf }
 0x31f   : > { %638 = vmax.xlane.f32.xlu1 %v637_v3 }
 0x320   : > { %v640_v4 = vsel %vm218_vm1, %v636_v63, -inf }
 0x321   : > { %641 = vmax.xlane.f32.xlu0 %v640_v4 }
 0x330   : > { %414 = vrot.lane.b32.xlu1 %v1103_v1, %s1055_s24 }
 0x39c   : > { %v393_v5 = vpop.xlane.xlu1 %392 }
 0x39d   : > { %v397_v6 = vsub.f32 %v389_v44, %v393_v5 }
 0x39e   : > { %v396_v7 = vpop.xlane.xlu0 %395 }
 0x39f   : > { %v399_v8 = vmul.f32 1.442695, %v397_v6  ;;  %v398_v9 = vsub.f32 %v390_v47, %v396_v7 }
 0x3a1   : > { %1001 = vpow2.f32 %v399_v8  ;;  %v401_v10 = vmul.f32 1.442695, %v398_v9 }
 0x3a3   : > { %1003 = vpow2.f32 %v401_v10 }
 0x3a4   : > { %v516_v11 = vpop.xlane.xlu0 %515 }
 0x3a5   : > { %v520_v12 = vsub.f32 %v512_v52, %v516_v11 }
 0x3a7   : > { %v522_v13 = vmul.f32 1.442695, %v520_v12 }
 0x3a8   : > { %v519_v14 = vpop.xlane.xlu0 %518 }
 0x3a9   : > { %1005 = vpow2.f32 %v522_v13  ;;  %v521_v15 = vsub.f32 %v513_v55, %v519_v14 }
 0x3ab   : > { %v1002_v16 = vpop.eup %1001  ;;  %v524_v17 = vmul.f32 1.442695, %v521_v15 }
 0x3ac   : > { %v639_v18 = vpop.xlane.xlu1 %638  ;;  %v403_v19 = vsel %vm218_vm1, %v1002_v16, 0.0 }
 0x3ad   : > { %v1004_v20 = vpop.eup %1003  ;;  %1007 = vpow2.f32 %v524_v17  ;;  %v643_v21 = vsub.f32 %v635_v60, %v639_v18  ;;  %404 = vadd.xlane.f32.xlu1 %v403_v19 }
 0x3ae   : > { %v642_v22 = vpop.xlane.xlu0 %641  ;;  %v406_v23 = vsel %vm218_vm1, %v1004_v20, 0.0 }
 0x3af   : > { %v645_v24 = vmul.f32 1.442695, %v643_v21  ;;  %v644_v25 = vsub.f32 %v636_v63, %v642_v22  ;;  %407 = vadd.xlane.f32.xlu0 %v406_v23 }
 0x3b0   : > { %v415_v26 = vpop.permute.xlu1 %414 }
 0x3b1   : > { %1009 = vpow2.f32 %v645_v24  ;;  %v647_v27 = vmul.f32 1.442695, %v644_v25  ;;  %914 = vmatpush3.bf16.msra.mxu0 %v415_v26 }
 0x3b2   : > { %925 = vmatprep.subr.bf16.mxu0 %v1049_v0 }
 0x3b3   : > { %v1006_v28 = vpop.eup %1005  ;;  %1011 = vpow2.f32 %v647_v27 }
 0x3b4   : > { %v526_v29 = vsel %vm218_vm1, %v1006_v28, 0.0 }
 0x3b5   : > { %527 = vadd.xlane.f32.xlu1 %v526_v29 }
 0x3b7   : > { %v1008_v30 = vpop.eup %1007 }
 0x3b8   : > { %v529_v31 = vsel %vm218_vm1, %v1008_v30, 0.0 }
 0x3b9   : > { %530 = vadd.xlane.f32.xlu0 %v529_v31 }
 0x3bb   : > { %v1010_v32 = vpop.eup %1009 }
 0x3bc   : > { %v649_v33 = vsel %vm218_vm1, %v1010_v32, 0.0 }
 0x3bd   : > { %v1012_v34 = vpop.eup %1011  ;;  %650 = vadd.xlane.f32.xlu1 %v649_v33 }
 0x3be   : > { %v652_v35 = vsel %vm218_vm1, %v1012_v34, 0.0 }
 0x3bf   : > { %653 = vadd.xlane.f32.xlu0 %v652_v35 }
 0x3ce   : > { %660 = vrot.lane.b32.xlu1 %v1103_v1, %s1056_s25 }
 0x3d5   : > { %537 = vrot.lane.b32.xlu0 %v1103_v1, %s1057_s26 }
 0x43a   : > { %v405_v36 = vpop.xlane.xlu1 %404 }
 0x43b   : > { %1013 = vrcp.f32 %v405_v36 }
 0x43c   : > { %v408_v37 = vpop.xlane.xlu0 %407 }
 0x43d   : > { %1015 = vrcp.f32 %v408_v37 }
 0x442   : > { %v528_v38 = vpop.xlane.xlu1 %527 }
 0x443   : > { %1017 = vrcp.f32 %v528_v38 }
 0x445   : > { %v1014_v40 = vpop.eup %1013 }
 0x446   : > { %v531_v42 = vpop.xlane.xlu0 %530  ;;  %v411_v44 = vmul.f32 %v1014_v40, %v1002_v16 }
 0x447   : > { %v1016_v43 = vpop.eup %1015  ;;  %1019 = vrcp.f32 %v531_v42 }
 0x448   : > { %v412_v45 = vmul.f32 %v1016_v43, %v1004_v20 }
 0x44a   : > { %v651_v46 = vpop.xlane.xlu1 %650  ;;  %v413_v47 = vpack.c.bf16 %v412_v45, %v411_v44 }
 0x44b   : > { %1021 = vrcp.f32 %v651_v46 }
 0x44c   : > { %916 = vmatmul.mubr.msk.bf16.vlgmr.msra.gmra.mrb[4].mxu0 %vm218_vm1, %v413_v47  ;;  %v654_v48 = vpop.xlane.xlu0 %653 }
 0x44d   : > { %1023 = vrcp.f32 %v654_v48  ;;  %927 = vmatprep.mubr.msk.bf16.mxu0 %vm1050_vm0, %v1049_v0  ;;  %v1018_v1 = vpop.eup %1017 }
 0x44e   : > { %v534_v51 = vmul.f32 %v1018_v1, %v1006_v28  ;;  %v661_v54 = vpop.permute.xlu1 %660 }
 0x450   : > { %v538_v49 = vpop.permute.xlu0 %537 }
 0x451   : > { %v1020_v50 = vpop.eup %1019  ;;  %926 = vmatpush3.bf16.msra.mxu0 %v538_v49 }
 0x452   : > { %v535_v52 = vmul.f32 %v1020_v50, %v1008_v30  ;;  %937 = vmatprep.subr.bf16.mxu0 %v1049_v0 }
 0x454   : > { %v536_v53 = vpack.c.bf16 %v535_v52, %v534_v51 }
 0x455   : > { %v1022_v55 = vpop.eup %1021 }
 0x456   : > { %928 = vmatmul.mubr.msk.bf16.vlgmr.msra.gmra.mrb[8].mxu0 %vm218_vm1, %v536_v53  ;;  %v657_v58 = vmul.f32 %v1022_v55, %v1010_v32 }
 0x457   : > { %v1024_v56 = vpop.eup %1023  ;;  %938 = vmatpush3.bf16.msra.mxu0 %v661_v54  ;;  %939 = vmatprep.mubr.msk.bf16.mxu0 %vm1050_vm0, %v1049_v0 }
 0x458   : > { %v658_v57 = vmul.f32 %v1024_v56, %v1012_v34 }
 0x45a   : > { %v659_v59 = vpack.c.bf16 %v658_v57, %v657_v58 }
 0x45e   : > { %940 = vmatmul.mubr.msk.bf16.vlgmr.msra.gmra.mrb[12].mxu0 %vm218_vm1, %v659_v59 }
 0x51f   : > { %v454_v60 = vpop.f32.mrb[4].mxu0 }
 0x520   : > { %v917_v61 = vpop.f32.mrb[5].mxu0 }
 0x521   : > { %v457_v62 = vpop.f32.mrb[6].mxu0 }
 0x522   : > { %v976_v63 = vpack.i.bf16 %v457_v62, %v454_v60  ;;  %v918_v2 = vpop.f32.mrb[7].mxu0 }
 0x524   : > { %977 = vrot.lane.b32.xlu1 %v976_v63, %s1056_s25 }
 0x529   : > { %v577_v3 = vpop.f32.mrb[8].mxu0 }
 0x52a   : > { %v929_v4 = vpop.f32.mrb[9].mxu0 }
 0x52b   : > { %v580_v5 = vpop.f32.mrb[10].mxu0 }
 0x52c   : > { %v981_v6 = vpack.i.bf16 %v580_v5, %v577_v3  ;;  %v930_v7 = vpop.f32.mrb[11].mxu0 }
 0x52e   : > { %982 = vrot.lane.b32.xlu1 %v981_v6, %s1057_s26 }
 0x531   : > { %v700_v0 = vpop.f32.mrb[12].mxu0 }
 0x532   : > { %v941_v8 = vpop.f32.mrb[13].mxu0 }
 0x533   : > { %v703_v9 = vpop.f32.mrb[14].mxu0 }
 0x534   : > { %v986_v10 = vpack.i.bf16 %v703_v9, %v700_v0  ;;  %v942_v11 = vpop.f32.mrb[15].mxu0 }
 0x536   : > { %987 = vrot.lane.b32.xlu0 %v986_v10, %s1055_s24 }
 0x596   : > { %v978_v12 = vpop.permute.xlu1 %977 }
 0x597   : > { %v980_v14 = vunpack.i.h.bf16 %v978_v12  ;;  %v979_v15 = vunpack.i.l.bf16 %v978_v12 }
 0x599   : > { %v732_v19 = vsel %vm218_vm1, %v1143_v41, %v980_v14  ;;  %v731_v20 = vsel %vm218_vm1, %v1141_v39, %v979_v15 }
 0x5a0   : > { %v983_v13 = vpop.permute.xlu1 %982 }
 0x5a1   : > { %v985_v16 = vunpack.i.h.bf16 %v983_v13  ;;  %v984_v17 = vunpack.i.l.bf16 %v983_v13 }
 0x5a3   : > { %v735_v23 = vsel %vm733_vm2, %v732_v19, %v985_v16  ;;  %v734_v24 = vsel %vm733_vm2, %v731_v20, %v984_v17 }
 0x5a8   : > { %v988_v18 = vpop.permute.xlu0 %987 }
 0x5a9   : > { %v990_v21 = vunpack.i.h.bf16 %v988_v18  ;;  %v989_v22 = vunpack.i.l.bf16 %v988_v18 }
 0x5ab   : > { %v738_v25 = vsel %vm736_vm3, %v735_v23, %v990_v21  ;;  %v737_v26 = vsel %vm736_vm3, %v734_v24, %v989_v22 }
 0x5ac   : > { %v878_v27 = vpack.c.bf16 %v738_v25, %v738_v25  ;;  %v877_v28 = vpack.c.bf16 %v737_v26, %v737_v26 }
 0x5ae   : > { %749 = vst.msk [vmem:[%s201_s29 + $0x4] sm:$0xf] %vm747_vm4, %v878_v27  ;;  %748 = vst.msk [vmem:[%s201_s29] sm:$0xf] %vm747_vm4, %v877_v28 }
 0x5af PF: > { %s12_s11 = sadd.s32 1, %s1047_s11   ;;  %s1195_s9 = smov %s1043_s10 }
 0x5b0   : > { %p9_p5 = scmp.ge.s32.totalorder %s12_s11, 4   ;;  %s1196_s10 = smov %s1198_s12 }
 0x5b2   :  { %11 = sbr.rel (!%p9_p5) target bundleno = 2 (0x2), region = 61 }

// kernel: aligned_frame_decoder_forward.38
= control target key start
LH: loop header
LB: loop body
LE: loop exit
PB: predicated region body
PF: predicated region fallthrough
CT: control target
= control target key end

     0   :  { %vm20_vm0 = vcmask 523264   ;;  %s230_s0 = inlined_call_operand.vmem [shape: f32[32,64], index: 0, kind: input, shape index: {}]   ;;  %s231_s1 = inlined_call_operand.vmem [shape: f32[1,64], index: 1, kind: input, shape index: {}]   ;;  %s232_s2 = inlined_call_operand.vmem [shape: f32[1,64], index: 2, kind: input, shape index: {}]   ;;  %s233_s3 = inlined_call_operand.vmem [shape: f32[32,64], index: 3, kind: output, shape index: {}]  }
   0x1   :  { %v14_v0 = vld [vmem:[%s230_s0] sm:$0xff]  ;;  %v16_v1 = vld [vmem:[%s230_s0 + $0x10] sm:$0xff]  ;;  %v15_v2 = vld [vmem:[%s230_s0 + $0x8] sm:$0xff] }
   0x2   :  { %v21_v3 = vsel %vm20_vm0, %v14_v0, 0.0  ;;  %v27_v4 = vsel %vm20_vm0, %v16_v1, 0.0  ;;  %v17_v5 = vld [vmem:[%s230_s0 + $0x18] sm:$0xff]  ;;  %v24_v6 = vsel %vm20_vm0, %v15_v2, 0.0  ;;  %v130_v60 = vld [vmem:[%s231_s1] ss:$0 sm:$0xff] }
   0x3   :  { %22 = vadd.xlane.f32.xlu0 %v21_v3  ;;  %28 = vadd.xlane.f32.xlu1 %v27_v4  ;;  %v30_v7 = vsel %vm20_vm0, %v17_v5, 0.0  ;;  %v131_v63 = vld [vmem:[%s232_s2] ss:$0 sm:$0xff] }
   0x7   :  { %25 = vadd.xlane.f32.xlu0 %v24_v6  ;;  %31 = vadd.xlane.f32.xlu1 %v30_v7 }
  0x90   :  { %v23_v8 = vpop.xlane.xlu0 %22  ;;  %v29_v9 = vpop.xlane.xlu1 %28 }
  0x91   :  { %v34_v10 = vmul.f32 0.015625, %v23_v8  ;;  %v36_v11 = vmul.f32 0.015625, %v29_v9 }
  0x93   :  { %v184_v12 = vsub.f32 %v14_v0, %v34_v10  ;;  %v186_v13 = vsub.f32 %v16_v1, %v36_v11 }
  0x94   :  { %v26_v14 = vpop.xlane.xlu0 %25  ;;  %v32_v15 = vpop.xlane.xlu1 %31 }
  0x95   :  { %v35_v16 = vmul.f32 0.015625, %v26_v14  ;;  %v37_v17 = vmul.f32 0.015625, %v32_v15  ;;  %v42_v18 = vmul.f32 %v184_v12, %v184_v12  ;;  %v44_v19 = vmul.f32 %v186_v13, %v186_v13 }
  0x96   :  { %v96_v61 = vmul.f32 %v130_v60, %v184_v12  ;;  %v98_v3 = vmul.f32 %v130_v60, %v186_v13 }
  0x97   :  { %v192_v20 = vsub.f32 %v15_v2, %v35_v16  ;;  %v194_v21 = vsub.f32 %v17_v5, %v37_v17  ;;  %v46_v22 = vsel %vm20_vm0, %v42_v18, 0.0  ;;  %v52_v25 = vsel %vm20_vm0, %v44_v19, 0.0 }
  0x98   :  { %47 = vadd.xlane.f32.xlu0 %v46_v22 }
  0x99   :  { %v43_v23 = vmul.f32 %v192_v20, %v192_v20  ;;  %v45_v24 = vmul.f32 %v194_v21, %v194_v21  ;;  %v97_v1 = vmul.f32 %v130_v60, %v192_v20  ;;  %v99_v8 = vmul.f32 %v130_v60, %v194_v21 }
  0x9b   :  { %v49_v26 = vsel %vm20_vm0, %v43_v23, 0.0  ;;  %v55_v27 = vsel %vm20_vm0, %v45_v24, 0.0 }
  0x9c   :  { %50 = vadd.xlane.f32.xlu1 %v49_v26  ;;  %53 = vadd.xlane.f32.xlu0 %v52_v25 }
  0xa0   :  { %56 = vadd.xlane.f32.xlu1 %v55_v27 }
 0x125   :  { %v48_v28 = vpop.xlane.xlu0 %47 }
 0x126   :  { %v58_v29 = vmul.f32 0.015873017, %v48_v28 }
 0x128   :  { %132 = vrsqrt.f32 %v58_v29  ;;  %vm64_vm1 = vcmp.eq.f32.partialorder %v58_v29, inf  ;;  %v67_v38 = vand.u32 2147483648, %v58_v29  ;;  %vm66_vm2 = vcmp.eq.f32.partialorder %v58_v29, 0.0 }
 0x129   :  { %v51_v30 = vpop.xlane.xlu1 %50  ;;  %v54_v32 = vpop.xlane.xlu0 %53 }
 0x12a   :  { %v59_v31 = vmul.f32 0.015873017, %v51_v30  ;;  %v60_v33 = vmul.f32 0.015873017, %v54_v32 }
 0x12c   :  { %134 = vrsqrt.f32 %v59_v31  ;;  %vm71_vm3 = vcmp.eq.f32.partialorder %v59_v31, inf  ;;  %v74_v45 = vand.u32 2147483648, %v59_v31  ;;  %vm73_vm4 = vcmp.eq.f32.partialorder %v59_v31, 0.0 }
 0x12d   :  { %136 = vrsqrt.f32 %v60_v33  ;;  %v57_v34 = vpop.xlane.xlu1 %56  ;;  %vm78_vm5 = vcmp.eq.f32.partialorder %v60_v33, inf  ;;  %v81_v48 = vand.u32 2147483648, %v60_v33  ;;  %vm80_vm6 = vcmp.eq.f32.partialorder %v60_v33, 0.0 }
 0x12e   :  { %v61_v35 = vmul.f32 0.015873017, %v57_v34 }
 0x130   :  { %138 = vrsqrt.f32 %v61_v35  ;;  %vm85_vm7 = vcmp.eq.f32.partialorder %v61_v35, inf  ;;  %v88_v56 = vand.u32 2147483648, %v61_v35  ;;  %vm87_vm8 = vcmp.eq.f32.partialorder %v61_v35, 0.0 }
 0x132   :  { %v133_v36 = vpop.eup %132 }
 0x133   :  { %v63_v37 = vmul.f32 %v133_v36, %v58_v29 }
 0x135   :  { %v65_v40 = vsel %vm64_vm1, %v58_v29, %v63_v37 }
 0x136   :  { %v135_v39 = vpop.eup %134  ;;  %v68_v42 = vsel %vm66_vm2, %v67_v38, %v65_v40 }
 0x137   :  { %v137_v41 = vpop.eup %136  ;;  %v70_v43 = vmul.f32 %v135_v39, %v59_v31  ;;  %v100_v44 = vadd.f32 1e-06, %v68_v42 }
 0x138   :  { %v77_v46 = vmul.f32 %v137_v41, %v60_v33 }
 0x139   :  { %v72_v47 = vsel %vm71_vm3, %v59_v31, %v70_v43  ;;  %140 = vrcp.f32 %v100_v44 }
 0x13a   :  { %v139_v49 = vpop.eup %138  ;;  %v75_v50 = vsel %vm73_vm4, %v74_v45, %v72_v47  ;;  %v79_v51 = vsel %vm78_vm5, %v60_v33, %v77_v46 }
 0x13b   :  { %v101_v52 = vadd.f32 1e-06, %v75_v50  ;;  %v82_v53 = vsel %vm80_vm6, %v81_v48, %v79_v51  ;;  %v84_v54 = vmul.f32 %v139_v49, %v61_v35 }
 0x13c   :  { %v102_v55 = vadd.f32 1e-06, %v82_v53 }
 0x13d   :  { %142 = vrcp.f32 %v101_v52  ;;  %v86_v57 = vsel %vm85_vm7, %v61_v35, %v84_v54 }
 0x13e   :  { %144 = vrcp.f32 %v102_v55  ;;  %v89_v58 = vsel %vm87_vm8, %v88_v56, %v86_v57 }
 0x13f   :  { %v103_v59 = vadd.f32 1e-06, %v89_v58 }
 0x141   :  { %146 = vrcp.f32 %v103_v59 }
 0x143   :  { %v141_v62 = vpop.eup %140 }
 0x144   :  { %v108_v0 = vmul.f32 %v141_v62, %v96_v61 }
 0x146   :  { %v118_v4 = vadd.f32 %v131_v63, %v108_v0 }
 0x147   :  { %v143_v2 = vpop.eup %142 }
 0x148   :  { %v145_v5 = vpop.eup %144  ;;  %v109_v6 = vmul.f32 %v143_v2, %v97_v1  ;;  %122 = vst.msk [vmem:[%s233_s3] sm:$0xff] %vm20_vm0, %v118_v4 }
 0x149   :  { %v110_v7 = vmul.f32 %v145_v5, %v98_v3 }
 0x14a   :  { %v119_v9 = vadd.f32 %v131_v63, %v109_v6 }
 0x14b   :  { %v147_v10 = vpop.eup %146  ;;  %v120_v11 = vadd.f32 %v131_v63, %v110_v7 }
 0x14c   :  { %123 = vst.msk [vmem:[%s233_s3 + $0x8] sm:$0xff] %vm20_vm0, %v119_v9  ;;  %v111_v12 = vmul.f32 %v147_v10, %v99_v8 }
 0x14d   :  { %124 = vst.msk [vmem:[%s233_s3 + $0x10] sm:$0xff] %vm20_vm0, %v120_v11 }
 0x14e   :  { %v121_v13 = vadd.f32 %v131_v63, %v111_v12 }
 0x150   :  { %125 = vst.msk [vmem:[%s233_s3 + $0x18] sm:$0xff] %vm20_vm0, %v121_v13 }

// kernel: aligned_frame_decoder_forward.43
= control target key start
LH: loop header
LB: loop body
LE: loop exit
PB: predicated region body
PF: predicated region fallthrough
CT: control target
= control target key end

     0   :  { %vm60_vm0 = vcmask 523264   ;;  %s241_s1 = inlined_call_operand.vmem [shape: bf16[64,128], index: 1, kind: input, shape index: {}]   ;;  %s242_s0 = inlined_call_operand.vmem [shape: f32[32,64], index: 0, kind: input, shape index: {}]   ;;  %s243_s2 = inlined_call_operand.vmem [shape: f32[1,128], index: 2, kind: input, shape index: {}]   ;;  %s244_s3 = inlined_call_operand.vmem [shape: bf16[32,128], index: 3, kind: output, shape index: {}]  }
   0x1   :  { %v184_v0 = vld [vmem:[%s241_s1] sm:$0xff]   ;;  %v185_v1 = vld [vmem:[%s241_s1 + $0x8] sm:$0xff]   ;;  %v186_v2 = vld [vmem:[%s241_s1 + $0x10] sm:$0xff]  }
   0x2   :  { %172 = vmatprep.subr.bf16.mxu0 %v184_v0  ;;  %v15_v3 = vld [vmem:[%s242_s0] sm:$0xff]  ;;  %v16_v4 = vld [vmem:[%s242_s0 + $0x8] sm:$0xff]  ;;  %v187_v6 = vld [vmem:[%s241_s1 + $0x18] sm:$0xff]  }
   0x3   :  { %173 = vmatpush3.bf16.msra.mxu0 %v184_v0  ;;  %v19_v5 = vpack.c.bf16 %v16_v4, %v15_v3  ;;  %v17_v7 = vld [vmem:[%s242_s0 + $0x10] sm:$0xff]  ;;  %v18_v8 = vld [vmem:[%s242_s0 + $0x18] sm:$0xff]  ;;  %v140_v11 = vld [vmem:[%s243_s2] ss:$0 sm:$0xff] }
   0x4   :  { %174 = vmatprep.subr.bf16.mxu0 %v185_v1  ;;  %v20_v9 = vpack.c.bf16 %v18_v8, %v17_v7 }
   0x5   :  { %180 = vmatprep.mubr.msk.bf16.mxu0 %vm60_vm0, %v19_v5 }
   0x7   :  { %175 = vmatpush3.bf16.msra.mxu0 %v185_v1 }
   0x8   :  { %176 = vmatprep.subr.bf16.mxu0 %v186_v2 }
   0xb   :  { %177 = vmatpush3.bf16.msra.mxu0 %v186_v2 }
   0xc   :  { %178 = vmatprep.subr.bf16.mxu0 %v187_v6 }
   0xf   :  { %179 = vmatpush3.bf16.msra.mxu0 %v187_v6 }
  0x12   :  { %181 = vmatmul.mubr.msk.bf16.vlgmr.msra.gmra.mrb[0].mxu0 %vm60_vm0, %v20_v9 }
  0xe5   :  { %v182_v10 = vpop.f32.mrb[0].mxu0 }
  0xe6   :  { %v101_v12 = vpop.f32.mrb[1].mxu0  ;;  %v110_v14 = vadd.f32 %v182_v10, %v140_v11 }
  0xe7   :  { %v183_v13 = vpop.f32.mrb[2].mxu0  ;;  %v102_v17 = vadd.f32 %v140_v11, %v101_v12 }
  0xe8   :  { %v113_v15 = vadd.f32 %v183_v13, %v140_v11  ;;  %v104_v16 = vpop.f32.mrb[3].mxu0 }
  0xe9   :  { %v105_v18 = vadd.f32 %v140_v11, %v104_v16 }
  0xea   :  { %v163_v19 = vpack.c.bf16 %v113_v15, %v110_v14 }
  0xeb   :  { %v158_v20 = vpack.c.bf16 %v105_v18, %v102_v17 }
  0xec   :  { %165 = vst [vmem:[%s244_s3 + $0x8] sm:$0xff] %v163_v19  }
  0xed   :  { %159 = vst [vmem:[%s244_s3] sm:$0xff] %v158_v20  }

// kernel: aligned_frame_decoder_forward.37
= control target key start
LH: loop header
LB: loop body
LE: loop exit
PB: predicated region body
PF: predicated region fallthrough
CT: control target
= control target key end

     0   :  { %vm33_vm0 = vcmask 523264   ;;  %s629_s0 = inlined_call_operand.vmem [shape: f32[32,64], index: 0, kind: input, shape index: {}]   ;;  %s630_s3 = inlined_call_operand.vmem [shape: bf16[64,128], index: 3, kind: input, shape index: {}]   ;;  %s631_s5 = inlined_call_operand.vmem [shape: bf16[128,64], index: 5, kind: input, shape index: {}]   ;;  %s632_s1 = inlined_call_operand.vmem [shape: f32[1,64], index: 1, kind: input, shape index: {}]   ;;  %s633_s2 = inlined_call_operand.vmem [shape: f32[1,64], index: 2, kind: input, shape index: {}]   ;;  %s634_s4 = inlined_call_operand.vmem [shape: f32[1,128], index: 4, kind: input, shape index: {}]   ;;  %s635_s6 = inlined_call_operand.vmem [shape: f32[1,64], index: 6, kind: input, shape index: {}]   ;;  %s636_s7 = inlined_call_operand.vmem [shape: f32[32,64], index: 7, kind: output, shape index: {}]  }
   0x1   :  { %v506_v0 = vld [vmem:[%s629_s0] sm:$0xff]  ;;  %v511_v1 = vld [vmem:[%s629_s0 + $0x10] sm:$0xff]  ;;  %v516_v2 = vld [vmem:[%s629_s0 + $0x8] sm:$0xff] }
   0x2   :  { %v34_v3 = vsel %vm33_vm0, %v506_v0, 0.0  ;;  %v40_v4 = vsel %vm33_vm0, %v511_v1, 0.0  ;;  %v525_v5 = vld [vmem:[%s629_s0 + $0x18] sm:$0xff]  ;;  %v37_v6 = vsel %vm33_vm0, %v516_v2, 0.0  ;;  %v435_v28 = vld [vmem:[%s630_s3] sm:$0xff]   ;;  %v436_v29 = vld [vmem:[%s630_s3 + $0x8] sm:$0xff]  }
   0x3   :  { %35 = vadd.xlane.f32.xlu0 %v34_v3  ;;  %41 = vadd.xlane.f32.xlu1 %v40_v4  ;;  %v43_v7 = vsel %vm33_vm0, %v525_v5, 0.0  ;;  %v437_v30 = vld [vmem:[%s630_s3 + $0x10] sm:$0xff]   ;;  %v438_v31 = vld [vmem:[%s630_s3 + $0x18] sm:$0xff]   ;;  %v439_v32 = vld [vmem:[%s631_s5] sm:$0xff]  }
   0x4   :  { %403 = vmatprep.subr.bf16.mxu0 %v435_v28  ;;  %v440_v33 = vld [vmem:[%s631_s5 + $0x8] sm:$0xff]   ;;  %415 = vmatprep.subr.bf16.mxu1 %v439_v32  ;;  %v441_v34 = vld [vmem:[%s631_s5 + $0x10] sm:$0xff]   ;;  %v442_v35 = vld [vmem:[%s631_s5 + $0x18] sm:$0xff]  }
   0x5   :  { %404 = vmatpush3.bf16.msra.mxu0 %v435_v28  ;;  %416 = vmatpush3.bf16.msra.mxu1 %v439_v32  ;;  %v443_v36 = vld [vmem:[%s631_s5 + $0x20] sm:$0xff]   ;;  %v444_v37 = vld [vmem:[%s631_s5 + $0x28] sm:$0xff]  }
   0x6   :  { %405 = vmatprep.subr.bf16.mxu0 %v436_v29  ;;  %417 = vmatprep.subr.bf16.mxu1 %v440_v33  ;;  %v371_v32 = vld [vmem:[%s634_s4] ss:$0 sm:$0xff] }
   0x7   :  { %38 = vadd.xlane.f32.xlu0 %v37_v6  ;;  %44 = vadd.xlane.f32.xlu1 %v43_v7 }
   0x9   :  { %406 = vmatpush3.bf16.msra.mxu0 %v436_v29  ;;  %418 = vmatpush3.bf16.msra.mxu1 %v440_v33 }
   0xa   :  { %407 = vmatprep.subr.bf16.mxu0 %v437_v30  ;;  %419 = vmatprep.subr.bf16.mxu1 %v441_v34 }
   0xd   :  { %408 = vmatpush3.bf16.msra.mxu0 %v437_v30  ;;  %420 = vmatpush3.bf16.msra.mxu1 %v441_v34 }
   0xe   :  { %409 = vmatprep.subr.bf16.mxu0 %v438_v31  ;;  %421 = vmatprep.subr.bf16.mxu1 %v442_v35 }
  0x11   :  { %410 = vmatpush3.bf16.msra.mxu0 %v438_v31  ;;  %422 = vmatpush3.bf16.msra.mxu1 %v442_v35 }
  0x12   :  { %423 = vmatprep.subr.bf16.mxu1 %v443_v36 }
  0x15   :  { %424 = vmatpush3.bf16.msra.mxu1 %v443_v36 }
  0x16   :  { %425 = vmatprep.subr.bf16.mxu1 %v444_v37 }
  0x19   :  { %426 = vmatpush3.bf16.msra.mxu1 %v444_v37 }
  0x90   :  { %v36_v8 = vpop.xlane.xlu0 %35  ;;  %v42_v9 = vpop.xlane.xlu1 %41 }
  0x91   :  { %v47_v10 = vmul.f32 0.015625, %v36_v8  ;;  %v49_v11 = vmul.f32 0.015625, %v42_v9 }
  0x93   :  { %v532_v12 = vsub.f32 %v506_v0, %v47_v10  ;;  %v535_v13 = vsub.f32 %v511_v1, %v49_v11  ;;  %v369_v10 = vld [vmem:[%s632_s1] ss:$0 sm:$0xff] }
  0x94   :  { %v39_v14 = vpop.xlane.xlu0 %38  ;;  %v45_v15 = vpop.xlane.xlu1 %44 }
  0x95   :  { %v48_v16 = vmul.f32 0.015625, %v39_v14  ;;  %v50_v17 = vmul.f32 0.015625, %v45_v15  ;;  %v55_v18 = vmul.f32 %v532_v12, %v532_v12  ;;  %v57_v19 = vmul.f32 %v535_v13, %v535_v13 }
  0x96   :  { %v109_v14 = vmul.f32 %v369_v10, %v532_v12 }
  0x97   :  { %v542_v20 = vsub.f32 %v516_v2, %v48_v16  ;;  %v545_v21 = vsub.f32 %v525_v5, %v50_v17  ;;  %v59_v22 = vsel %vm33_vm0, %v55_v18, 0.0  ;;  %v65_v25 = vsel %vm33_vm0, %v57_v19, 0.0  ;;  %v370_v18 = vld [vmem:[%s633_s2] ss:$0 sm:$0xff] }
  0x98   :  { %60 = vadd.xlane.f32.xlu0 %v59_v22  ;;  %v111_v22 = vmul.f32 %v369_v10, %v535_v13  ;;  %v445_v13 = vld [vmem:[%s631_s5 + $0x30] sm:$0xff]  }
  0x99   :  { %v56_v23 = vmul.f32 %v542_v20, %v542_v20  ;;  %v58_v24 = vmul.f32 %v545_v21, %v545_v21  ;;  %v110_v15 = vmul.f32 %v369_v10, %v542_v20  ;;  %427 = vmatprep.subr.bf16.mxu1 %v445_v13 }
  0x9a   :  { %428 = vmatpush3.bf16.msra.mxu1 %v445_v13 }
  0x9b   :  { %v62_v26 = vsel %vm33_vm0, %v56_v23, 0.0  ;;  %v68_v27 = vsel %vm33_vm0, %v58_v24, 0.0  ;;  %v112_v24 = vmul.f32 %v369_v10, %v545_v21  ;;  %v446_v21 = vld [vmem:[%s631_s5 + $0x38] sm:$0xff]  }
  0x9c   :  { %63 = vadd.xlane.f32.xlu1 %v62_v26  ;;  %66 = vadd.xlane.f32.xlu0 %v65_v25 }
  0x9d   :  { %429 = vmatprep.subr.bf16.mxu1 %v446_v21 }
  0x9e   :  { %430 = vmatpush3.bf16.msra.mxu1 %v446_v21 }
  0xa0   :  { %69 = vadd.xlane.f32.xlu1 %v68_v27 }
 0x125   :  { %v61_v38 = vpop.xlane.xlu0 %60 }
 0x126   :  { %v71_v39 = vmul.f32 0.015873017, %v61_v38 }
 0x128   :  { %447 = vrsqrt.f32 %v71_v39  ;;  %vm77_vm1 = vcmp.eq.f32.partialorder %v71_v39, inf  ;;  %v80_v48 = vand.u32 2147483648, %v71_v39  ;;  %vm79_vm2 = vcmp.eq.f32.partialorder %v71_v39, 0.0 }
 0x129   :  { %v64_v40 = vpop.xlane.xlu1 %63  ;;  %v67_v42 = vpop.xlane.xlu0 %66 }
 0x12a   :  { %v72_v41 = vmul.f32 0.015873017, %v64_v40  ;;  %v73_v43 = vmul.f32 0.015873017, %v67_v42 }
 0x12c   :  { %449 = vrsqrt.f32 %v72_v41  ;;  %vm84_vm3 = vcmp.eq.f32.partialorder %v72_v41, inf  ;;  %v87_v54 = vand.u32 2147483648, %v72_v41  ;;  %vm86_vm4 = vcmp.eq.f32.partialorder %v72_v41, 0.0 }
 0x12d   :  { %451 = vrsqrt.f32 %v73_v43  ;;  %v70_v44 = vpop.xlane.xlu1 %69  ;;  %vm91_vm5 = vcmp.eq.f32.partialorder %v73_v43, inf  ;;  %v94_v58 = vand.u32 2147483648, %v73_v43  ;;  %vm93_vm6 = vcmp.eq.f32.partialorder %v73_v43, 0.0 }
 0x12e   :  { %v74_v45 = vmul.f32 0.015873017, %v70_v44 }
 0x130   :  { %453 = vrsqrt.f32 %v74_v45  ;;  %vm98_vm7 = vcmp.eq.f32.partialorder %v74_v45, inf  ;;  %v101_v6 = vand.u32 2147483648, %v74_v45  ;;  %vm100_vm8 = vcmp.eq.f32.partialorder %v74_v45, 0.0 }
 0x132   :  { %v448_v46 = vpop.eup %447 }
 0x133   :  { %v76_v47 = vmul.f32 %v448_v46, %v71_v39 }
 0x135   :  { %v78_v50 = vsel %vm77_vm1, %v71_v39, %v76_v47  ;;  %v378_v47 = vld [vmem:[%s635_s6] ss:$0 sm:$0xff] }
 0x136   :  { %v450_v49 = vpop.eup %449  ;;  %v81_v53 = vsel %vm79_vm2, %v80_v48, %v78_v50 }
 0x137   :  { %v452_v51 = vpop.eup %451  ;;  %v83_v52 = vmul.f32 %v450_v49, %v72_v41  ;;  %v113_v56 = vadd.f32 1e-06, %v81_v53 }
 0x138   :  { %v90_v55 = vmul.f32 %v452_v51, %v73_v43 }
 0x139   :  { %v85_v57 = vsel %vm84_vm3, %v72_v41, %v83_v52  ;;  %455 = vrcp.f32 %v113_v56 }
 0x13a   :  { %v454_v59 = vpop.eup %453  ;;  %v92_v60 = vsel %vm91_vm5, %v73_v43, %v90_v55  ;;  %v88_v61 = vsel %vm86_vm4, %v87_v54, %v85_v57 }
 0x13b   :  { %v95_v62 = vsel %vm93_vm6, %v94_v58, %v92_v60  ;;  %v97_v63 = vmul.f32 %v454_v59, %v74_v45  ;;  %v114_v3 = vadd.f32 1e-06, %v88_v61 }
 0x13c   :  { %v115_v4 = vadd.f32 1e-06, %v95_v62 }
 0x13d   :  { %v99_v7 = vsel %vm98_vm7, %v74_v45, %v97_v63  ;;  %457 = vrcp.f32 %v114_v3 }
 0x13e   :  { %459 = vrcp.f32 %v115_v4  ;;  %v102_v8 = vsel %vm100_vm8, %v101_v6, %v99_v7 }
 0x13f   :  { %v116_v9 = vadd.f32 1e-06, %v102_v8 }
 0x141   :  { %461 = vrcp.f32 %v116_v9 }
 0x143   :  { %v456_v11 = vpop.eup %455 }
 0x144   :  { %v121_v16 = vmul.f32 %v456_v11, %v109_v14 }
 0x146   :  { %v131_v25 = vadd.f32 %v370_v18, %v121_v16 }
 0x147   :  { %v458_v17 = vpop.eup %457 }
 0x148   :  { %v460_v19 = vpop.eup %459  ;;  %v122_v23 = vmul.f32 %v458_v17, %v110_v15 }
 0x149   :  { %v123_v27 = vmul.f32 %v460_v19, %v111_v22 }
 0x14a   :  { %v132_v26 = vadd.f32 %v370_v18, %v122_v23 }
 0x14b   :  { %v462_v28 = vpop.eup %461  ;;  %v133_v20 = vadd.f32 %v370_v18, %v123_v27 }
 0x14c   :  { %v135_v29 = vpack.c.bf16 %v132_v26, %v131_v25  ;;  %v124_v12 = vmul.f32 %v462_v28, %v112_v24 }
 0x14e   :  { %411 = vmatprep.mubr.msk.bf16.mxu0 %vm33_vm0, %v135_v29  ;;  %v134_v30 = vadd.f32 %v370_v18, %v124_v12 }
 0x150   :  { %v136_v31 = vpack.c.bf16 %v134_v30, %v133_v20 }
 0x152   :  { %412 = vmatmul.mubr.msk.bf16.vlgmr.msra.gmra.mrb[0].mxu0 %vm33_vm0, %v136_v31 }
 0x225   :  { %v413_v33 = vpop.f32.mrb[0].mxu0 }
 0x226   :  { %v225_v34 = vadd.f32 %v413_v33, %v371_v32  ;;  %v216_v35 = vpop.f32.mrb[1].mxu0 }
 0x227   :  { %v217_v36 = vadd.f32 %v371_v32, %v216_v35  ;;  %v414_v37 = vpop.f32.mrb[2].mxu0 }
 0x228   :  { %v228_v38 = vadd.f32 %v414_v37, %v371_v32  ;;  %v219_v39 = vpop.f32.mrb[3].mxu0  ;;  %v233_v41 = vmax.f32 %v225_v34, 0.0 }
 0x229   :  { %v220_v40 = vadd.f32 %v371_v32, %v219_v39  ;;  %v231_v43 = vmax.f32 %v217_v36, 0.0 }
 0x22a   :  { %v234_v42 = vmax.f32 %v228_v38, 0.0 }
 0x22b   :  { %v232_v44 = vmax.f32 %v220_v40, 0.0 }
 0x22c   :  { %v236_v45 = vpack.c.bf16 %v234_v42, %v233_v41 }
 0x22d   :  { %v235_v46 = vpack.c.bf16 %v232_v44, %v231_v43 }
 0x22f   :  { %431 = vmatprep.mubr.bf16.mxu1 %v235_v46 }
 0x230   :  { %432 = vmatmul.mubr.bf16.vlgmr.msra.gmra.mrb[0].mxu1 %v236_v45 }
 0x303   :  { %v433_v48 = vpop.f32.mrb[0].mxu1 }
 0x304   :  { %v351_v49 = vadd.f32 %v433_v48, %v378_v47  ;;  %v342_v50 = vpop.f32.mrb[1].mxu1 }
 0x305   :  { %v343_v51 = vadd.f32 %v378_v47, %v342_v50  ;;  %v434_v52 = vpop.f32.mrb[2].mxu1 }
 0x306   :  { %v359_v53 = vadd.f32 %v351_v49, %v511_v1  ;;  %v354_v54 = vadd.f32 %v434_v52, %v378_v47  ;;  %v345_v55 = vpop.f32.mrb[3].mxu1 }
 0x307   :  { %v357_v56 = vadd.f32 %v343_v51, %v506_v0  ;;  %v346_v57 = vadd.f32 %v378_v47, %v345_v55 }
 0x308   :  { %363 = vst.msk [vmem:[%s636_s7 + $0x10] sm:$0xff] %vm33_vm0, %v359_v53  ;;  %v360_v58 = vadd.f32 %v354_v54, %v525_v5 }
 0x309   :  { %361 = vst.msk [vmem:[%s636_s7] sm:$0xff] %vm33_vm0, %v357_v56  ;;  %v358_v59 = vadd.f32 %v346_v57, %v516_v2 }
 0x30a   :  { %364 = vst.msk [vmem:[%s636_s7 + $0x18] sm:$0xff] %vm33_vm0, %v360_v58 }
 0x30b   :  { %362 = vst.msk [vmem:[%s636_s7 + $0x8] sm:$0xff] %vm33_vm0, %v358_v59 }

// kernel: aligned_frame_decoder_forward.42
= control target key start
LH: loop header
LB: loop body
LE: loop exit
PB: predicated region body
PF: predicated region fallthrough
CT: control target
= control target key end

     0   :  { %vm27_vm0 = vcmask 523264   ;;  %vm241_vm9 = vcmask 519168   ;;  %s410_s0 = inlined_call_operand.vmem [shape: f32[32,64], index: 0, kind: input, shape index: {}]   ;;  %s411_s3 = inlined_call_operand.vmem [shape: bf16[64,64], index: 3, kind: input, shape index: {}]   ;;  %s412_s1 = inlined_call_operand.vmem [shape: f32[1,64], index: 1, kind: input, shape index: {}]   ;;  %s413_s2 = inlined_call_operand.vmem [shape: f32[1,64], index: 2, kind: input, shape index: {}]   ;;  %s414_s4 = inlined_call_operand.vmem [shape: f32[1,64], index: 4, kind: input, shape index: {}]   ;;  %s415_s5 = inlined_call_operand.vmem [shape: bf16[32,64], index: 5, kind: output, shape index: {}]  }
   0x1   :  { %v21_v0 = vld [vmem:[%s410_s0] sm:$0xff]  ;;  %v23_v1 = vld [vmem:[%s410_s0 + $0x10] sm:$0xff]  ;;  %v22_v2 = vld [vmem:[%s410_s0 + $0x8] sm:$0xff] }
   0x2   :  { %v28_v3 = vsel %vm27_vm0, %v21_v0, 0.0  ;;  %v34_v4 = vsel %vm27_vm0, %v23_v1, 0.0  ;;  %v24_v5 = vld [vmem:[%s410_s0 + $0x18] sm:$0xff]  ;;  %v31_v6 = vsel %vm27_vm0, %v22_v2, 0.0  ;;  %v285_v28 = vld [vmem:[%s411_s3] sm:$0xff]   ;;  %v286_v29 = vld [vmem:[%s411_s3 + $0x8] sm:$0xff]  }
   0x3   :  { %29 = vadd.xlane.f32.xlu0 %v28_v3  ;;  %35 = vadd.xlane.f32.xlu1 %v34_v4  ;;  %v37_v7 = vsel %vm27_vm0, %v24_v5, 0.0  ;;  %v287_v30 = vld [vmem:[%s411_s3 + $0x10] sm:$0xff]   ;;  %v288_v31 = vld [vmem:[%s411_s3 + $0x18] sm:$0xff]  }
   0x4   :  { %273 = vmatprep.subr.bf16.mxu0 %v285_v28 }
   0x5   :  { %274 = vmatpush3.bf16.msra.mxu0 %v285_v28 }
   0x6   :  { %275 = vmatprep.subr.bf16.mxu0 %v286_v29 }
   0x7   :  { %32 = vadd.xlane.f32.xlu0 %v31_v6  ;;  %38 = vadd.xlane.f32.xlu1 %v37_v7  ;;  %v251_v6 = vld [vmem:[%s413_s2] ss:$0 sm:$0xff] }
   0x9   :  { %276 = vmatpush3.bf16.msra.mxu0 %v286_v29 }
   0xa   :  { %277 = vmatprep.subr.bf16.mxu0 %v287_v30 }
   0xd   :  { %278 = vmatpush3.bf16.msra.mxu0 %v287_v30 }
   0xe   :  { %279 = vmatprep.subr.bf16.mxu0 %v288_v31 }
  0x11   :  { %280 = vmatpush3.bf16.msra.mxu0 %v288_v31 }
  0x90   :  { %v30_v8 = vpop.xlane.xlu0 %29  ;;  %v36_v9 = vpop.xlane.xlu1 %35 }
  0x91   :  { %v41_v10 = vmul.f32 0.015625, %v30_v8  ;;  %v43_v11 = vmul.f32 0.015625, %v36_v9 }
  0x93   :  { %v351_v12 = vsub.f32 %v21_v0, %v41_v10  ;;  %v353_v13 = vsub.f32 %v23_v1, %v43_v11  ;;  %v250_v0 = vld [vmem:[%s412_s1] ss:$0 sm:$0xff] }
  0x94   :  { %v33_v14 = vpop.xlane.xlu0 %32  ;;  %v39_v15 = vpop.xlane.xlu1 %38 }
  0x95   :  { %v42_v16 = vmul.f32 0.015625, %v33_v14  ;;  %v44_v17 = vmul.f32 0.015625, %v39_v15  ;;  %v49_v18 = vmul.f32 %v351_v12, %v351_v12  ;;  %v51_v19 = vmul.f32 %v353_v13, %v353_v13 }
  0x96   :  { %v105_v8 = vmul.f32 %v250_v0, %v353_v13  ;;  %v252_v13 = vld [vmem:[%s414_s4] ss:$0 sm:$0xff] }
  0x97   :  { %v359_v20 = vsub.f32 %v22_v2, %v42_v16  ;;  %v361_v21 = vsub.f32 %v24_v5, %v44_v17  ;;  %v53_v22 = vsel %vm27_vm0, %v49_v18, 0.0  ;;  %v59_v25 = vsel %vm27_vm0, %v51_v19, 0.0 }
  0x98   :  { %54 = vadd.xlane.f32.xlu0 %v53_v22  ;;  %v103_v2 = vmul.f32 %v250_v0, %v351_v12 }
  0x99   :  { %v50_v23 = vmul.f32 %v359_v20, %v359_v20  ;;  %v52_v24 = vmul.f32 %v361_v21, %v361_v21  ;;  %v104_v3 = vmul.f32 %v250_v0, %v359_v20  ;;  %v106_v10 = vmul.f32 %v250_v0, %v361_v21 }
  0x9b   :  { %v56_v26 = vsel %vm27_vm0, %v50_v23, 0.0  ;;  %v62_v27 = vsel %vm27_vm0, %v52_v24, 0.0 }
  0x9c   :  { %57 = vadd.xlane.f32.xlu1 %v56_v26  ;;  %60 = vadd.xlane.f32.xlu0 %v59_v25 }
  0xa0   :  { %63 = vadd.xlane.f32.xlu1 %v62_v27 }
 0x125   :  { %v55_v32 = vpop.xlane.xlu0 %54 }
 0x126   :  { %v65_v33 = vmul.f32 0.015873017, %v55_v32 }
 0x128   :  { %289 = vrsqrt.f32 %v65_v33  ;;  %vm71_vm1 = vcmp.eq.f32.partialorder %v65_v33, inf  ;;  %v74_v42 = vand.u32 2147483648, %v65_v33  ;;  %vm73_vm2 = vcmp.eq.f32.partialorder %v65_v33, 0.0 }
 0x129   :  { %v58_v34 = vpop.xlane.xlu1 %57  ;;  %v61_v36 = vpop.xlane.xlu0 %60 }
 0x12a   :  { %v66_v35 = vmul.f32 0.015873017, %v58_v34  ;;  %v67_v37 = vmul.f32 0.015873017, %v61_v36 }
 0x12c   :  { %291 = vrsqrt.f32 %v66_v35  ;;  %vm78_vm3 = vcmp.eq.f32.partialorder %v66_v35, inf  ;;  %v81_v48 = vand.u32 2147483648, %v66_v35  ;;  %vm80_vm4 = vcmp.eq.f32.partialorder %v66_v35, 0.0 }
 0x12d   :  { %293 = vrsqrt.f32 %v67_v37  ;;  %v64_v38 = vpop.xlane.xlu1 %63  ;;  %vm85_vm5 = vcmp.eq.f32.partialorder %v67_v37, inf  ;;  %v88_v52 = vand.u32 2147483648, %v67_v37  ;;  %vm87_vm6 = vcmp.eq.f32.partialorder %v67_v37, 0.0 }
 0x12e   :  { %v68_v39 = vmul.f32 0.015873017, %v64_v38 }
 0x130   :  { %295 = vrsqrt.f32 %v68_v39  ;;  %vm92_vm7 = vcmp.eq.f32.partialorder %v68_v39, inf  ;;  %v95_v60 = vand.u32 2147483648, %v68_v39  ;;  %vm94_vm8 = vcmp.eq.f32.partialorder %v68_v39, 0.0 }
 0x132   :  { %v290_v40 = vpop.eup %289 }
 0x133   :  { %v70_v41 = vmul.f32 %v290_v40, %v65_v33 }
 0x135   :  { %v72_v44 = vsel %vm71_vm1, %v65_v33, %v70_v41 }
 0x136   :  { %v292_v43 = vpop.eup %291  ;;  %v75_v47 = vsel %vm73_vm2, %v74_v42, %v72_v44 }
 0x137   :  { %v294_v45 = vpop.eup %293  ;;  %v77_v46 = vmul.f32 %v292_v43, %v66_v35  ;;  %v107_v50 = vadd.f32 1e-06, %v75_v47 }
 0x138   :  { %v84_v49 = vmul.f32 %v294_v45, %v67_v37 }
 0x139   :  { %v79_v51 = vsel %vm78_vm3, %v66_v35, %v77_v46  ;;  %297 = vrcp.f32 %v107_v50 }
 0x13a   :  { %v296_v53 = vpop.eup %295  ;;  %v86_v54 = vsel %vm85_vm5, %v67_v37, %v84_v49  ;;  %v82_v55 = vsel %vm80_vm4, %v81_v48, %v79_v51 }
 0x13b   :  { %v89_v56 = vsel %vm87_vm6, %v88_v52, %v86_v54  ;;  %v91_v57 = vmul.f32 %v296_v53, %v68_v39  ;;  %v108_v58 = vadd.f32 1e-06, %v82_v55 }
 0x13c   :  { %v109_v59 = vadd.f32 1e-06, %v89_v56 }
 0x13d   :  { %v93_v61 = vsel %vm92_vm7, %v68_v39, %v91_v57  ;;  %299 = vrcp.f32 %v108_v58 }
 0x13e   :  { %301 = vrcp.f32 %v109_v59  ;;  %v96_v62 = vsel %vm94_vm8, %v95_v60, %v93_v61 }
 0x13f   :  { %v110_v63 = vadd.f32 1e-06, %v96_v62 }
 0x141   :  { %303 = vrcp.f32 %v110_v63 }
 0x143   :  { %v298_v1 = vpop.eup %297 }
 0x144   :  { %v115_v4 = vmul.f32 %v298_v1, %v103_v2 }
 0x146   :  { %v125_v11 = vadd.f32 %v251_v6, %v115_v4 }
 0x147   :  { %v300_v5 = vpop.eup %299 }
 0x148   :  { %v302_v7 = vpop.eup %301  ;;  %v116_v9 = vmul.f32 %v300_v5, %v104_v3 }
 0x149   :  { %v117_v15 = vmul.f32 %v302_v7, %v105_v8 }
 0x14a   :  { %v126_v14 = vadd.f32 %v251_v6, %v116_v9 }
 0x14b   :  { %v304_v16 = vpop.eup %303  ;;  %v127_v18 = vadd.f32 %v251_v6, %v117_v15 }
 0x14c   :  { %v129_v17 = vpack.c.bf16 %v126_v14, %v125_v11  ;;  %v118_v12 = vmul.f32 %v304_v16, %v106_v10 }
 0x14e   :  { %281 = vmatprep.mubr.msk.bf16.mxu0 %vm27_vm0, %v129_v17  ;;  %v128_v19 = vadd.f32 %v251_v6, %v118_v12 }
 0x150   :  { %v130_v20 = vpack.c.bf16 %v128_v19, %v127_v18 }
 0x152   :  { %282 = vmatmul.mubr.msk.bf16.vlgmr.msra.gmra.mrb[0].mxu0 %vm27_vm0, %v130_v20 }
 0x225   :  { %v283_v22 = vpop.f32.mrb[0].mxu0 }
 0x226   :  { %v219_v23 = vadd.f32 %v283_v22, %v252_v13  ;;  %v210_v21 = vpop.f32.mrb[1].mxu0 }
 0x227   :  { %v211_v24 = vadd.f32 %v252_v13, %v210_v21  ;;  %v284_v25 = vpop.f32.mrb[2].mxu0 }
 0x228   :  { %v265_v26 = vpack.c.bf16 %v219_v23, %v219_v23  ;;  %v222_v27 = vadd.f32 %v284_v25, %v252_v13  ;;  %v213_v28 = vpop.f32.mrb[3].mxu0 }
 0x229   :  { %v263_v29 = vpack.c.bf16 %v211_v24, %v211_v24  ;;  %v214_v30 = vadd.f32 %v252_v13, %v213_v28 }
 0x22a   :  { %244 = vst.msk [vmem:[%s415_s5 + $0x8] sm:$0xf] %vm241_vm9, %v265_v26  ;;  %v266_v31 = vpack.c.bf16 %v222_v27, %v222_v27 }
 0x22b   :  { %242 = vst.msk [vmem:[%s415_s5] sm:$0xf] %vm241_vm9, %v263_v29  ;;  %v264_v32 = vpack.c.bf16 %v214_v30, %v214_v30 }
 0x22c   :  { %245 = vst.msk [vmem:[%s415_s5 + $0xc] sm:$0xf] %vm241_vm9, %v266_v31 }
 0x22d   :  { %243 = vst.msk [vmem:[%s415_s5 + $0x4] sm:$0xf] %vm241_vm9, %v264_v32 }

// kernel: aligned_frame_decoder_forward.47
= control target key start
LH: loop header
LB: loop body
LE: loop exit
PB: predicated region body
PF: predicated region fallthrough
CT: control target
= control target key end

     0   :  { %vm27_vm0 = vcmask 523264   ;;  %s258_s0 = inlined_call_operand.vmem [shape: f32[32,64], index: 0, kind: input, shape index: {}]   ;;  %s259_s1 = inlined_call_operand.vmem [shape: f32[1,64], index: 1, kind: input, shape index: {}]   ;;  %s260_s2 = inlined_call_operand.vmem [shape: f32[1,64], index: 2, kind: input, shape index: {}]   ;;  %s261_s3 = inlined_call_operand.vmem [shape: f32[32,64], index: 3, kind: input, shape index: {}]   ;;  %s262_s4 = inlined_call_operand.vmem [shape: f32[32,64], index: 4, kind: output, shape index: {}]  }
   0x1   :  { %v21_v0 = vld [vmem:[%s258_s0] sm:$0xff]  ;;  %v23_v1 = vld [vmem:[%s258_s0 + $0x10] sm:$0xff]  ;;  %v22_v2 = vld [vmem:[%s258_s0 + $0x8] sm:$0xff] }
   0x2   :  { %v28_v3 = vsel %vm27_vm0, %v21_v0, 0.0  ;;  %v34_v4 = vsel %vm27_vm0, %v23_v1, 0.0  ;;  %v24_v5 = vld [vmem:[%s258_s0 + $0x18] sm:$0xff]  ;;  %v31_v6 = vsel %vm27_vm0, %v22_v2, 0.0  ;;  %v141_v60 = vld [vmem:[%s259_s1] ss:$0 sm:$0xff] }
   0x3   :  { %29 = vadd.xlane.f32.xlu0 %v28_v3  ;;  %35 = vadd.xlane.f32.xlu1 %v34_v4  ;;  %v37_v7 = vsel %vm27_vm0, %v24_v5, 0.0  ;;  %v142_v63 = vld [vmem:[%s260_s2] ss:$0 sm:$0xff] }
   0x7   :  { %32 = vadd.xlane.f32.xlu0 %v31_v6  ;;  %38 = vadd.xlane.f32.xlu1 %v37_v7 }
  0x90   :  { %v30_v8 = vpop.xlane.xlu0 %29  ;;  %v36_v9 = vpop.xlane.xlu1 %35 }
  0x91   :  { %v41_v10 = vmul.f32 0.015625, %v30_v8  ;;  %v43_v11 = vmul.f32 0.015625, %v36_v9  ;;  %v18_v9 = vld [vmem:[%s261_s3 + $0x8] sm:$0xff] }
  0x93   :  { %v200_v12 = vsub.f32 %v21_v0, %v41_v10  ;;  %v202_v13 = vsub.f32 %v23_v1, %v43_v11 }
  0x94   :  { %v33_v14 = vpop.xlane.xlu0 %32  ;;  %v39_v15 = vpop.xlane.xlu1 %38 }
  0x95   :  { %v42_v16 = vmul.f32 0.015625, %v33_v14  ;;  %v44_v17 = vmul.f32 0.015625, %v39_v15  ;;  %v49_v18 = vmul.f32 %v200_v12, %v200_v12  ;;  %v51_v19 = vmul.f32 %v202_v13, %v202_v13  ;;  %v19_v14 = vld [vmem:[%s261_s3 + $0x10] sm:$0xff] }
  0x96   :  { %v103_v61 = vmul.f32 %v141_v60, %v200_v12  ;;  %v105_v4 = vmul.f32 %v141_v60, %v202_v13 }
  0x97   :  { %v208_v20 = vsub.f32 %v22_v2, %v42_v16  ;;  %v210_v21 = vsub.f32 %v24_v5, %v44_v17  ;;  %v53_v22 = vsel %vm27_vm0, %v49_v18, 0.0  ;;  %v59_v25 = vsel %vm27_vm0, %v51_v19, 0.0  ;;  %v17_v2 = vld [vmem:[%s261_s3] sm:$0xff]  ;;  %v20_v19 = vld [vmem:[%s261_s3 + $0x18] sm:$0xff] }
  0x98   :  { %54 = vadd.xlane.f32.xlu0 %v53_v22 }
  0x99   :  { %v50_v23 = vmul.f32 %v208_v20, %v208_v20  ;;  %v52_v24 = vmul.f32 %v210_v21, %v210_v21  ;;  %v104_v1 = vmul.f32 %v141_v60, %v208_v20  ;;  %v106_v11 = vmul.f32 %v141_v60, %v210_v21 }
  0x9b   :  { %v56_v26 = vsel %vm27_vm0, %v50_v23, 0.0  ;;  %v62_v27 = vsel %vm27_vm0, %v52_v24, 0.0 }
  0x9c   :  { %57 = vadd.xlane.f32.xlu1 %v56_v26  ;;  %60 = vadd.xlane.f32.xlu0 %v59_v25 }
  0xa0   :  { %63 = vadd.xlane.f32.xlu1 %v62_v27 }
 0x125   :  { %v55_v28 = vpop.xlane.xlu0 %54 }
 0x126   :  { %v65_v29 = vmul.f32 0.015873017, %v55_v28 }
 0x128   :  { %143 = vrsqrt.f32 %v65_v29  ;;  %vm71_vm1 = vcmp.eq.f32.partialorder %v65_v29, inf  ;;  %v74_v38 = vand.u32 2147483648, %v65_v29  ;;  %vm73_vm2 = vcmp.eq.f32.partialorder %v65_v29, 0.0 }
 0x129   :  { %v58_v30 = vpop.xlane.xlu1 %57  ;;  %v61_v32 = vpop.xlane.xlu0 %60 }
 0x12a   :  { %v66_v31 = vmul.f32 0.015873017, %v58_v30  ;;  %v67_v33 = vmul.f32 0.015873017, %v61_v32 }
 0x12c   :  { %145 = vrsqrt.f32 %v66_v31  ;;  %vm78_vm3 = vcmp.eq.f32.partialorder %v66_v31, inf  ;;  %v81_v45 = vand.u32 2147483648, %v66_v31  ;;  %vm80_vm4 = vcmp.eq.f32.partialorder %v66_v31, 0.0 }
 0x12d   :  { %147 = vrsqrt.f32 %v67_v33  ;;  %v64_v34 = vpop.xlane.xlu1 %63  ;;  %vm85_vm5 = vcmp.eq.f32.partialorder %v67_v33, inf  ;;  %v88_v48 = vand.u32 2147483648, %v67_v33  ;;  %vm87_vm6 = vcmp.eq.f32.partialorder %v67_v33, 0.0 }
 0x12e   :  { %v68_v35 = vmul.f32 0.015873017, %v64_v34 }
 0x130   :  { %149 = vrsqrt.f32 %v68_v35  ;;  %vm92_vm7 = vcmp.eq.f32.partialorder %v68_v35, inf  ;;  %v95_v56 = vand.u32 2147483648, %v68_v35  ;;  %vm94_vm8 = vcmp.eq.f32.partialorder %v68_v35, 0.0 }
 0x132   :  { %v144_v36 = vpop.eup %143 }
 0x133   :  { %v70_v37 = vmul.f32 %v144_v36, %v65_v29 }
 0x135   :  { %v72_v40 = vsel %vm71_vm1, %v65_v29, %v70_v37 }
 0x136   :  { %v146_v39 = vpop.eup %145  ;;  %v75_v42 = vsel %vm73_vm2, %v74_v38, %v72_v40 }
 0x137   :  { %v148_v41 = vpop.eup %147  ;;  %v77_v43 = vmul.f32 %v146_v39, %v66_v31  ;;  %v107_v44 = vadd.f32 1e-06, %v75_v42 }
 0x138   :  { %v84_v46 = vmul.f32 %v148_v41, %v67_v33 }
 0x139   :  { %v79_v47 = vsel %vm78_vm3, %v66_v31, %v77_v43  ;;  %151 = vrcp.f32 %v107_v44 }
 0x13a   :  { %v150_v49 = vpop.eup %149  ;;  %v82_v50 = vsel %vm80_vm4, %v81_v45, %v79_v47  ;;  %v86_v51 = vsel %vm85_vm5, %v67_v33, %v84_v46 }
 0x13b   :  { %v108_v52 = vadd.f32 1e-06, %v82_v50  ;;  %v89_v53 = vsel %vm87_vm6, %v88_v48, %v86_v51  ;;  %v91_v54 = vmul.f32 %v150_v49, %v68_v35 }
 0x13c   :  { %v109_v55 = vadd.f32 1e-06, %v89_v53 }
 0x13d   :  { %153 = vrcp.f32 %v108_v52  ;;  %v93_v57 = vsel %vm92_vm7, %v68_v35, %v91_v54 }
 0x13e   :  { %155 = vrcp.f32 %v109_v55  ;;  %v96_v58 = vsel %vm94_vm8, %v95_v56, %v93_v57 }
 0x13f   :  { %v110_v59 = vadd.f32 1e-06, %v96_v58 }
 0x141   :  { %157 = vrcp.f32 %v110_v59 }
 0x143   :  { %v152_v62 = vpop.eup %151 }
 0x144   :  { %v115_v0 = vmul.f32 %v152_v62, %v103_v61 }
 0x146   :  { %v125_v5 = vadd.f32 %v142_v63, %v115_v0 }
 0x147   :  { %v154_v3 = vpop.eup %153 }
 0x148   :  { %v156_v6 = vpop.eup %155  ;;  %v116_v7 = vmul.f32 %v154_v3, %v104_v1  ;;  %v129_v8 = vadd.f32 %v125_v5, %v17_v2 }
 0x149   :  { %v117_v10 = vmul.f32 %v156_v6, %v105_v4 }
 0x14a   :  { %v126_v12 = vadd.f32 %v142_v63, %v116_v7  ;;  %133 = vst.msk [vmem:[%s262_s4] sm:$0xff] %vm27_vm0, %v129_v8 }
 0x14b   :  { %v158_v15 = vpop.eup %157  ;;  %v127_v13 = vadd.f32 %v142_v63, %v117_v10 }
 0x14c   :  { %v130_v16 = vadd.f32 %v126_v12, %v18_v9  ;;  %v118_v17 = vmul.f32 %v158_v15, %v106_v11 }
 0x14d   :  { %v131_v18 = vadd.f32 %v127_v13, %v19_v14 }
 0x14e   :  { %134 = vst.msk [vmem:[%s262_s4 + $0x8] sm:$0xff] %vm27_vm0, %v130_v16  ;;  %v128_v20 = vadd.f32 %v142_v63, %v118_v17 }
 0x14f   :  { %135 = vst.msk [vmem:[%s262_s4 + $0x10] sm:$0xff] %vm27_vm0, %v131_v18 }
 0x150   :  { %v132_v21 = vadd.f32 %v128_v20, %v20_v19 }
 0x152   :  { %136 = vst.msk [vmem:[%s262_s4 + $0x18] sm:$0xff] %vm27_vm0, %v132_v21 }

// kernel: aligned_frame_decoder_forward.63
= control target key start
LH: loop header
LB: loop body
LE: loop exit
PB: predicated region body
PF: predicated region fallthrough
CT: control target
= control target key end

     0   :  { %vm77_vm0 = vcmask 523264   ;;  %vm133_vm1 = vcmask 261120   ;;  %vm279_vm2 = vcmask 130048   ;;  %vm497_vm3 = vcmask 1043456   ;;  %s798_s1 = inlined_call_operand.vmem [shape: bf16[64,32], index: 1, kind: input, shape index: {}]   ;;  %s799_s0 = inlined_call_operand.vmem [shape: f32[32,64], index: 0, kind: input, shape index: {}]   ;;  %s800_s4 = inlined_call_operand.vmem [shape: bf16[32,16], index: 4, kind: input, shape index: {}]   ;;  %s801_s2 = inlined_call_operand.vmem [shape: f32[1,32], index: 2, kind: input, shape index: {}]   ;;  %s802_s3 = inlined_call_operand.vmem [shape: f32[1,32], index: 3, kind: input, shape index: {}]   ;;  %s803_s7 = inlined_call_operand.vmem [shape: bf16[16,8], index: 7, kind: input, shape index: {}]   ;;  %s804_s5 = inlined_call_operand.vmem [shape: f32[1,16], index: 5, kind: input, shape index: {}]   ;;  %s805_s6 = inlined_call_operand.vmem [shape: f32[1,16], index: 6, kind: input, shape index: {}]   ;;  %s806_s10 = inlined_call_operand.vmem [shape: bf16[8,4], index: 10, kind: input, shape index: {}]   ;;  %s807_s8 = inlined_call_operand.vmem [shape: f32[1,8], index: 8, kind: input, shape index: {}]   ;;  %s808_s9 = inlined_call_operand.vmem [shape: f32[1,8], index: 9, kind: input, shape index: {}]   ;;  %s809_s11 = inlined_call_operand.vmem [shape: f32[32,4], index: 11, kind: output, shape index: {}]  }
   0x1   :  { %v629_v0 = vld [vmem:[%s798_s1] sm:$0xff]   ;;  %v630_v1 = vld [vmem:[%s798_s1 + $0x8] sm:$0xff]   ;;  %v631_v2 = vld [vmem:[%s798_s1 + $0x10] sm:$0xff]   ;;  %vm416_vm4 = vcmask 64512   ;;  %vm550_vm5 = vcmask 31744  }
   0x2   :  { %596 = vmatprep.subr.bf16.mxu0 %v629_v0  ;;  %v39_v3 = vld [vmem:[%s799_s0] sm:$0xff]  ;;  %v40_v4 = vld [vmem:[%s799_s0 + $0x8] sm:$0xff]  ;;  %v632_v6 = vld [vmem:[%s798_s1 + $0x18] sm:$0xff]  }
   0x3   :  { %597 = vmatpush3.bf16.msra.mxu0 %v629_v0  ;;  %v43_v5 = vpack.c.bf16 %v40_v4, %v39_v3  ;;  %v41_v7 = vld [vmem:[%s799_s0 + $0x10] sm:$0xff]  ;;  %v42_v8 = vld [vmem:[%s799_s0 + $0x18] sm:$0xff]  ;;  %v633_v10 = vld [vmem:[%s800_s4] sm:$0xff]  }
   0x4   :  { %598 = vmatprep.subr.bf16.mxu0 %v630_v1  ;;  %v44_v9 = vpack.c.bf16 %v42_v8, %v41_v7  ;;  %v634_v11 = vld [vmem:[%s800_s4 + $0x8] sm:$0xff]   ;;  %608 = vmatprep.subr.bf16.mxu1 %v633_v10  ;;  %v565_v57 = vld [vmem:[%s801_s2] ss:$0 sm:$0xff] }
   0x5   :  { %604 = vmatprep.mubr.msk.bf16.mxu0 %vm77_vm0, %v43_v5  ;;  %609 = vmatpush3.bf16.msra.mxu1 %v633_v10  ;;  %v566_v62 = vld [vmem:[%s802_s3] ss:$0 sm:$0xff] }
   0x6   :  { %610 = vmatprep.subr.bf16.mxu1 %v634_v11 }
   0x7   :  { %599 = vmatpush3.bf16.msra.mxu0 %v630_v1 }
   0x8   :  { %600 = vmatprep.subr.bf16.mxu0 %v631_v2 }
   0x9   :  { %611 = vmatpush3.bf16.msra.mxu1 %v634_v11 }
   0xb   :  { %601 = vmatpush3.bf16.msra.mxu0 %v631_v2 }
   0xc   :  { %602 = vmatprep.subr.bf16.mxu0 %v632_v6 }
   0xf   :  { %603 = vmatpush3.bf16.msra.mxu0 %v632_v6 }
  0x12   :  { %605 = vmatmul.mubr.msk.bf16.vlgmr.msra.gmra.mrb[0].mxu0 %vm77_vm0, %v44_v9 }
  0xe5   :  { %v606_v12 = vpop.f32.mrb[0].mxu0 }
  0xe6   :  { %v118_v13 = vpop.f32.mrb[1].mxu0  ;;  %v151_v17 = vmul.f32 %v606_v12, %v606_v12  ;;  %v137_v22 = vsel %vm133_vm1, %v606_v12, 0.0 }
  0xe7   :  { %v149_v14 = vmul.f32 %v118_v13, %v118_v13  ;;  %v607_v15 = vpop.f32.mrb[2].mxu0  ;;  %v134_v18 = vsel %vm133_vm1, %v118_v13, 0.0 }
  0xe8   :  { %v121_v16 = vpop.f32.mrb[3].mxu0  ;;  %v152_v24 = vmul.f32 %v607_v15, %v607_v15  ;;  %v156_v28 = vsel %vm133_vm1, %v151_v17, 0.0  ;;  %v139_v29 = vsel %vm133_vm1, %v607_v15, 0.0 }
  0xe9   :  { %v135_v19 = vsel %vm133_vm1, %v121_v16, 0.0  ;;  %v150_v20 = vmul.f32 %v121_v16, %v121_v16  ;;  %v153_v23 = vsel %vm133_vm1, %v149_v14, 0.0 }
  0xea   :  { %v136_v21 = vadd.f32 %v135_v19, %v134_v18  ;;  %v158_v32 = vsel %vm133_vm1, %v152_v24, 0.0 }
  0xeb   :  { %v154_v25 = vsel %vm133_vm1, %v150_v20, 0.0 }
  0xec   :  { %v138_v26 = vadd.f32 %v137_v22, %v136_v21  ;;  %v155_v27 = vadd.f32 %v154_v25, %v153_v23 }
  0xee   :  { %v140_v30 = vadd.f32 %v139_v29, %v138_v26  ;;  %v157_v31 = vadd.f32 %v156_v28, %v155_v27 }
  0xf0   :  { %v141_v33 = vrot.slane %v140_v30, 4  ;;  %v159_v34 = vadd.f32 %v158_v32, %v157_v31 }
  0xf2   :  { %v142_v35 = vadd.f32 %v141_v33, %v140_v30  ;;  %v160_v36 = vrot.slane %v159_v34, 4 }
  0xf4   :  { %v143_v37 = vrot.slane %v142_v35, 2  ;;  %v161_v38 = vadd.f32 %v160_v36, %v159_v34 }
  0xf6   :  { %v144_v39 = vadd.f32 %v143_v37, %v142_v35  ;;  %v162_v40 = vrot.slane %v161_v38, 2 }
  0xf8   :  { %v145_v41 = vrot.slane %v144_v39, 1  ;;  %v163_v42 = vadd.f32 %v162_v40, %v161_v38 }
  0xfa   :  { %v146_v43 = vadd.f32 %v145_v41, %v144_v39  ;;  %v164_v44 = vrot.slane %v163_v42, 1 }
  0xfc   :  { %v148_v45 = vmul.f32 0.03125, %v146_v43  ;;  %v165_v46 = vadd.f32 %v164_v44, %v163_v42 }
  0xfe   :  { %v166_v47 = vmul.f32 0.03125, %v165_v46  ;;  %v167_v48 = vmul.f32 %v148_v45, %v148_v45  ;;  %v173_v49 = vsub.f32 %v121_v16, %v148_v45  ;;  %v172_v50 = vsub.f32 %v118_v13, %v148_v45  ;;  %v635_v13 = vld [vmem:[%s803_s7] sm:$0xff]  }
  0xff   :  { %v174_v51 = vsub.f32 %v606_v12, %v148_v45  ;;  %v175_v52 = vsub.f32 %v607_v15, %v148_v45  ;;  %616 = vmatprep.subr.bf16.mxu1 %v635_v13 }
 0x100   :  { %v168_v53 = vsub.f32 %v166_v47, %v167_v48 }
 0x102   :  { %v169_v54 = vmax.f32 %v168_v53, 0.0 }
 0x104   :  { %v170_v55 = vadd.f32 1e-05, %v169_v54 }
 0x106   :  { %636 = vrsqrt.f32 %v170_v55 }
 0x110   :  { %v637_v56 = vpop.eup %636 }
 0x111   :  { %v177_v58 = vmul.f32 %v637_v56, %v173_v49  ;;  %v176_v59 = vmul.f32 %v637_v56, %v172_v50  ;;  %v178_v60 = vmul.f32 %v637_v56, %v174_v51  ;;  %v179_v61 = vmul.f32 %v637_v56, %v175_v52 }
 0x113   :  { %v187_v63 = vmul.f32 %v565_v57, %v176_v59  ;;  %v188_v0 = vmul.f32 %v565_v57, %v177_v58  ;;  %v189_v1 = vmul.f32 %v565_v57, %v178_v60  ;;  %v190_v2 = vmul.f32 %v565_v57, %v179_v61  ;;  %v571_v59 = vld [vmem:[%s804_s5] ss:$0 sm:$0xff] }
 0x115   :  { %v198_v3 = vadd.f32 %v566_v62, %v187_v63  ;;  %v199_v4 = vadd.f32 %v566_v62, %v188_v0  ;;  %v200_v5 = vadd.f32 %v566_v62, %v189_v1  ;;  %v201_v6 = vadd.f32 %v566_v62, %v190_v2  ;;  %v572_v0 = vld [vmem:[%s805_s6] ss:$0 sm:$0xff] }
 0x117   :  { %v202_v7 = vmax.f32 %v198_v3, 0.0  ;;  %v203_v8 = vmax.f32 %v199_v4, 0.0  ;;  %v204_v9 = vmax.f32 %v200_v5, 0.0  ;;  %v205_v10 = vmax.f32 %v201_v6, 0.0 }
 0x119   :  { %v206_v11 = vpack.c.bf16 %v203_v8, %v202_v7  ;;  %v207_v12 = vpack.c.bf16 %v205_v10, %v204_v9 }
 0x11b   :  { %612 = vmatprep.mubr.msk.bf16.mxu1 %vm133_vm1, %v206_v11 }
 0x11c   :  { %613 = vmatmul.mubr.msk.bf16.vlgmr.msra.gmra.mrb[0].mxu1 %vm133_vm1, %v207_v12 }
 0x11d   :  { %617 = vmatpush3.bf16.msra.mxu1 %v635_v13 }
 0x1ef   :  { %v614_v14 = vpop.f32.mrb[0].mxu1 }
 0x1f0   :  { %v264_v15 = vpop.f32.mrb[1].mxu1  ;;  %v296_v19 = vmul.f32 %v614_v14, %v614_v14  ;;  %v283_v24 = vsel %vm279_vm2, %v614_v14, 0.0 }
 0x1f1   :  { %v294_v16 = vmul.f32 %v264_v15, %v264_v15  ;;  %v615_v17 = vpop.f32.mrb[2].mxu1  ;;  %v280_v20 = vsel %vm279_vm2, %v264_v15, 0.0 }
 0x1f2   :  { %v267_v18 = vpop.f32.mrb[3].mxu1  ;;  %v297_v26 = vmul.f32 %v615_v17, %v615_v17  ;;  %v301_v30 = vsel %vm279_vm2, %v296_v19, 0.0  ;;  %v285_v31 = vsel %vm279_vm2, %v615_v17, 0.0 }
 0x1f3   :  { %v281_v21 = vsel %vm279_vm2, %v267_v18, 0.0  ;;  %v295_v22 = vmul.f32 %v267_v18, %v267_v18  ;;  %v298_v25 = vsel %vm279_vm2, %v294_v16, 0.0 }
 0x1f4   :  { %v282_v23 = vadd.f32 %v281_v21, %v280_v20  ;;  %v303_v34 = vsel %vm279_vm2, %v297_v26, 0.0 }
 0x1f5   :  { %v299_v27 = vsel %vm279_vm2, %v295_v22, 0.0 }
 0x1f6   :  { %v284_v28 = vadd.f32 %v283_v24, %v282_v23  ;;  %v300_v29 = vadd.f32 %v299_v27, %v298_v25 }
 0x1f8   :  { %v286_v32 = vadd.f32 %v285_v31, %v284_v28  ;;  %v302_v33 = vadd.f32 %v301_v30, %v300_v29 }
 0x1fa   :  { %v287_v35 = vrot.slane %v286_v32, 4  ;;  %v304_v36 = vadd.f32 %v303_v34, %v302_v33 }
 0x1fc   :  { %v288_v37 = vadd.f32 %v287_v35, %v286_v32  ;;  %v305_v38 = vrot.slane %v304_v36, 4 }
 0x1fe   :  { %v289_v39 = vrot.slane %v288_v37, 2  ;;  %v306_v40 = vadd.f32 %v305_v38, %v304_v36 }
 0x200   :  { %v290_v41 = vadd.f32 %v289_v39, %v288_v37  ;;  %v307_v42 = vrot.slane %v306_v40, 2 }
 0x202   :  { %v291_v43 = vrot.slane %v290_v41, 1  ;;  %v308_v44 = vadd.f32 %v307_v42, %v306_v40 }
 0x204   :  { %v292_v45 = vadd.f32 %v291_v43, %v290_v41  ;;  %v309_v46 = vrot.slane %v308_v44, 1 }
 0x206   :  { %v293_v47 = vmul.f32 0.03125, %v292_v45  ;;  %v310_v48 = vadd.f32 %v309_v46, %v308_v44 }
 0x208   :  { %v311_v49 = vmul.f32 0.03125, %v310_v48  ;;  %v312_v50 = vmul.f32 %v293_v47, %v293_v47  ;;  %v318_v51 = vsub.f32 %v267_v18, %v293_v47  ;;  %v319_v52 = vsub.f32 %v614_v14, %v293_v47 }
 0x209   :  { %v320_v53 = vsub.f32 %v615_v17, %v293_v47  ;;  %v317_v54 = vsub.f32 %v264_v15, %v293_v47  ;;  %v490_v15 = vld [vmem:[%s806_s10] sm:$0xf] }
 0x20a   :  { %v313_v55 = vsub.f32 %v311_v49, %v312_v50  ;;  %628 = vmatprep.subr.msk.bf16.mxu0 %vm497_vm3, %v490_v15  ;;  %v499_v16 = vsel %vm497_vm3, %v490_v15, 0 }
 0x20b   :  { %623 = vmatpush3.bf16.msra.mxu0 %v499_v16 }
 0x20c   :  { %v314_v56 = vmax.f32 %v313_v55, 0.0 }
 0x20e   :  { %v315_v57 = vadd.f32 1e-05, %v314_v56 }
 0x210   :  { %638 = vrsqrt.f32 %v315_v57 }
 0x21a   :  { %v639_v58 = vpop.eup %638 }
 0x21b   :  { %v322_v60 = vmul.f32 %v639_v58, %v318_v51  ;;  %v323_v61 = vmul.f32 %v639_v58, %v319_v52  ;;  %v324_v62 = vmul.f32 %v639_v58, %v320_v53  ;;  %v321_v63 = vmul.f32 %v639_v58, %v317_v54 }
 0x21d   :  { %v333_v1 = vmul.f32 %v571_v59, %v322_v60  ;;  %v334_v2 = vmul.f32 %v571_v59, %v323_v61  ;;  %v335_v3 = vmul.f32 %v571_v59, %v324_v62  ;;  %v332_v4 = vmul.f32 %v571_v59, %v321_v63  ;;  %v576_v62 = vld [vmem:[%s807_s8] ss:$0 sm:$0xff] }
 0x21f   :  { %v344_v5 = vadd.f32 %v572_v0, %v333_v1  ;;  %v343_v6 = vadd.f32 %v572_v0, %v332_v4  ;;  %v345_v7 = vadd.f32 %v572_v0, %v334_v2  ;;  %v346_v8 = vadd.f32 %v572_v0, %v335_v3  ;;  %v577_v3 = vld [vmem:[%s808_s9] ss:$0 sm:$0xff] }
 0x221   :  { %v347_v9 = vmax.f32 %v343_v6, 0.0  ;;  %v348_v10 = vmax.f32 %v344_v5, 0.0  ;;  %v349_v11 = vmax.f32 %v345_v7, 0.0  ;;  %v350_v12 = vmax.f32 %v346_v8, 0.0 }
 0x223   :  { %v351_v13 = vpack.c.bf16 %v348_v10, %v347_v9  ;;  %v352_v14 = vpack.c.bf16 %v350_v12, %v349_v11 }
 0x225   :  { %618 = vmatprep.mubr.msk.bf16.mxu1 %vm279_vm2, %v351_v13 }
 0x226   :  { %619 = vmatmul.mubr.msk.bf16.vlgmr.msra.gmra.mrb[4].mxu1 %vm279_vm2, %v352_v14 }
 0x2f9   :  { %v620_v17 = vpop.f32.mrb[4].mxu1 }
 0x2fa   :  { %v401_v18 = vpop.f32.mrb[5].mxu1  ;;  %v433_v22 = vmul.f32 %v620_v17, %v620_v17  ;;  %v420_v27 = vsel %vm416_vm4, %v620_v17, 0.0 }
 0x2fb   :  { %v431_v19 = vmul.f32 %v401_v18, %v401_v18  ;;  %v621_v20 = vpop.f32.mrb[6].mxu1  ;;  %v417_v23 = vsel %vm416_vm4, %v401_v18, 0.0 }
 0x2fc   :  { %v404_v21 = vpop.f32.mrb[7].mxu1  ;;  %v434_v29 = vmul.f32 %v621_v20, %v621_v20  ;;  %v438_v33 = vsel %vm416_vm4, %v433_v22, 0.0  ;;  %v422_v34 = vsel %vm416_vm4, %v621_v20, 0.0 }
 0x2fd   :  { %v418_v24 = vsel %vm416_vm4, %v404_v21, 0.0  ;;  %v432_v25 = vmul.f32 %v404_v21, %v404_v21  ;;  %v435_v28 = vsel %vm416_vm4, %v431_v19, 0.0 }
 0x2fe   :  { %v419_v26 = vadd.f32 %v418_v24, %v417_v23  ;;  %v440_v37 = vsel %vm416_vm4, %v434_v29, 0.0 }
 0x2ff   :  { %v436_v30 = vsel %vm416_vm4, %v432_v25, 0.0 }
 0x300   :  { %v421_v31 = vadd.f32 %v420_v27, %v419_v26  ;;  %v437_v32 = vadd.f32 %v436_v30, %v435_v28 }
 0x302   :  { %v423_v35 = vadd.f32 %v422_v34, %v421_v31  ;;  %v439_v36 = vadd.f32 %v438_v33, %v437_v32 }
 0x304   :  { %v424_v38 = vrot.slane %v423_v35, 4  ;;  %v441_v39 = vadd.f32 %v440_v37, %v439_v36 }
 0x306   :  { %v425_v40 = vadd.f32 %v424_v38, %v423_v35  ;;  %v442_v41 = vrot.slane %v441_v39, 4 }
 0x308   :  { %v426_v42 = vrot.slane %v425_v40, 2  ;;  %v443_v43 = vadd.f32 %v442_v41, %v441_v39 }
 0x30a   :  { %v427_v44 = vadd.f32 %v426_v42, %v425_v40  ;;  %v444_v45 = vrot.slane %v443_v43, 2 }
 0x30c   :  { %v428_v46 = vrot.slane %v427_v44, 1  ;;  %v445_v47 = vadd.f32 %v444_v45, %v443_v43 }
 0x30e   :  { %v429_v48 = vadd.f32 %v428_v46, %v427_v44  ;;  %v446_v49 = vrot.slane %v445_v47, 1 }
 0x310   :  { %v430_v50 = vmul.f32 0.03125, %v429_v48  ;;  %v447_v51 = vadd.f32 %v446_v49, %v445_v47 }
 0x312   :  { %v448_v52 = vmul.f32 0.03125, %v447_v51  ;;  %v449_v53 = vmul.f32 %v430_v50, %v430_v50  ;;  %v455_v54 = vsub.f32 %v404_v21, %v430_v50  ;;  %v456_v55 = vsub.f32 %v620_v17, %v430_v50 }
 0x313   :  { %v457_v56 = vsub.f32 %v621_v20, %v430_v50  ;;  %v454_v57 = vsub.f32 %v401_v18, %v430_v50 }
 0x314   :  { %v450_v58 = vsub.f32 %v448_v52, %v449_v53 }
 0x316   :  { %v451_v59 = vmax.f32 %v450_v58, 0.0 }
 0x318   :  { %v452_v60 = vadd.f32 1e-05, %v451_v59 }
 0x31a   :  { %640 = vrsqrt.f32 %v452_v60 }
 0x324   :  { %v641_v61 = vpop.eup %640 }
 0x325   :  { %v459_v63 = vmul.f32 %v641_v61, %v455_v54  ;;  %v460_v0 = vmul.f32 %v641_v61, %v456_v55  ;;  %v461_v1 = vmul.f32 %v641_v61, %v457_v56  ;;  %v458_v2 = vmul.f32 %v641_v61, %v454_v57 }
 0x327   :  { %v470_v4 = vmul.f32 %v576_v62, %v459_v63  ;;  %v471_v5 = vmul.f32 %v576_v62, %v460_v0  ;;  %v472_v6 = vmul.f32 %v576_v62, %v461_v1  ;;  %v469_v7 = vmul.f32 %v576_v62, %v458_v2 }
 0x329   :  { %v481_v8 = vadd.f32 %v577_v3, %v470_v4  ;;  %v480_v9 = vadd.f32 %v577_v3, %v469_v7  ;;  %v482_v10 = vadd.f32 %v577_v3, %v471_v5  ;;  %v483_v11 = vadd.f32 %v577_v3, %v472_v6 }
 0x32b   :  { %v485_v12 = vmax.f32 %v481_v8, 0.0  ;;  %v484_v13 = vmax.f32 %v480_v9, 0.0  ;;  %v486_v14 = vmax.f32 %v482_v10, 0.0  ;;  %v487_v15 = vmax.f32 %v483_v11, 0.0 }
 0x32d   :  { %v488_v16 = vpack.c.bf16 %v485_v12, %v484_v13  ;;  %v489_v17 = vpack.c.bf16 %v487_v15, %v486_v14 }
 0x32f   :  { %624 = vmatprep.mubr.msk.bf16.mxu0 %vm416_vm4, %v488_v16 }
 0x330   :  { %625 = vmatmul.mubr.msk.bf16.vlgmr.msra.gmra.mrb[4].mxu0 %vm416_vm4, %v489_v17 }
 0x403   :  { %v626_v18 = vpop.f32.mrb[4].mxu0 }
 0x404   :  { %553 = vst.msk [vmem:[%s809_s11 + $0x10] sm:$0xff] %vm550_vm5, %v626_v18  ;;  %v535_v19 = vpop.f32.mrb[5].mxu0 }
 0x405   :  { %551 = vst.msk [vmem:[%s809_s11] sm:$0xff] %vm550_vm5, %v535_v19  ;;  %v627_v20 = vpop.f32.mrb[6].mxu0 }
 0x406   :  { %554 = vst.msk [vmem:[%s809_s11 + $0x18] sm:$0xff] %vm550_vm5, %v627_v20  ;;  %v538_v21 = vpop.f32.mrb[7].mxu0 }
 0x407   :  { %552 = vst.msk [vmem:[%s809_s11 + $0x8] sm:$0xff] %vm550_vm5, %v538_v21 }

</bundles_post_ra>
